<compile_context>
chip_gen: v7x
topology: tpu7x:2x2x1
jax: 0.10.0
libtpu: 0.0.40
codegen_flags: <defaults>
</compile_context>

<pallas_src>
import functools

import jax
import jax.numpy as jnp
from jax import lax
from jax.experimental import pallas as pl
from jax.experimental.pallas import tpu as pltpu

LANE = 128
BN_EPS = 1e-5


# ------------------------- Pallas kernel ------------------------------------
def lstm_forward_kernel(x_ref,       # (S, TB, D)   f32   (time-major)
                        wih0_ref,    # (D, 4H)      bf16
                        whh0_ref,    # (H, 4H)      bf16
                        b0_ref,      # (1, 4H)      f32   (= b_ih0 + b_hh0)
                        wih1_ref,    # (H, 4H)      bf16
                        whh1_ref,    # (H, 4H)      bf16
                        b1_ref,      # (1, 4H)      f32   (= b_ih1 + b_hh1)
                        fcw_ref,     # (H, OPAD)    bf16  (BN folded in, lane-padded)
                        fcb_ref,     # (1, OPAD)    f32
                        out_ref):    # (TB, OPAD)   f32
    S, TB, D = x_ref.shape
    H = whh0_ref.shape[0]

    # Recurrent weights are consumed S times -> read once; single-use weights
    # (input projection, FC) are read at their dot sites.
    w_hh0 = whh0_ref[...]
    w_ih1 = wih1_ref[...]
    w_hh1 = whh1_ref[...]
    b0 = b0_ref[...]
    b1 = b1_ref[...]

    # Layer-0 input projection for ALL timesteps in one MXU matmul, out of the
    # sequential dependency chain.  Time-major: xg[t] is a contiguous (TB, 4H).
    x_flat = x_ref[...].reshape(S * TB, D).astype(jnp.bfloat16)
    xg = (jnp.dot(x_flat, wih0_ref[...], preferred_element_type=jnp.float32)
          + b0).reshape(S, TB, 4 * H)

    def nonlin(gates):  # gate columns pre-permuted at trace time to (i, f, o, g)
        sg = jax.nn.sigmoid(gates[:, :3 * H])        # one contiguous EUP call
        g_t = jnp.tanh(gates[:, 3 * H:])
        return sg[:, :H], sg[:, H:2 * H], sg[:, 2 * H:3 * H], g_t   # i, f, o, g

    zeros_f = jnp.zeros((TB, H), jnp.float32)
    zeros_b = jnp.zeros((TB, H), jnp.bfloat16)
    c0, c1 = zeros_f, zeros_f
    h0_b, h1_b = zeros_b, zeros_b      # bf16 copies, cast once per step

    # Fully unrolled (static, small S): LLO can interleave MXU / EUP / VPU work
    # across adjacent timesteps; every slice below is static.
    for t in range(S):
        # Layer-1 recurrent half first: both operands ready at step start, so it
        # overlaps layer-0's dot + nonlinearity instead of trailing them.
        g1_rec = jnp.dot(h1_b, w_hh1, preferred_element_type=jnp.float32)

        # Layer 0 (input part precomputed in xg).
        g0 = xg[t] + jnp.dot(h0_b, w_hh0, preferred_element_type=jnp.float32)
        i0, f0, o0, gg0 = nonlin(g0)
        c0 = f0 * c0 + i0 * gg0
        h0 = o0 * jnp.tanh(c0)
        h0_b = h0.astype(jnp.bfloat16)               # single cast, reused below + next step

        # Layer 1: only the h0(t)-dependent half is behind layer 0.
        g1 = g1_rec + jnp.dot(h0_b, w_ih1, preferred_element_type=jnp.float32) + b1
        i1, f1, o1, gg1 = nonlin(g1)
        c1 = f1 * c1 + i1 * gg1
        h1 = o1 * jnp.tanh(c1)
        h1_b = h1.astype(jnp.bfloat16)

    # BatchNorm1d (eval) folded into fcw/fcb; dropout = identity at inference.
    out_ref[...] = (jnp.dot(h1_b, fcw_ref[...], preferred_element_type=jnp.float32)
                    + fcb_ref[...])


# ------------------------- parameter packing (trace-time) --------------------
def _gate_perm(H):
    """torch gate order (i, f, g, o) -> kernel order (i, f, o, g)."""
    idx = jnp.arange(H)
    return jnp.concatenate([idx, idx + H, idx + 3 * H, idx + 2 * H])


def _pack_params(params, out_pad):
    H = params["W_hh0"].shape[1]
    O = params["fc_w"].shape[0]
    perm = _gate_perm(H)

    def pack_w(w):     # (4H, in) torch layout -> (in, 4H) permuted, bf16
        return w.T[:, perm].astype(jnp.bfloat16)

    def pack_b(b_ih, b_hh):
        return (b_ih + b_hh)[perm][None, :].astype(jnp.float32)

    w_ih0 = pack_w(params["W_ih0"])                                  # (D, 4H)
    w_hh0 = pack_w(params["W_hh0"])                                  # (H, 4H)
    b0 = pack_b(params["b_ih0"], params["b_hh0"])
    w_ih1 = pack_w(params["W_ih1"])                                  # (H, 4H)
    w_hh1 = pack_w(params["W_hh1"])                                  # (H, 4H)
    b1 = pack_b(params["b_ih1"], params["b_hh1"])

    # Fold eval-mode BatchNorm1d into the final Linear.
    inv_std = lax.rsqrt(params["bn_var"] + BN_EPS)
    scale = params["bn_gamma"] * inv_std                             # (H,)
    shift = params["bn_beta"] - params["bn_mean"] * scale            # (H,)
    fc_w_t = params["fc_w"].T                                        # (H, O)
    fc_w_eff = scale[:, None] * fc_w_t                               # (H, O)
    fc_b_eff = params["fc_b"] + shift @ fc_w_t                       # (O,)

    # Lane-dense (padded to 128) output weights -> unmasked stores in the kernel.
    fc_w_pad = jnp.zeros((H, out_pad), jnp.float32).at[:, :O].set(fc_w_eff)
    fc_w_pad = fc_w_pad.astype(jnp.bfloat16)
    fc_b_pad = jnp.zeros((1, out_pad), jnp.float32).at[0, :O].set(fc_b_eff)

    return w_ih0, w_hh0, b0, w_ih1, w_hh1, b1, fc_w_pad, fc_b_pad


# ------------------------- wrapper -------------------------------------------
def _default_batch_block(B):
    """One batch tile per TensorCore: B on 1-TC chips (v5e/v6e), B//2 on v7x."""
    kind = ""
    try:
        kind = jax.devices()[0].device_kind.lower()
    except Exception:
        pass
    if ("v7" in kind or "7x" in kind) and B % 2 == 0 and (B // 2) % 8 == 0:
        return B // 2
    return B


@functools.partial(jax.jit, static_argnums=(2,))
def _lstm_forward_jit(x, params, batch_block):
    B, S, D = x.shape
    H = params["W_hh0"].shape[1]
    O = params["fc_w"].shape[0]
    out_pad = max(LANE, ((O + LANE - 1) // LANE) * LANE)

    packed = _pack_params(params, out_pad)

    # Time-major layout: per-timestep gate slices become contiguous tiles.
    x_tm = jnp.transpose(x, (1, 0, 2))                               # (S, B, D)

    grid = (B // batch_block,)
    full2d = lambda shape: pl.BlockSpec(shape, lambda b: (0, 0))
    in_specs = [
        pl.BlockSpec((S, batch_block, D), lambda b: (0, b, 0)),      # x (batch-tiled)
        full2d((D, 4 * H)),                                          # w_ih0
        full2d((H, 4 * H)),                                          # w_hh0
        full2d((1, 4 * H)),                                          # b0
        full2d((H, 4 * H)),                                          # w_ih1
        full2d((H, 4 * H)),                                          # w_hh1
        full2d((1, 4 * H)),                                          # b1
        full2d((H, out_pad)),                                        # fc_w (BN-folded)
        full2d((1, out_pad)),                                        # fc_b
    ]
    out_specs = pl.BlockSpec((batch_block, out_pad), lambda b: (b, 0))

    out_padded = pl.pallas_call(
        lstm_forward_kernel,
        out_shape=jax.ShapeDtypeStruct((B, out_pad), jnp.float32),
        grid=grid,
        in_specs=in_specs,
        out_specs=out_specs,
        compiler_params=pltpu.CompilerParams(
            dimension_semantics=("parallel",)),      # 1 tile/core; no-op on 1-TC chips
    )(x_tm, *packed)

    return out_padded[:, :O]


def lstm_model_forward(x, params, *, batch_block=None):
    """x: (batch, seq, input_dim) float32.  Returns logits (batch, output_dim)."""
    B = x.shape[0]
    if batch_block is None:
        batch_block = _default_batch_block(B)
    assert B % batch_block == 0
    assert batch_block == B or batch_block % 8 == 0
    return _lstm_forward_jit(x, params, batch_block)


# ------------------------- deterministic parameter init ----------------------
def init_params(key, input_dim, hidden_dim, output_dim):
    stdv = float(hidden_dim) ** -0.5
    keys = jax.random.split(key, 10)

    def unif(k, shape, bound):
        return jax.random.uniform(k, shape, jnp.float32, minval=-bound, maxval=bound)

    # torch layout: W_ih[l] is (4H, in_dim), W_hh[l] is (4H, H); gate order i,f,g,o.
    return {
        "W_ih0": unif(keys[0], (4 * hidden_dim, input_dim), stdv),
        "W_hh0": unif(keys[1], (4 * hidden_dim, hidden_dim), stdv),
        "b_ih0": unif(keys[2], (4 * hidden_dim,), stdv),
        "b_hh0": unif(keys[3], (4 * hidden_dim,), stdv),
        "W_ih1": unif(keys[4], (4 * hidden_dim, hidden_dim), stdv),
        "W_hh1": unif(keys[5], (4 * hidden_dim, hidden_dim), stdv),
        "b_ih1": unif(keys[6], (4 * hidden_dim,), stdv),
        "b_hh1": unif(keys[7], (4 * hidden_dim,), stdv),
        "bn_gamma": jnp.ones((hidden_dim,), jnp.float32),
        "bn_beta": jnp.zeros((hidden_dim,), jnp.float32),
        "bn_mean": jnp.zeros((hidden_dim,), jnp.float32),
        "bn_var": jnp.ones((hidden_dim,), jnp.float32),
        # nn.Linear default init ~ U(-1/sqrt(fan_in), 1/sqrt(fan_in)).
        "fc_w": unif(keys[8], (output_dim, hidden_dim), stdv),
        "fc_b": unif(keys[9], (output_dim,), stdv),
    }


# ------------------------- pure-JAX reference (correctness check) ------------
def reference_forward(x, params, matmul_dtype=jnp.float32):
    """Eval-mode forward matching the PyTorch module (torch gate order).
    `matmul_dtype=bf16` reproduces the kernel's bf16-input / f32-acc MXU math."""
    B, S, _ = x.shape
    H = params["W_hh0"].shape[1]
    md = matmul_dtype

    def mm(a, b):
        return jnp.dot(a.astype(md), b.astype(md), preferred_element_type=jnp.float32)

    def cell(inp, h, c, w_ih, w_hh, b_ih, b_hh):
        gates = mm(inp, w_ih.T) + b_ih + mm(h, w_hh.T) + b_hh
        i = jax.nn.sigmoid(gates[:, :H])
        f = jax.nn.sigmoid(gates[:, H:2 * H])
        g = jnp.tanh(gates[:, 2 * H:3 * H])
        o = jax.nn.sigmoid(gates[:, 3 * H:])
        c = f * c + i * g
        return o * jnp.tanh(c), c

    h0 = c0 = h1 = c1 = jnp.zeros((B, H), jnp.float32)
    for t in range(S):
        h0, c0 = cell(x[:, t, :], h0, c0, params["W_ih0"], params["W_hh0"],
                      params["b_ih0"], params["b_hh0"])
        h1, c1 = cell(h0, h1, c1, params["W_ih1"], params["W_hh1"],
                      params["b_ih1"], params["b_hh1"])

    y = (h1 - params["bn_mean"]) * lax.rsqrt(params["bn_var"] + BN_EPS)
    y = y * params["bn_gamma"] + params["bn_beta"]
    return mm(y, params["fc_w"].T) + params["fc_b"]


# ------------------------- main ----------------------------------------------
if __name__ == "__main__":
    batch, seq_len, input_dim = 16, 8, 16
    hidden_dim, output_dim = 128, 1          # hidden_dim=128 as in the PyTorch spec

    key = jax.random.PRNGKey(0)
    k_x, k_p = jax.random.split(key)
    x = jax.random.normal(k_x, (batch, seq_len, input_dim), jnp.float32)
    params = init_params(k_p, input_dim, hidden_dim, output_dim)

    # batch_block auto-selected: B on 1-TC chips (v5e/v6e), B//2 on v7x.
    logits = lstm_model_forward(x, params)
    logits = jax.block_until_ready(logits)
    assert logits.shape == (batch, output_dim)

    # Tight check vs reference using the same bf16-input MXU math.
    ref_bf16 = reference_forward(x, params, matmul_dtype=jnp.bfloat16)
    assert jnp.allclose(logits, ref_bf16, atol=5e-3, rtol=5e-3), (logits, ref_bf16)

    # Loose check vs the full-f32 reference (bf16 MXU inputs -> small drift).
    ref_f32 = reference_forward(x, params, matmul_dtype=jnp.float32)
    assert jnp.allclose(logits, ref_f32, atol=5e-2, rtol=5e-2), (logits, ref_f32)

    print("KERNEL_OK")
</pallas_src>

<mosaic_0001>
module attributes {stable_mosaic.version = 11 : i64} {
  func.func @lstm_forward_kernel(%arg0: i32, %arg1: memref<8x16x16xf32, #tpu.memory_space<vmem>>, %arg2: memref<16x512xbf16, #tpu.memory_space<vmem>>, %arg3: memref<128x512xbf16, #tpu.memory_space<vmem>>, %arg4: memref<1x512xf32, #tpu.memory_space<vmem>>, %arg5: memref<128x512xbf16, #tpu.memory_space<vmem>>, %arg6: memref<128x512xbf16, #tpu.memory_space<vmem>>, %arg7: memref<1x512xf32, #tpu.memory_space<vmem>>, %arg8: memref<128x128xbf16, #tpu.memory_space<vmem>>, %arg9: memref<1x128xf32, #tpu.memory_space<vmem>>, %arg10: memref<16x128xf32, #tpu.memory_space<vmem>>) attributes {dimension_semantics = [#tpu.dimension_semantics<parallel>], iteration_bounds = array<i64: 1>, scalar_prefetch = 0 : i64, scratch_operands = 0 : i64, tpu.core_type = #tpu.core_type<tc>, window_params = [{transform_indices = @transform_0, window_bounds = array<i64: 8, 16, 16>}, {pipeline_mode = #tpu.pipeline_mode<synchronous>, transform_indices = @transform_1, window_bounds = array<i64: 16, 512>}, {pipeline_mode = #tpu.pipeline_mode<synchronous>, transform_indices = @transform_2, window_bounds = array<i64: 128, 512>}, {pipeline_mode = #tpu.pipeline_mode<synchronous>, transform_indices = @transform_3, window_bounds = array<i64: 1, 512>}, {pipeline_mode = #tpu.pipeline_mode<synchronous>, transform_indices = @transform_4, window_bounds = array<i64: 128, 512>}, {pipeline_mode = #tpu.pipeline_mode<synchronous>, transform_indices = @transform_5, window_bounds = array<i64: 128, 512>}, {pipeline_mode = #tpu.pipeline_mode<synchronous>, transform_indices = @transform_6, window_bounds = array<i64: 1, 512>}, {pipeline_mode = #tpu.pipeline_mode<synchronous>, transform_indices = @transform_7, window_bounds = array<i64: 128, 128>}, {pipeline_mode = #tpu.pipeline_mode<synchronous>, transform_indices = @transform_8, window_bounds = array<i64: 1, 128>}, {transform_indices = @transform_9, window_bounds = array<i64: 16, 128>}]} {
    %c0 = arith.constant 0 : index
    %c0_0 = arith.constant 0 : index
    %0 = vector.load %arg3[%c0, %c0_0] : memref<128x512xbf16, #tpu.memory_space<vmem>>, vector<128x512xbf16>
    %c0_1 = arith.constant 0 : index
    %c0_2 = arith.constant 0 : index
    %1 = vector.load %arg5[%c0_1, %c0_2] : memref<128x512xbf16, #tpu.memory_space<vmem>>, vector<128x512xbf16>
    %c0_3 = arith.constant 0 : index
    %c0_4 = arith.constant 0 : index
    %2 = vector.load %arg6[%c0_3, %c0_4] : memref<128x512xbf16, #tpu.memory_space<vmem>>, vector<128x512xbf16>
    %c0_5 = arith.constant 0 : index
    %c0_6 = arith.constant 0 : index
    %3 = vector.load %arg4[%c0_5, %c0_6] : memref<1x512xf32, #tpu.memory_space<vmem>>, vector<1x512xf32>
    %c0_7 = arith.constant 0 : index
    %c0_8 = arith.constant 0 : index
    %4 = vector.load %arg7[%c0_7, %c0_8] : memref<1x512xf32, #tpu.memory_space<vmem>>, vector<1x512xf32>
    %c0_9 = arith.constant 0 : index
    %c0_10 = arith.constant 0 : index
    %c0_11 = arith.constant 0 : index
    %5 = vector.load %arg1[%c0_9, %c0_10, %c0_11] : memref<8x16x16xf32, #tpu.memory_space<vmem>>, vector<8x16x16xf32>
    %6 = vector.shape_cast %5 : vector<8x16x16xf32> to vector<128x16xf32>
    %7 = arith.truncf %6 : vector<128x16xf32> to vector<128x16xbf16>
    %c0_12 = arith.constant 0 : index
    %c0_13 = arith.constant 0 : index
    %8 = vector.load %arg2[%c0_12, %c0_13] : memref<16x512xbf16, #tpu.memory_space<vmem>>, vector<16x512xbf16>
    %cst = arith.constant dense<0.000000e+00> : vector<128x512xf32>
    %9 = tpu.matmul %7, %8, %cst {dimension_numbers = #tpu.dot_dimension_numbers<[1], [0], [0], [1], [0, 0, 1, 1], [], []>} : vector<128x16xbf16>, vector<16x512xbf16>, vector<128x512xf32> -> vector<128x512xf32>
    %10 = vector.broadcast %3 : vector<1x512xf32> to vector<128x512xf32>
    %11 = arith.addf %9, %10 : vector<128x512xf32>
    %12 = vector.shape_cast %11 : vector<128x512xf32> to vector<8x16x512xf32>
    %cst_14 = arith.constant 0.000000e+00 : f32
    %13 = vector.broadcast %cst_14 : f32 to vector<16x128xf32>
    %cst_15 = arith.constant 0.000000e+00 : bf16
    %14 = vector.broadcast %cst_15 : bf16 to vector<16x128xbf16>
    %cst_16 = arith.constant dense<0.000000e+00> : vector<16x512xf32>
    %15 = tpu.matmul %14, %2, %cst_16 {dimension_numbers = #tpu.dot_dimension_numbers<[1], [0], [0], [1], [0, 0, 1, 1], [], []>} : vector<16x128xbf16>, vector<128x512xbf16>, vector<16x512xf32> -> vector<16x512xf32>
    %16 = vector.extract_strided_slice %12 {offsets = [0, 0, 0], sizes = [1, 16, 512], strides = [1, 1, 1]} : vector<8x16x512xf32> to vector<1x16x512xf32>
    %17 = vector.shape_cast %16 : vector<1x16x512xf32> to vector<16x512xf32>
    %cst_17 = arith.constant dense<0.000000e+00> : vector<16x512xf32>
    %18 = tpu.matmul %14, %0, %cst_17 {dimension_numbers = #tpu.dot_dimension_numbers<[1], [0], [0], [1], [0, 0, 1, 1], [], []>} : vector<16x128xbf16>, vector<128x512xbf16>, vector<16x512xf32> -> vector<16x512xf32>
    %19 = arith.addf %17, %18 : vector<16x512xf32>
    %20 = vector.extract_strided_slice %19 {offsets = [0, 0], sizes = [16, 384], strides = [1, 1]} : vector<16x512xf32> to vector<16x384xf32>
    %21 = arith.negf %20 : vector<16x384xf32>
    %22 = math.exp %21 : vector<16x384xf32>
    %cst_18 = arith.constant 1.000000e+00 : f32
    %23 = vector.broadcast %cst_18 : f32 to vector<16x384xf32>
    %24 = arith.addf %23, %22 : vector<16x384xf32>
    %25 = arith.divf %23, %24 : vector<16x384xf32>
    %26 = vector.extract_strided_slice %19 {offsets = [0, 384], sizes = [16, 128], strides = [1, 1]} : vector<16x512xf32> to vector<16x128xf32>
    %27 = math.tanh %26 : vector<16x128xf32>
    %28 = vector.extract_strided_slice %25 {offsets = [0, 0], sizes = [16, 128], strides = [1, 1]} : vector<16x384xf32> to vector<16x128xf32>
    %29 = vector.extract_strided_slice %25 {offsets = [0, 128], sizes = [16, 128], strides = [1, 1]} : vector<16x384xf32> to vector<16x128xf32>
    %30 = vector.extract_strided_slice %25 {offsets = [0, 256], sizes = [16, 128], strides = [1, 1]} : vector<16x384xf32> to vector<16x128xf32>
    %31 = arith.mulf %29, %13 : vector<16x128xf32>
    %32 = arith.mulf %28, %27 : vector<16x128xf32>
    %33 = arith.addf %31, %32 : vector<16x128xf32>
    %34 = math.tanh %33 : vector<16x128xf32>
    %35 = arith.mulf %30, %34 : vector<16x128xf32>
    %36 = arith.truncf %35 : vector<16x128xf32> to vector<16x128xbf16>
    %cst_19 = arith.constant dense<0.000000e+00> : vector<16x512xf32>
    %37 = tpu.matmul %36, %1, %cst_19 {dimension_numbers = #tpu.dot_dimension_numbers<[1], [0], [0], [1], [0, 0, 1, 1], [], []>} : vector<16x128xbf16>, vector<128x512xbf16>, vector<16x512xf32> -> vector<16x512xf32>
    %38 = arith.addf %15, %37 : vector<16x512xf32>
    %39 = vector.broadcast %4 : vector<1x512xf32> to vector<16x512xf32>
    %40 = arith.addf %38, %39 : vector<16x512xf32>
    %41 = vector.extract_strided_slice %40 {offsets = [0, 0], sizes = [16, 384], strides = [1, 1]} : vector<16x512xf32> to vector<16x384xf32>
    %42 = arith.negf %41 : vector<16x384xf32>
    %43 = math.exp %42 : vector<16x384xf32>
    %cst_20 = arith.constant 1.000000e+00 : f32
    %44 = vector.broadcast %cst_20 : f32 to vector<16x384xf32>
    %45 = arith.addf %44, %43 : vector<16x384xf32>
    %46 = arith.divf %44, %45 : vector<16x384xf32>
    %47 = vector.extract_strided_slice %40 {offsets = [0, 384], sizes = [16, 128], strides = [1, 1]} : vector<16x512xf32> to vector<16x128xf32>
    %48 = math.tanh %47 : vector<16x128xf32>
    %49 = vector.extract_strided_slice %46 {offsets = [0, 0], sizes = [16, 128], strides = [1, 1]} : vector<16x384xf32> to vector<16x128xf32>
    %50 = vector.extract_strided_slice %46 {offsets = [0, 128], sizes = [16, 128], strides = [1, 1]} : vector<16x384xf32> to vector<16x128xf32>
    %51 = vector.extract_strided_slice %46 {offsets = [0, 256], sizes = [16, 128], strides = [1, 1]} : vector<16x384xf32> to vector<16x128xf32>
    %52 = arith.mulf %50, %13 : vector<16x128xf32>
    %53 = arith.mulf %49, %48 : vector<16x128xf32>
    %54 = arith.addf %52, %53 : vector<16x128xf32>
    %55 = math.tanh %54 : vector<16x128xf32>
    %56 = arith.mulf %51, %55 : vector<16x128xf32>
    %57 = arith.truncf %56 : vector<16x128xf32> to vector<16x128xbf16>
    %cst_21 = arith.constant dense<0.000000e+00> : vector<16x512xf32>
    %58 = tpu.matmul %57, %2, %cst_21 {dimension_numbers = #tpu.dot_dimension_numbers<[1], [0], [0], [1], [0, 0, 1, 1], [], []>} : vector<16x128xbf16>, vector<128x512xbf16>, vector<16x512xf32> -> vector<16x512xf32>
    %59 = vector.extract_strided_slice %12 {offsets = [1, 0, 0], sizes = [1, 16, 512], strides = [1, 1, 1]} : vector<8x16x512xf32> to vector<1x16x512xf32>
    %60 = vector.shape_cast %59 : vector<1x16x512xf32> to vector<16x512xf32>
    %cst_22 = arith.constant dense<0.000000e+00> : vector<16x512xf32>
    %61 = tpu.matmul %36, %0, %cst_22 {dimension_numbers = #tpu.dot_dimension_numbers<[1], [0], [0], [1], [0, 0, 1, 1], [], []>} : vector<16x128xbf16>, vector<128x512xbf16>, vector<16x512xf32> -> vector<16x512xf32>
    %62 = arith.addf %60, %61 : vector<16x512xf32>
    %63 = vector.extract_strided_slice %62 {offsets = [0, 0], sizes = [16, 384], strides = [1, 1]} : vector<16x512xf32> to vector<16x384xf32>
    %64 = arith.negf %63 : vector<16x384xf32>
    %65 = math.exp %64 : vector<16x384xf32>
    %cst_23 = arith.constant 1.000000e+00 : f32
    %66 = vector.broadcast %cst_23 : f32 to vector<16x384xf32>
    %67 = arith.addf %66, %65 : vector<16x384xf32>
    %68 = arith.divf %66, %67 : vector<16x384xf32>
    %69 = vector.extract_strided_slice %62 {offsets = [0, 384], sizes = [16, 128], strides = [1, 1]} : vector<16x512xf32> to vector<16x128xf32>
    %70 = math.tanh %69 : vector<16x128xf32>
    %71 = vector.extract_strided_slice %68 {offsets = [0, 0], sizes = [16, 128], strides = [1, 1]} : vector<16x384xf32> to vector<16x128xf32>
    %72 = vector.extract_strided_slice %68 {offsets = [0, 128], sizes = [16, 128], strides = [1, 1]} : vector<16x384xf32> to vector<16x128xf32>
    %73 = vector.extract_strided_slice %68 {offsets = [0, 256], sizes = [16, 128], strides = [1, 1]} : vector<16x384xf32> to vector<16x128xf32>
    %74 = arith.mulf %72, %33 : vector<16x128xf32>
    %75 = arith.mulf %71, %70 : vector<16x128xf32>
    %76 = arith.addf %74, %75 : vector<16x128xf32>
    %77 = math.tanh %76 : vector<16x128xf32>
    %78 = arith.mulf %73, %77 : vector<16x128xf32>
    %79 = arith.truncf %78 : vector<16x128xf32> to vector<16x128xbf16>
    %cst_24 = arith.constant dense<0.000000e+00> : vector<16x512xf32>
    %80 = tpu.matmul %79, %1, %cst_24 {dimension_numbers = #tpu.dot_dimension_numbers<[1], [0], [0], [1], [0, 0, 1, 1], [], []>} : vector<16x128xbf16>, vector<128x512xbf16>, vector<16x512xf32> -> vector<16x512xf32>
    %81 = arith.addf %58, %80 : vector<16x512xf32>
    %82 = vector.broadcast %4 : vector<1x512xf32> to vector<16x512xf32>
    %83 = arith.addf %81, %82 : vector<16x512xf32>
    %84 = vector.extract_strided_slice %83 {offsets = [0, 0], sizes = [16, 384], strides = [1, 1]} : vector<16x512xf32> to vector<16x384xf32>
    %85 = arith.negf %84 : vector<16x384xf32>
    %86 = math.exp %85 : vector<16x384xf32>
    %cst_25 = arith.constant 1.000000e+00 : f32
    %87 = vector.broadcast %cst_25 : f32 to vector<16x384xf32>
    %88 = arith.addf %87, %86 : vector<16x384xf32>
    %89 = arith.divf %87, %88 : vector<16x384xf32>
    %90 = vector.extract_strided_slice %83 {offsets = [0, 384], sizes = [16, 128], strides = [1, 1]} : vector<16x512xf32> to vector<16x128xf32>
    %91 = math.tanh %90 : vector<16x128xf32>
    %92 = vector.extract_strided_slice %89 {offsets = [0, 0], sizes = [16, 128], strides = [1, 1]} : vector<16x384xf32> to vector<16x128xf32>
    %93 = vector.extract_strided_slice %89 {offsets = [0, 128], sizes = [16, 128], strides = [1, 1]} : vector<16x384xf32> to vector<16x128xf32>
    %94 = vector.extract_strided_slice %89 {offsets = [0, 256], sizes = [16, 128], strides = [1, 1]} : vector<16x384xf32> to vector<16x128xf32>
    %95 = arith.mulf %93, %54 : vector<16x128xf32>
    %96 = arith.mulf %92, %91 : vector<16x128xf32>
    %97 = arith.addf %95, %96 : vector<16x128xf32>
    %98 = math.tanh %97 : vector<16x128xf32>
    %99 = arith.mulf %94, %98 : vector<16x128xf32>
    %100 = arith.truncf %99 : vector<16x128xf32> to vector<16x128xbf16>
    %cst_26 = arith.constant dense<0.000000e+00> : vector<16x512xf32>
    %101 = tpu.matmul %100, %2, %cst_26 {dimension_numbers = #tpu.dot_dimension_numbers<[1], [0], [0], [1], [0, 0, 1, 1], [], []>} : vector<16x128xbf16>, vector<128x512xbf16>, vector<16x512xf32> -> vector<16x512xf32>
    %102 = vector.extract_strided_slice %12 {offsets = [2, 0, 0], sizes = [1, 16, 512], strides = [1, 1, 1]} : vector<8x16x512xf32> to vector<1x16x512xf32>
    %103 = vector.shape_cast %102 : vector<1x16x512xf32> to vector<16x512xf32>
    %cst_27 = arith.constant dense<0.000000e+00> : vector<16x512xf32>
    %104 = tpu.matmul %79, %0, %cst_27 {dimension_numbers = #tpu.dot_dimension_numbers<[1], [0], [0], [1], [0, 0, 1, 1], [], []>} : vector<16x128xbf16>, vector<128x512xbf16>, vector<16x512xf32> -> vector<16x512xf32>
    %105 = arith.addf %103, %104 : vector<16x512xf32>
    %106 = vector.extract_strided_slice %105 {offsets = [0, 0], sizes = [16, 384], strides = [1, 1]} : vector<16x512xf32> to vector<16x384xf32>
    %107 = arith.negf %106 : vector<16x384xf32>
    %108 = math.exp %107 : vector<16x384xf32>
    %cst_28 = arith.constant 1.000000e+00 : f32
    %109 = vector.broadcast %cst_28 : f32 to vector<16x384xf32>
    %110 = arith.addf %109, %108 : vector<16x384xf32>
    %111 = arith.divf %109, %110 : vector<16x384xf32>
    %112 = vector.extract_strided_slice %105 {offsets = [0, 384], sizes = [16, 128], strides = [1, 1]} : vector<16x512xf32> to vector<16x128xf32>
    %113 = math.tanh %112 : vector<16x128xf32>
    %114 = vector.extract_strided_slice %111 {offsets = [0, 0], sizes = [16, 128], strides = [1, 1]} : vector<16x384xf32> to vector<16x128xf32>
    %115 = vector.extract_strided_slice %111 {offsets = [0, 128], sizes = [16, 128], strides = [1, 1]} : vector<16x384xf32> to vector<16x128xf32>
    %116 = vector.extract_strided_slice %111 {offsets = [0, 256], sizes = [16, 128], strides = [1, 1]} : vector<16x384xf32> to vector<16x128xf32>
    %117 = arith.mulf %115, %76 : vector<16x128xf32>
    %118 = arith.mulf %114, %113 : vector<16x128xf32>
    %119 = arith.addf %117, %118 : vector<16x128xf32>
    %120 = math.tanh %119 : vector<16x128xf32>
    %121 = arith.mulf %116, %120 : vector<16x128xf32>
    %122 = arith.truncf %121 : vector<16x128xf32> to vector<16x128xbf16>
    %cst_29 = arith.constant dense<0.000000e+00> : vector<16x512xf32>
    %123 = tpu.matmul %122, %1, %cst_29 {dimension_numbers = #tpu.dot_dimension_numbers<[1], [0], [0], [1], [0, 0, 1, 1], [], []>} : vector<16x128xbf16>, vector<128x512xbf16>, vector<16x512xf32> -> vector<16x512xf32>
    %124 = arith.addf %101, %123 : vector<16x512xf32>
    %125 = vector.broadcast %4 : vector<1x512xf32> to vector<16x512xf32>
    %126 = arith.addf %124, %125 : vector<16x512xf32>
    %127 = vector.extract_strided_slice %126 {offsets = [0, 0], sizes = [16, 384], strides = [1, 1]} : vector<16x512xf32> to vector<16x384xf32>
    %128 = arith.negf %127 : vector<16x384xf32>
    %129 = math.exp %128 : vector<16x384xf32>
    %cst_30 = arith.constant 1.000000e+00 : f32
    %130 = vector.broadcast %cst_30 : f32 to vector<16x384xf32>
    %131 = arith.addf %130, %129 : vector<16x384xf32>
    %132 = arith.divf %130, %131 : vector<16x384xf32>
    %133 = vector.extract_strided_slice %126 {offsets = [0, 384], sizes = [16, 128], strides = [1, 1]} : vector<16x512xf32> to vector<16x128xf32>
    %134 = math.tanh %133 : vector<16x128xf32>
    %135 = vector.extract_strided_slice %132 {offsets = [0, 0], sizes = [16, 128], strides = [1, 1]} : vector<16x384xf32> to vector<16x128xf32>
    %136 = vector.extract_strided_slice %132 {offsets = [0, 128], sizes = [16, 128], strides = [1, 1]} : vector<16x384xf32> to vector<16x128xf32>
    %137 = vector.extract_strided_slice %132 {offsets = [0, 256], sizes = [16, 128], strides = [1, 1]} : vector<16x384xf32> to vector<16x128xf32>
    %138 = arith.mulf %136, %97 : vector<16x128xf32>
    %139 = arith.mulf %135, %134 : vector<16x128xf32>
    %140 = arith.addf %138, %139 : vector<16x128xf32>
    %141 = math.tanh %140 : vector<16x128xf32>
    %142 = arith.mulf %137, %141 : vector<16x128xf32>
    %143 = arith.truncf %142 : vector<16x128xf32> to vector<16x128xbf16>
    %cst_31 = arith.constant dense<0.000000e+00> : vector<16x512xf32>
    %144 = tpu.matmul %143, %2, %cst_31 {dimension_numbers = #tpu.dot_dimension_numbers<[1], [0], [0], [1], [0, 0, 1, 1], [], []>} : vector<16x128xbf16>, vector<128x512xbf16>, vector<16x512xf32> -> vector<16x512xf32>
    %145 = vector.extract_strided_slice %12 {offsets = [3, 0, 0], sizes = [1, 16, 512], strides = [1, 1, 1]} : vector<8x16x512xf32> to vector<1x16x512xf32>
    %146 = vector.shape_cast %145 : vector<1x16x512xf32> to vector<16x512xf32>
    %cst_32 = arith.constant dense<0.000000e+00> : vector<16x512xf32>
    %147 = tpu.matmul %122, %0, %cst_32 {dimension_numbers = #tpu.dot_dimension_numbers<[1], [0], [0], [1], [0, 0, 1, 1], [], []>} : vector<16x128xbf16>, vector<128x512xbf16>, vector<16x512xf32> -> vector<16x512xf32>
    %148 = arith.addf %146, %147 : vector<16x512xf32>
    %149 = vector.extract_strided_slice %148 {offsets = [0, 0], sizes = [16, 384], strides = [1, 1]} : vector<16x512xf32> to vector<16x384xf32>
    %150 = arith.negf %149 : vector<16x384xf32>
    %151 = math.exp %150 : vector<16x384xf32>
    %cst_33 = arith.constant 1.000000e+00 : f32
    %152 = vector.broadcast %cst_33 : f32 to vector<16x384xf32>
    %153 = arith.addf %152, %151 : vector<16x384xf32>
    %154 = arith.divf %152, %153 : vector<16x384xf32>
    %155 = vector.extract_strided_slice %148 {offsets = [0, 384], sizes = [16, 128], strides = [1, 1]} : vector<16x512xf32> to vector<16x128xf32>
    %156 = math.tanh %155 : vector<16x128xf32>
    %157 = vector.extract_strided_slice %154 {offsets = [0, 0], sizes = [16, 128], strides = [1, 1]} : vector<16x384xf32> to vector<16x128xf32>
    %158 = vector.extract_strided_slice %154 {offsets = [0, 128], sizes = [16, 128], strides = [1, 1]} : vector<16x384xf32> to vector<16x128xf32>
    %159 = vector.extract_strided_slice %154 {offsets = [0, 256], sizes = [16, 128], strides = [1, 1]} : vector<16x384xf32> to vector<16x128xf32>
    %160 = arith.mulf %158, %119 : vector<16x128xf32>
    %161 = arith.mulf %157, %156 : vector<16x128xf32>
    %162 = arith.addf %160, %161 : vector<16x128xf32>
    %163 = math.tanh %162 : vector<16x128xf32>
    %164 = arith.mulf %159, %163 : vector<16x128xf32>
    %165 = arith.truncf %164 : vector<16x128xf32> to vector<16x128xbf16>
    %cst_34 = arith.constant dense<0.000000e+00> : vector<16x512xf32>
    %166 = tpu.matmul %165, %1, %cst_34 {dimension_numbers = #tpu.dot_dimension_numbers<[1], [0], [0], [1], [0, 0, 1, 1], [], []>} : vector<16x128xbf16>, vector<128x512xbf16>, vector<16x512xf32> -> vector<16x512xf32>
    %167 = arith.addf %144, %166 : vector<16x512xf32>
    %168 = vector.broadcast %4 : vector<1x512xf32> to vector<16x512xf32>
    %169 = arith.addf %167, %168 : vector<16x512xf32>
    %170 = vector.extract_strided_slice %169 {offsets = [0, 0], sizes = [16, 384], strides = [1, 1]} : vector<16x512xf32> to vector<16x384xf32>
    %171 = arith.negf %170 : vector<16x384xf32>
    %172 = math.exp %171 : vector<16x384xf32>
    %cst_35 = arith.constant 1.000000e+00 : f32
    %173 = vector.broadcast %cst_35 : f32 to vector<16x384xf32>
    %174 = arith.addf %173, %172 : vector<16x384xf32>
    %175 = arith.divf %173, %174 : vector<16x384xf32>
    %176 = vector.extract_strided_slice %169 {offsets = [0, 384], sizes = [16, 128], strides = [1, 1]} : vector<16x512xf32> to vector<16x128xf32>
    %177 = math.tanh %176 : vector<16x128xf32>
    %178 = vector.extract_strided_slice %175 {offsets = [0, 0], sizes = [16, 128], strides = [1, 1]} : vector<16x384xf32> to vector<16x128xf32>
    %179 = vector.extract_strided_slice %175 {offsets = [0, 128], sizes = [16, 128], strides = [1, 1]} : vector<16x384xf32> to vector<16x128xf32>
    %180 = vector.extract_strided_slice %175 {offsets = [0, 256], sizes = [16, 128], strides = [1, 1]} : vector<16x384xf32> to vector<16x128xf32>
    %181 = arith.mulf %179, %140 : vector<16x128xf32>
    %182 = arith.mulf %178, %177 : vector<16x128xf32>
    %183 = arith.addf %181, %182 : vector<16x128xf32>
    %184 = math.tanh %183 : vector<16x128xf32>
    %185 = arith.mulf %180, %184 : vector<16x128xf32>
    %186 = arith.truncf %185 : vector<16x128xf32> to vector<16x128xbf16>
    %cst_36 = arith.constant dense<0.000000e+00> : vector<16x512xf32>
    %187 = tpu.matmul %186, %2, %cst_36 {dimension_numbers = #tpu.dot_dimension_numbers<[1], [0], [0], [1], [0, 0, 1, 1], [], []>} : vector<16x128xbf16>, vector<128x512xbf16>, vector<16x512xf32> -> vector<16x512xf32>
    %188 = vector.extract_strided_slice %12 {offsets = [4, 0, 0], sizes = [1, 16, 512], strides = [1, 1, 1]} : vector<8x16x512xf32> to vector<1x16x512xf32>
    %189 = vector.shape_cast %188 : vector<1x16x512xf32> to vector<16x512xf32>
    %cst_37 = arith.constant dense<0.000000e+00> : vector<16x512xf32>
    %190 = tpu.matmul %165, %0, %cst_37 {dimension_numbers = #tpu.dot_dimension_numbers<[1], [0], [0], [1], [0, 0, 1, 1], [], []>} : vector<16x128xbf16>, vector<128x512xbf16>, vector<16x512xf32> -> vector<16x512xf32>
    %191 = arith.addf %189, %190 : vector<16x512xf32>
    %192 = vector.extract_strided_slice %191 {offsets = [0, 0], sizes = [16, 384], strides = [1, 1]} : vector<16x512xf32> to vector<16x384xf32>
    %193 = arith.negf %192 : vector<16x384xf32>
    %194 = math.exp %193 : vector<16x384xf32>
    %cst_38 = arith.constant 1.000000e+00 : f32
    %195 = vector.broadcast %cst_38 : f32 to vector<16x384xf32>
    %196 = arith.addf %195, %194 : vector<16x384xf32>
    %197 = arith.divf %195, %196 : vector<16x384xf32>
    %198 = vector.extract_strided_slice %191 {offsets = [0, 384], sizes = [16, 128], strides = [1, 1]} : vector<16x512xf32> to vector<16x128xf32>
    %199 = math.tanh %198 : vector<16x128xf32>
    %200 = vector.extract_strided_slice %197 {offsets = [0, 0], sizes = [16, 128], strides = [1, 1]} : vector<16x384xf32> to vector<16x128xf32>
    %201 = vector.extract_strided_slice %197 {offsets = [0, 128], sizes = [16, 128], strides = [1, 1]} : vector<16x384xf32> to vector<16x128xf32>
    %202 = vector.extract_strided_slice %197 {offsets = [0, 256], sizes = [16, 128], strides = [1, 1]} : vector<16x384xf32> to vector<16x128xf32>
    %203 = arith.mulf %201, %162 : vector<16x128xf32>
    %204 = arith.mulf %200, %199 : vector<16x128xf32>
    %205 = arith.addf %203, %204 : vector<16x128xf32>
    %206 = math.tanh %205 : vector<16x128xf32>
    %207 = arith.mulf %202, %206 : vector<16x128xf32>
    %208 = arith.truncf %207 : vector<16x128xf32> to vector<16x128xbf16>
    %cst_39 = arith.constant dense<0.000000e+00> : vector<16x512xf32>
    %209 = tpu.matmul %208, %1, %cst_39 {dimension_numbers = #tpu.dot_dimension_numbers<[1], [0], [0], [1], [0, 0, 1, 1], [], []>} : vector<16x128xbf16>, vector<128x512xbf16>, vector<16x512xf32> -> vector<16x512xf32>
    %210 = arith.addf %187, %209 : vector<16x512xf32>
    %211 = vector.broadcast %4 : vector<1x512xf32> to vector<16x512xf32>
    %212 = arith.addf %210, %211 : vector<16x512xf32>
    %213 = vector.extract_strided_slice %212 {offsets = [0, 0], sizes = [16, 384], strides = [1, 1]} : vector<16x512xf32> to vector<16x384xf32>
    %214 = arith.negf %213 : vector<16x384xf32>
    %215 = math.exp %214 : vector<16x384xf32>
    %cst_40 = arith.constant 1.000000e+00 : f32
    %216 = vector.broadcast %cst_40 : f32 to vector<16x384xf32>
    %217 = arith.addf %216, %215 : vector<16x384xf32>
    %218 = arith.divf %216, %217 : vector<16x384xf32>
    %219 = vector.extract_strided_slice %212 {offsets = [0, 384], sizes = [16, 128], strides = [1, 1]} : vector<16x512xf32> to vector<16x128xf32>
    %220 = math.tanh %219 : vector<16x128xf32>
    %221 = vector.extract_strided_slice %218 {offsets = [0, 0], sizes = [16, 128], strides = [1, 1]} : vector<16x384xf32> to vector<16x128xf32>
    %222 = vector.extract_strided_slice %218 {offsets = [0, 128], sizes = [16, 128], strides = [1, 1]} : vector<16x384xf32> to vector<16x128xf32>
    %223 = vector.extract_strided_slice %218 {offsets = [0, 256], sizes = [16, 128], strides = [1, 1]} : vector<16x384xf32> to vector<16x128xf32>
    %224 = arith.mulf %222, %183 : vector<16x128xf32>
    %225 = arith.mulf %221, %220 : vector<16x128xf32>
    %226 = arith.addf %224, %225 : vector<16x128xf32>
    %227 = math.tanh %226 : vector<16x128xf32>
    %228 = arith.mulf %223, %227 : vector<16x128xf32>
    %229 = arith.truncf %228 : vector<16x128xf32> to vector<16x128xbf16>
    %cst_41 = arith.constant dense<0.000000e+00> : vector<16x512xf32>
    %230 = tpu.matmul %229, %2, %cst_41 {dimension_numbers = #tpu.dot_dimension_numbers<[1], [0], [0], [1], [0, 0, 1, 1], [], []>} : vector<16x128xbf16>, vector<128x512xbf16>, vector<16x512xf32> -> vector<16x512xf32>
    %231 = vector.extract_strided_slice %12 {offsets = [5, 0, 0], sizes = [1, 16, 512], strides = [1, 1, 1]} : vector<8x16x512xf32> to vector<1x16x512xf32>
    %232 = vector.shape_cast %231 : vector<1x16x512xf32> to vector<16x512xf32>
    %cst_42 = arith.constant dense<0.000000e+00> : vector<16x512xf32>
    %233 = tpu.matmul %208, %0, %cst_42 {dimension_numbers = #tpu.dot_dimension_numbers<[1], [0], [0], [1], [0, 0, 1, 1], [], []>} : vector<16x128xbf16>, vector<128x512xbf16>, vector<16x512xf32> -> vector<16x512xf32>
    %234 = arith.addf %232, %233 : vector<16x512xf32>
    %235 = vector.extract_strided_slice %234 {offsets = [0, 0], sizes = [16, 384], strides = [1, 1]} : vector<16x512xf32> to vector<16x384xf32>
    %236 = arith.negf %235 : vector<16x384xf32>
    %237 = math.exp %236 : vector<16x384xf32>
    %cst_43 = arith.constant 1.000000e+00 : f32
    %238 = vector.broadcast %cst_43 : f32 to vector<16x384xf32>
    %239 = arith.addf %238, %237 : vector<16x384xf32>
    %240 = arith.divf %238, %239 : vector<16x384xf32>
    %241 = vector.extract_strided_slice %234 {offsets = [0, 384], sizes = [16, 128], strides = [1, 1]} : vector<16x512xf32> to vector<16x128xf32>
    %242 = math.tanh %241 : vector<16x128xf32>
    %243 = vector.extract_strided_slice %240 {offsets = [0, 0], sizes = [16, 128], strides = [1, 1]} : vector<16x384xf32> to vector<16x128xf32>
    %244 = vector.extract_strided_slice %240 {offsets = [0, 128], sizes = [16, 128], strides = [1, 1]} : vector<16x384xf32> to vector<16x128xf32>
    %245 = vector.extract_strided_slice %240 {offsets = [0, 256], sizes = [16, 128], strides = [1, 1]} : vector<16x384xf32> to vector<16x128xf32>
    %246 = arith.mulf %244, %205 : vector<16x128xf32>
    %247 = arith.mulf %243, %242 : vector<16x128xf32>
    %248 = arith.addf %246, %247 : vector<16x128xf32>
    %249 = math.tanh %248 : vector<16x128xf32>
    %250 = arith.mulf %245, %249 : vector<16x128xf32>
    %251 = arith.truncf %250 : vector<16x128xf32> to vector<16x128xbf16>
    %cst_44 = arith.constant dense<0.000000e+00> : vector<16x512xf32>
    %252 = tpu.matmul %251, %1, %cst_44 {dimension_numbers = #tpu.dot_dimension_numbers<[1], [0], [0], [1], [0, 0, 1, 1], [], []>} : vector<16x128xbf16>, vector<128x512xbf16>, vector<16x512xf32> -> vector<16x512xf32>
    %253 = arith.addf %230, %252 : vector<16x512xf32>
    %254 = vector.broadcast %4 : vector<1x512xf32> to vector<16x512xf32>
    %255 = arith.addf %253, %254 : vector<16x512xf32>
    %256 = vector.extract_strided_slice %255 {offsets = [0, 0], sizes = [16, 384], strides = [1, 1]} : vector<16x512xf32> to vector<16x384xf32>
    %257 = arith.negf %256 : vector<16x384xf32>
    %258 = math.exp %257 : vector<16x384xf32>
    %cst_45 = arith.constant 1.000000e+00 : f32
    %259 = vector.broadcast %cst_45 : f32 to vector<16x384xf32>
    %260 = arith.addf %259, %258 : vector<16x384xf32>
    %261 = arith.divf %259, %260 : vector<16x384xf32>
    %262 = vector.extract_strided_slice %255 {offsets = [0, 384], sizes = [16, 128], strides = [1, 1]} : vector<16x512xf32> to vector<16x128xf32>
    %263 = math.tanh %262 : vector<16x128xf32>
    %264 = vector.extract_strided_slice %261 {offsets = [0, 0], sizes = [16, 128], strides = [1, 1]} : vector<16x384xf32> to vector<16x128xf32>
    %265 = vector.extract_strided_slice %261 {offsets = [0, 128], sizes = [16, 128], strides = [1, 1]} : vector<16x384xf32> to vector<16x128xf32>
    %266 = vector.extract_strided_slice %261 {offsets = [0, 256], sizes = [16, 128], strides = [1, 1]} : vector<16x384xf32> to vector<16x128xf32>
    %267 = arith.mulf %265, %226 : vector<16x128xf32>
    %268 = arith.mulf %264, %263 : vector<16x128xf32>
    %269 = arith.addf %267, %268 : vector<16x128xf32>
    %270 = math.tanh %269 : vector<16x128xf32>
    %271 = arith.mulf %266, %270 : vector<16x128xf32>
    %272 = arith.truncf %271 : vector<16x128xf32> to vector<16x128xbf16>
    %cst_46 = arith.constant dense<0.000000e+00> : vector<16x512xf32>
    %273 = tpu.matmul %272, %2, %cst_46 {dimension_numbers = #tpu.dot_dimension_numbers<[1], [0], [0], [1], [0, 0, 1, 1], [], []>} : vector<16x128xbf16>, vector<128x512xbf16>, vector<16x512xf32> -> vector<16x512xf32>
    %274 = vector.extract_strided_slice %12 {offsets = [6, 0, 0], sizes = [1, 16, 512], strides = [1, 1, 1]} : vector<8x16x512xf32> to vector<1x16x512xf32>
    %275 = vector.shape_cast %274 : vector<1x16x512xf32> to vector<16x512xf32>
    %cst_47 = arith.constant dense<0.000000e+00> : vector<16x512xf32>
    %276 = tpu.matmul %251, %0, %cst_47 {dimension_numbers = #tpu.dot_dimension_numbers<[1], [0], [0], [1], [0, 0, 1, 1], [], []>} : vector<16x128xbf16>, vector<128x512xbf16>, vector<16x512xf32> -> vector<16x512xf32>
    %277 = arith.addf %275, %276 : vector<16x512xf32>
    %278 = vector.extract_strided_slice %277 {offsets = [0, 0], sizes = [16, 384], strides = [1, 1]} : vector<16x512xf32> to vector<16x384xf32>
    %279 = arith.negf %278 : vector<16x384xf32>
    %280 = math.exp %279 : vector<16x384xf32>
    %cst_48 = arith.constant 1.000000e+00 : f32
    %281 = vector.broadcast %cst_48 : f32 to vector<16x384xf32>
    %282 = arith.addf %281, %280 : vector<16x384xf32>
    %283 = arith.divf %281, %282 : vector<16x384xf32>
    %284 = vector.extract_strided_slice %277 {offsets = [0, 384], sizes = [16, 128], strides = [1, 1]} : vector<16x512xf32> to vector<16x128xf32>
    %285 = math.tanh %284 : vector<16x128xf32>
    %286 = vector.extract_strided_slice %283 {offsets = [0, 0], sizes = [16, 128], strides = [1, 1]} : vector<16x384xf32> to vector<16x128xf32>
    %287 = vector.extract_strided_slice %283 {offsets = [0, 128], sizes = [16, 128], strides = [1, 1]} : vector<16x384xf32> to vector<16x128xf32>
    %288 = vector.extract_strided_slice %283 {offsets = [0, 256], sizes = [16, 128], strides = [1, 1]} : vector<16x384xf32> to vector<16x128xf32>
    %289 = arith.mulf %287, %248 : vector<16x128xf32>
    %290 = arith.mulf %286, %285 : vector<16x128xf32>
    %291 = arith.addf %289, %290 : vector<16x128xf32>
    %292 = math.tanh %291 : vector<16x128xf32>
    %293 = arith.mulf %288, %292 : vector<16x128xf32>
    %294 = arith.truncf %293 : vector<16x128xf32> to vector<16x128xbf16>
    %cst_49 = arith.constant dense<0.000000e+00> : vector<16x512xf32>
    %295 = tpu.matmul %294, %1, %cst_49 {dimension_numbers = #tpu.dot_dimension_numbers<[1], [0], [0], [1], [0, 0, 1, 1], [], []>} : vector<16x128xbf16>, vector<128x512xbf16>, vector<16x512xf32> -> vector<16x512xf32>
    %296 = arith.addf %273, %295 : vector<16x512xf32>
    %297 = vector.broadcast %4 : vector<1x512xf32> to vector<16x512xf32>
    %298 = arith.addf %296, %297 : vector<16x512xf32>
    %299 = vector.extract_strided_slice %298 {offsets = [0, 0], sizes = [16, 384], strides = [1, 1]} : vector<16x512xf32> to vector<16x384xf32>
    %300 = arith.negf %299 : vector<16x384xf32>
    %301 = math.exp %300 : vector<16x384xf32>
    %cst_50 = arith.constant 1.000000e+00 : f32
    %302 = vector.broadcast %cst_50 : f32 to vector<16x384xf32>
    %303 = arith.addf %302, %301 : vector<16x384xf32>
    %304 = arith.divf %302, %303 : vector<16x384xf32>
    %305 = vector.extract_strided_slice %298 {offsets = [0, 384], sizes = [16, 128], strides = [1, 1]} : vector<16x512xf32> to vector<16x128xf32>
    %306 = math.tanh %305 : vector<16x128xf32>
    %307 = vector.extract_strided_slice %304 {offsets = [0, 0], sizes = [16, 128], strides = [1, 1]} : vector<16x384xf32> to vector<16x128xf32>
    %308 = vector.extract_strided_slice %304 {offsets = [0, 128], sizes = [16, 128], strides = [1, 1]} : vector<16x384xf32> to vector<16x128xf32>
    %309 = vector.extract_strided_slice %304 {offsets = [0, 256], sizes = [16, 128], strides = [1, 1]} : vector<16x384xf32> to vector<16x128xf32>
    %310 = arith.mulf %308, %269 : vector<16x128xf32>
    %311 = arith.mulf %307, %306 : vector<16x128xf32>
    %312 = arith.addf %310, %311 : vector<16x128xf32>
    %313 = math.tanh %312 : vector<16x128xf32>
    %314 = arith.mulf %309, %313 : vector<16x128xf32>
    %315 = arith.truncf %314 : vector<16x128xf32> to vector<16x128xbf16>
    %cst_51 = arith.constant dense<0.000000e+00> : vector<16x512xf32>
    %316 = tpu.matmul %315, %2, %cst_51 {dimension_numbers = #tpu.dot_dimension_numbers<[1], [0], [0], [1], [0, 0, 1, 1], [], []>} : vector<16x128xbf16>, vector<128x512xbf16>, vector<16x512xf32> -> vector<16x512xf32>
    %317 = vector.extract_strided_slice %12 {offsets = [7, 0, 0], sizes = [1, 16, 512], strides = [1, 1, 1]} : vector<8x16x512xf32> to vector<1x16x512xf32>
    %318 = vector.shape_cast %317 : vector<1x16x512xf32> to vector<16x512xf32>
    %cst_52 = arith.constant dense<0.000000e+00> : vector<16x512xf32>
    %319 = tpu.matmul %294, %0, %cst_52 {dimension_numbers = #tpu.dot_dimension_numbers<[1], [0], [0], [1], [0, 0, 1, 1], [], []>} : vector<16x128xbf16>, vector<128x512xbf16>, vector<16x512xf32> -> vector<16x512xf32>
    %320 = arith.addf %318, %319 : vector<16x512xf32>
    %321 = vector.extract_strided_slice %320 {offsets = [0, 0], sizes = [16, 384], strides = [1, 1]} : vector<16x512xf32> to vector<16x384xf32>
    %322 = arith.negf %321 : vector<16x384xf32>
    %323 = math.exp %322 : vector<16x384xf32>
    %cst_53 = arith.constant 1.000000e+00 : f32
    %324 = vector.broadcast %cst_53 : f32 to vector<16x384xf32>
    %325 = arith.addf %324, %323 : vector<16x384xf32>
    %326 = arith.divf %324, %325 : vector<16x384xf32>
    %327 = vector.extract_strided_slice %320 {offsets = [0, 384], sizes = [16, 128], strides = [1, 1]} : vector<16x512xf32> to vector<16x128xf32>
    %328 = math.tanh %327 : vector<16x128xf32>
    %329 = vector.extract_strided_slice %326 {offsets = [0, 0], sizes = [16, 128], strides = [1, 1]} : vector<16x384xf32> to vector<16x128xf32>
    %330 = vector.extract_strided_slice %326 {offsets = [0, 128], sizes = [16, 128], strides = [1, 1]} : vector<16x384xf32> to vector<16x128xf32>
    %331 = vector.extract_strided_slice %326 {offsets = [0, 256], sizes = [16, 128], strides = [1, 1]} : vector<16x384xf32> to vector<16x128xf32>
    %332 = arith.mulf %330, %291 : vector<16x128xf32>
    %333 = arith.mulf %329, %328 : vector<16x128xf32>
    %334 = arith.addf %332, %333 : vector<16x128xf32>
    %335 = math.tanh %334 : vector<16x128xf32>
    %336 = arith.mulf %331, %335 : vector<16x128xf32>
    %337 = arith.truncf %336 : vector<16x128xf32> to vector<16x128xbf16>
    %cst_54 = arith.constant dense<0.000000e+00> : vector<16x512xf32>
    %338 = tpu.matmul %337, %1, %cst_54 {dimension_numbers = #tpu.dot_dimension_numbers<[1], [0], [0], [1], [0, 0, 1, 1], [], []>} : vector<16x128xbf16>, vector<128x512xbf16>, vector<16x512xf32> -> vector<16x512xf32>
    %339 = arith.addf %316, %338 : vector<16x512xf32>
    %340 = vector.broadcast %4 : vector<1x512xf32> to vector<16x512xf32>
    %341 = arith.addf %339, %340 : vector<16x512xf32>
    %342 = vector.extract_strided_slice %341 {offsets = [0, 0], sizes = [16, 384], strides = [1, 1]} : vector<16x512xf32> to vector<16x384xf32>
    %343 = arith.negf %342 : vector<16x384xf32>
    %344 = math.exp %343 : vector<16x384xf32>
    %cst_55 = arith.constant 1.000000e+00 : f32
    %345 = vector.broadcast %cst_55 : f32 to vector<16x384xf32>
    %346 = arith.addf %345, %344 : vector<16x384xf32>
    %347 = arith.divf %345, %346 : vector<16x384xf32>
    %348 = vector.extract_strided_slice %341 {offsets = [0, 384], sizes = [16, 128], strides = [1, 1]} : vector<16x512xf32> to vector<16x128xf32>
    %349 = math.tanh %348 : vector<16x128xf32>
    %350 = vector.extract_strided_slice %347 {offsets = [0, 0], sizes = [16, 128], strides = [1, 1]} : vector<16x384xf32> to vector<16x128xf32>
    %351 = vector.extract_strided_slice %347 {offsets = [0, 128], sizes = [16, 128], strides = [1, 1]} : vector<16x384xf32> to vector<16x128xf32>
    %352 = vector.extract_strided_slice %347 {offsets = [0, 256], sizes = [16, 128], strides = [1, 1]} : vector<16x384xf32> to vector<16x128xf32>
    %353 = arith.mulf %351, %312 : vector<16x128xf32>
    %354 = arith.mulf %350, %349 : vector<16x128xf32>
    %355 = arith.addf %353, %354 : vector<16x128xf32>
    %356 = math.tanh %355 : vector<16x128xf32>
    %357 = arith.mulf %352, %356 : vector<16x128xf32>
    %358 = arith.truncf %357 : vector<16x128xf32> to vector<16x128xbf16>
    %c0_56 = arith.constant 0 : index
    %c0_57 = arith.constant 0 : index
    %359 = vector.load %arg8[%c0_56, %c0_57] : memref<128x128xbf16, #tpu.memory_space<vmem>>, vector<128x128xbf16>
    %cst_58 = arith.constant dense<0.000000e+00> : vector<16x128xf32>
    %360 = tpu.matmul %358, %359, %cst_58 {dimension_numbers = #tpu.dot_dimension_numbers<[1], [0], [0], [1], [0, 0, 1, 1], [], []>} : vector<16x128xbf16>, vector<128x128xbf16>, vector<16x128xf32> -> vector<16x128xf32>
    %c0_59 = arith.constant 0 : index
    %c0_60 = arith.constant 0 : index
    %361 = vector.load %arg9[%c0_59, %c0_60] : memref<1x128xf32, #tpu.memory_space<vmem>>, vector<1x128xf32>
    %362 = vector.broadcast %361 : vector<1x128xf32> to vector<16x128xf32>
    %363 = arith.addf %360, %362 : vector<16x128xf32>
    %c0_61 = arith.constant 0 : index
    %c0_62 = arith.constant 0 : index
    %364 = vector.load %arg10[%c0_61, %c0_62] : memref<16x128xf32, #tpu.memory_space<vmem>>, vector<16x128xf32>
    tpu.vector_store %arg10[%c0_61, %c0_62], %363 {strides = array<i32>} : memref<16x128xf32, #tpu.memory_space<vmem>>, vector<16x128xf32>,
    return
  }
  func.func @transform_0(%arg0: i32) -> (i32, i32, i32) {
    %c0_i32 = arith.constant 0 : i32
    %c0_i32_0 = arith.constant 0 : i32
    %c0_i32_1 = arith.constant 0 : i32
    return %c0_i32, %arg0, %c0_i32_0 : i32, i32, i32
  }
  func.func @transform_1(%arg0: i32) -> (i32, i32) {
    %c0_i32 = arith.constant 0 : i32
    %c0_i32_0 = arith.constant 0 : i32
    %c0_i32_1 = arith.constant 0 : i32
    return %c0_i32, %c0_i32_0 : i32, i32
  }
  func.func @transform_2(%arg0: i32) -> (i32, i32) {
    %c0_i32 = arith.constant 0 : i32
    %c0_i32_0 = arith.constant 0 : i32
    %c0_i32_1 = arith.constant 0 : i32
    return %c0_i32, %c0_i32_0 : i32, i32
  }
  func.func @transform_3(%arg0: i32) -> (i32, i32) {
    %c0_i32 = arith.constant 0 : i32
    %c0_i32_0 = arith.constant 0 : i32
    %c0_i32_1 = arith.constant 0 : i32
    return %c0_i32, %c0_i32_0 : i32, i32
  }
  func.func @transform_4(%arg0: i32) -> (i32, i32) {
    %c0_i32 = arith.constant 0 : i32
    %c0_i32_0 = arith.constant 0 : i32
    %c0_i32_1 = arith.constant 0 : i32
    return %c0_i32, %c0_i32_0 : i32, i32
  }
  func.func @transform_5(%arg0: i32) -> (i32, i32) {
    %c0_i32 = arith.constant 0 : i32
    %c0_i32_0 = arith.constant 0 : i32
    %c0_i32_1 = arith.constant 0 : i32
    return %c0_i32, %c0_i32_0 : i32, i32
  }
  func.func @transform_6(%arg0: i32) -> (i32, i32) {
    %c0_i32 = arith.constant 0 : i32
    %c0_i32_0 = arith.constant 0 : i32
    %c0_i32_1 = arith.constant 0 : i32
    return %c0_i32, %c0_i32_0 : i32, i32
  }
  func.func @transform_7(%arg0: i32) -> (i32, i32) {
    %c0_i32 = arith.constant 0 : i32
    %c0_i32_0 = arith.constant 0 : i32
    %c0_i32_1 = arith.constant 0 : i32
    return %c0_i32, %c0_i32_0 : i32, i32
  }
  func.func @transform_8(%arg0: i32) -> (i32, i32) {
    %c0_i32 = arith.constant 0 : i32
    %c0_i32_0 = arith.constant 0 : i32
    %c0_i32_1 = arith.constant 0 : i32
    return %c0_i32, %c0_i32_0 : i32, i32
  }
  func.func @transform_9(%arg0: i32) -> (i32, i32) {
    %c0_i32 = arith.constant 0 : i32
    %c0_i32_0 = arith.constant 0 : i32
    return %arg0, %c0_i32 : i32, i32
  }
}

</mosaic_0001>

<bundles_post_ra>
// kernel: _lstm_forward_jit.1
= control target key start
LH: loop header
LB: loop body
LE: loop exit
PB: predicated region body
PF: predicated region fallthrough
CT: control target
= control target key end

     0   :  { %v8189_v1 = vmov 0   ;;  %vm200_vm0 = vcmask 130048   ;;  %vm5357_vm1 = vmmov 0   ;;  %s8179_s1 = inlined_call_operand.vmem [shape: bf16[16,512], index: 1, kind: input, shape index: {}]   ;;  %s8180_s0 = inlined_call_operand.vmem [shape: f32[8,16,16], index: 0, kind: input, shape index: {}]   ;;  %s8181_s2 = inlined_call_operand.vmem [shape: bf16[128,512], index: 2, kind: input, shape index: {}]   ;;  %s8182_s4 = inlined_call_operand.vmem [shape: bf16[128,512], index: 4, kind: input, shape index: {}]   ;;  %s8183_s5 = inlined_call_operand.vmem [shape: bf16[128,512], index: 5, kind: input, shape index: {}]   ;;  %s8184_s3 = inlined_call_operand.vmem [shape: f32[1,512], index: 3, kind: input, shape index: {}]   ;;  %s8185_s6 = inlined_call_operand.vmem [shape: f32[1,512], index: 6, kind: input, shape index: {}]   ;;  %s8186_s7 = inlined_call_operand.vmem [shape: bf16[128,128], index: 7, kind: input, shape index: {}]   ;;  %s8187_s8 = inlined_call_operand.vmem [shape: f32[1,128], index: 8, kind: input, shape index: {}]   ;;  %s8188_s9 = inlined_call_operand.vmem [shape: f32[16,128], index: 9, kind: output, shape index: {}]  }
   0x1   :  { %v4493_v0 = vld [vmem:[%s8179_s1 + $0x4] ss:$16 sps:$4 sm:$0xff]   ;;  %257 = vmatprep.mubr.bf16.mxu0 %v8189_v1  ;;  %317 = vmatprep.mubr.bf16.mxu1 %v8189_v1  ;;  %v4495_v2 = vld [vmem:[%s8179_s1] ss:$16 sps:$4 sm:$0xff]   ;;  %v132_v4 = vld [vmem:[%s8180_s0 + $0x8] sm:$0xff] }
   0x2   :  { %v131_v3 = vld [vmem:[%s8180_s0] sm:$0xff]  ;;  %225 = vmatprep.subr.bf16.mxu0 %v4493_v0  ;;  %4296 = vmatprep.subr.bf16.mxu1 %v4493_v0  ;;  %v144_v7 = vld [vmem:[%s8180_s0 + $0x68] sm:$0xff]  ;;  %v133_v11 = vld [vmem:[%s8180_s0 + $0x10] sm:$0xff] }
   0x3   :  { %v147_v5 = vpack.c.bf16 %v132_v4, %v131_v3  ;;  %v143_v6 = vld [vmem:[%s8180_s0 + $0x60] sm:$0xff]  ;;  %226 = vmatpush1.bf16.msra.mxu0 %v4495_v2  ;;  %4297 = vmatpush1.bf16.msra.mxu1 %v4495_v2  ;;  %v4496_v9 = vld [vmem:[%s8179_s1 + $0x8] ss:$16 sps:$4 sm:$0xff]   ;;  %v4498_v10 = vld [vmem:[%s8179_s1 + $0xc] ss:$16 sps:$4 sm:$0xff]  }
   0x4   :  { %v5428_v8 = vpack.c.bf16 %v144_v7, %v143_v6  ;;  %338 = vmatprep.subr.bf16.mxu1 %v4498_v10  ;;  %v134_v12 = vld [vmem:[%s8180_s0 + $0x18] sm:$0xff]  ;;  %v145_v13 = vld [vmem:[%s8180_s0 + $0x70] sm:$0xff]  ;;  %v135_v23 = vld [vmem:[%s8180_s0 + $0x20] sm:$0xff] }
   0x5   :  { %v146_v14 = vld [vmem:[%s8180_s0 + $0x78] sm:$0xff]  ;;  %v5454_v15 = vld [vmem:[%s8181_s2 + $0x4] ss:$16 sps:$4 sm:$0xff]   ;;  %v5467_v17 = vld [vmem:[%s8181_s2] ss:$16 sps:$4 sm:$0xff]   ;;  %v148_v19 = vpack.c.bf16 %v134_v12, %v133_v11 }
   0x6   :  { %4050 = vmatmul.mubr.msk.bf16.vlgmr.msra.gmra.mrb[0].mxu0 %vm200_vm0, %v147_v5  ;;  %4056 = vmatmul.mubr.msk.bf16.vlgmr.msra.gmra.mrb[0].mxu1 %vm200_vm0, %v5428_v8  ;;  %v5460_v16 = vld [vmem:[%s8181_s2 + $0xc] ss:$16 sps:$4 sm:$0xff]   ;;  %v5473_v18 = vld [vmem:[%s8181_s2 + $0x24] ss:$16 sps:$4 sm:$0xff]   ;;  %v5475_v20 = vpack.c.bf16 %v146_v14, %v145_v13  ;;  %v5482_v21 = vld [vmem:[%s8181_s2 + $0x20] ss:$16 sps:$4 sm:$0xff]  }
   0x7   :  { %339 = vmatpush1.bf16.msra.mxu1 %v4496_v9  ;;  %267 = vmatprep.mubr.bf16.mxu0 %v8189_v1  ;;  %v5487_v22 = vld [vmem:[%s8181_s2 + $0x44] ss:$16 sps:$4 sm:$0xff]   ;;  %v136_v24 = vld [vmem:[%s8180_s0 + $0x28] sm:$0xff]  ;;  %v5504_v25 = vld [vmem:[%s8181_s2 + $0x40] ss:$16 sps:$4 sm:$0xff]  }
   0x8   :  { %327 = vmatprep.mubr.bf16.mxu1 %v8189_v1  ;;  %611 = vmatprep.subr.bf16.mxu0 %v5454_v15  ;;  %v5510_v26 = vld [vmem:[%s8181_s2 + $0x64] ss:$16 sps:$4 sm:$0xff]   ;;  %v149_v27 = vpack.c.bf16 %v136_v24, %v135_v23  ;;  %v5515_v28 = vld [vmem:[%s8181_s2 + $0x8] ss:$16 sps:$4 sm:$0xff]   ;;  %v5520_v29 = vld [vmem:[%s8181_s2 + $0x2c] ss:$16 sps:$4 sm:$0xff]  }
   0x9   :  { %654 = vmatprep.subr.bf16.mxu1 %v5460_v16  ;;  %612 = vmatpush1.bf16.msra.mxu0 %v5467_v17  ;;  %v5527_v30 = vld [vmem:[%s8181_s2 + $0x60] ss:$16 sps:$4 sm:$0xff]   ;;  %v5537_v32 = vld [vmem:[%s8181_s2 + $0x84] ss:$16 sps:$4 sm:$0xff]   ;;  %v138_v33 = vld [vmem:[%s8180_s0 + $0x38] sm:$0xff] }
   0xa   :  { %613 = vmatprep.subr.bf16.mxu0 %v5473_v18  ;;  %v137_v31 = vld [vmem:[%s8180_s0 + $0x30] sm:$0xff]  ;;  %v5547_v34 = vld [vmem:[%s8181_s2 + $0x28] ss:$16 sps:$4 sm:$0xff]   ;;  %v5554_v35 = vld [vmem:[%s8181_s2 + $0x4c] ss:$16 sps:$4 sm:$0xff]  }
   0xb   :  { %v5560_v36 = vld [vmem:[%s8181_s2 + $0x80] ss:$16 sps:$4 sm:$0xff]   ;;  %v150_v37 = vpack.c.bf16 %v138_v33, %v137_v31  ;;  %v5567_v38 = vld [vmem:[%s8181_s2 + $0x48] ss:$16 sps:$4 sm:$0xff]   ;;  %v5573_v39 = vld [vmem:[%s8181_s2 + $0xa4] ss:$16 sps:$4 sm:$0xff]  }
   0xc   :  { %v5579_v40 = vld [vmem:[%s8181_s2 + $0xa0] ss:$16 sps:$4 sm:$0xff]   ;;  %v5584_v41 = vld [vmem:[%s8181_s2 + $0x6c] ss:$16 sps:$4 sm:$0xff]   ;;  %v5591_v42 = vld [vmem:[%s8181_s2 + $0xc4] ss:$16 sps:$4 sm:$0xff]  }
   0xd   :  { %614 = vmatpush1.bf16.msra.mxu0 %v5482_v21  ;;  %v139_v43 = vld [vmem:[%s8180_s0 + $0x40] sm:$0xff]  ;;  %v140_v44 = vld [vmem:[%s8180_s0 + $0x48] sm:$0xff]  ;;  %v141_v53 = vld [vmem:[%s8180_s0 + $0x50] sm:$0xff] }
   0xe   :  { %4051 = vmatmul.mubr.msk.bf16.gmra.mrb[4].mxu0 %vm200_vm0, %v148_v19  ;;  %4057 = vmatmul.mubr.msk.bf16.gmra.mrb[4].mxu1 %vm200_vm0, %v5475_v20  ;;  %v5606_v45 = vld [vmem:[%s8181_s2 + $0x68] ss:$16 sps:$4 sm:$0xff]   ;;  %v5613_v46 = vld [vmem:[%s8181_s2 + $0xc0] ss:$16 sps:$4 sm:$0xff]   ;;  %v5618_v47 = vld [vmem:[%s8181_s2 + $0x8c] ss:$16 sps:$4 sm:$0xff]   ;;  %v151_v48 = vpack.c.bf16 %v140_v44, %v139_v43 }
   0xf   :  { %277 = vmatprep.mubr.bf16.mxu0 %v8189_v1  ;;  %370 = vmatprep.mubr.bf16.mxu1 %v8189_v1  ;;  %v5625_v49 = vld [vmem:[%s8181_s2 + $0xe4] ss:$16 sps:$4 sm:$0xff]   ;;  %v5630_v50 = vld [vmem:[%s8181_s2 + $0x88] ss:$16 sps:$4 sm:$0xff]   ;;  %v5636_v51 = vld [vmem:[%s8181_s2 + $0xe0] ss:$16 sps:$4 sm:$0xff]  }
  0x10   :  { %615 = vmatprep.subr.bf16.mxu0 %v5487_v22  ;;  %v5642_v52 = vld [vmem:[%s8181_s2 + $0xac] ss:$16 sps:$4 sm:$0xff]   ;;  %v5659_v55 = vld [vmem:[%s8181_s2 + $0xa8] ss:$16 sps:$4 sm:$0xff]   ;;  %v5709_v61 = vld [vmem:[%s8182_s4 + $0x4] ss:$16 sps:$4 sm:$0xff]  }
  0x11   :  { %616 = vmatpush1.bf16.msra.mxu0 %v5504_v25  ;;  %v142_v54 = vld [vmem:[%s8180_s0 + $0x58] sm:$0xff]  ;;  %v5720_v63 = vld [vmem:[%s8182_s4] ss:$16 sps:$4 sm:$0xff]   ;;  %v5733_v2 = vld [vmem:[%s8182_s4 + $0x24] ss:$16 sps:$4 sm:$0xff]  }
  0x12   :  { %617 = vmatprep.subr.bf16.mxu0 %v5510_v26  ;;  %v5666_v56 = vld [vmem:[%s8181_s2 + $0xcc] ss:$16 sps:$4 sm:$0xff]   ;;  %v152_v57 = vpack.c.bf16 %v142_v54, %v141_v53  ;;  %v5672_v58 = vld [vmem:[%s8181_s2 + $0xc8] ss:$16 sps:$4 sm:$0xff]   ;;  %v5743_v4 = vld [vmem:[%s8182_s4 + $0x20] ss:$16 sps:$4 sm:$0xff]  }
  0x13   :  { %v5678_v59 = vld [vmem:[%s8181_s2 + $0xec] ss:$16 sps:$4 sm:$0xff]   ;;  %v5688_v60 = vld [vmem:[%s8181_s2 + $0xe8] ss:$16 sps:$4 sm:$0xff]   ;;  %v5757_v6 = vld [vmem:[%s8182_s4 + $0x44] ss:$16 sps:$4 sm:$0xff]  }
  0x14   :  { %v5714_v62 = vld [vmem:[%s8182_s4 + $0xc] ss:$16 sps:$4 sm:$0xff]   ;;  %v5725_v0 = vld [vmem:[%s8182_s4 + $0x8] ss:$16 sps:$4 sm:$0xff]   ;;  %v5781_v10 = vld [vmem:[%s8182_s4 + $0x64] ss:$16 sps:$4 sm:$0xff]  }
  0x15   :  { %618 = vmatpush1.bf16.msra.mxu0 %v5527_v30  ;;  %v5738_v3 = vld [vmem:[%s8182_s4 + $0x2c] ss:$16 sps:$4 sm:$0xff]   ;;  %v5772_v9 = vld [vmem:[%s8182_s4 + $0x48] ss:$16 sps:$4 sm:$0xff]   ;;  %8461 = vst [vmem:[#allocation3_spill] sm:$0xff] %v5781_v10 }
  0x16   :  { %4052 = vmatmul.mubr.msk.bf16.gmra.mrb[8].mxu0 %vm200_vm0, %v149_v27  ;;  %4058 = vmatmul.mubr.msk.bf16.vlgmr.msra.gmra.mrb[8].mxu1 %vm200_vm0, %v147_v5  ;;  %v5748_v5 = vld [vmem:[%s8182_s4 + $0x28] ss:$16 sps:$4 sm:$0xff]   ;;  %v5762_v7 = vld [vmem:[%s8182_s4 + $0x4c] ss:$16 sps:$4 sm:$0xff]   ;;  %8460 = vst [vmem:[#allocation2_spill] sm:$0xff] %v5772_v9 }
  0x17   :  { %655 = vmatpush1.bf16.msra.mxu1 %v5515_v28  ;;  %287 = vmatprep.mubr.bf16.mxu0 %v8189_v1  ;;  %v5786_v11 = vld [vmem:[%s8182_s4 + $0x6c] ss:$16 sps:$4 sm:$0xff]   ;;  %v5791_v12 = vld [vmem:[%s8182_s4 + $0x60] ss:$16 sps:$4 sm:$0xff]   ;;  %v5796_v13 = vld [vmem:[%s8182_s4 + $0x68] ss:$16 sps:$4 sm:$0xff]  }
  0x18   :  { %380 = vmatprep.mubr.bf16.mxu1 %v8189_v1  ;;  %656 = vmatprep.subr.bf16.mxu1 %v5520_v29  ;;  %8462 = vst [vmem:[#allocation4_spill] sm:$0xff] %v5786_v11  ;;  %8463 = vst [vmem:[#allocation5_spill] sm:$0xff] %v5791_v12  ;;  %v5805_v14 = vld [vmem:[%s8182_s4 + $0x84] ss:$16 sps:$4 sm:$0xff]   ;;  %v5820_v23 = vld [vmem:[%s8182_s4 + $0x88] ss:$16 sps:$4 sm:$0xff]  }
  0x19   :  { %619 = vmatprep.subr.bf16.mxu0 %v5537_v32  ;;  %8464 = vst [vmem:[#allocation6_spill] sm:$0xff] %v5796_v13  ;;  %8465 = vst [vmem:[#allocation7_spill] sm:$0xff] %v5805_v14  ;;  %v5829_v24 = vld [vmem:[%s8182_s4 + $0xa4] ss:$16 sps:$4 sm:$0xff]   ;;  %v5839_v31 = vld [vmem:[%s8182_s4 + $0xa0] ss:$16 sps:$4 sm:$0xff]  }
  0x1a   :  { %620 = vmatpush1.bf16.msra.mxu0 %v5560_v36  ;;  %8468 = vst [vmem:[#allocation10_spill] sm:$0xff] %v5820_v23  ;;  %8469 = vst [vmem:[#allocation11_spill] sm:$0xff] %v5829_v24  ;;  %v5844_v33 = vld [vmem:[%s8182_s4 + $0xa8] ss:$16 sps:$4 sm:$0xff]   ;;  %v5854_v43 = vld [vmem:[%s8182_s4 + $0xcc] ss:$16 sps:$4 sm:$0xff]  }
  0x1b   :  { %657 = vmatpush1.bf16.msra.mxu1 %v5547_v34  ;;  %621 = vmatprep.subr.bf16.mxu0 %v5573_v39  ;;  %8471 = vst [vmem:[#allocation13_spill] sm:$0xff] %v5839_v31  ;;  %8472 = vst [vmem:[#allocation14_spill] sm:$0xff] %v5844_v33  ;;  %v5861_v44 = vld [vmem:[%s8182_s4 + $0xc0] ss:$16 sps:$4 sm:$0xff]   ;;  %v5873_v53 = vld [vmem:[%s8182_s4 + $0xe4] ss:$16 sps:$4 sm:$0xff]  }
  0x1c   :  { %658 = vmatprep.subr.bf16.mxu1 %v5554_v35  ;;  %8474 = vst [vmem:[#allocation16_spill] sm:$0xff] %v5854_v43  ;;  %8475 = vst [vmem:[#allocation17_spill] sm:$0xff] %v5861_v44  ;;  %v5880_v54 = vld [vmem:[%s8182_s4 + $0xec] ss:$16 sps:$4 sm:$0xff]  }
  0x1d   :  { %8477 = vst [vmem:[#allocation19_spill] sm:$0xff] %v5873_v53  ;;  %8478 = vst [vmem:[#allocation20_spill] sm:$0xff] %v5880_v54 }
  0x1e   :  { %4053 = vmatmul.mubr.msk.bf16.gmra.mrb[12].mxu0 %vm200_vm0, %v150_v37  ;;  %4059 = vmatmul.mubr.msk.bf16.gmra.mrb[12].mxu1 %vm200_vm0, %v148_v19  ;;  %v5810_v19 = vld [vmem:[%s8182_s4 + $0x8c] ss:$16 sps:$4 sm:$0xff]  }
  0x1f   :  { %297 = vmatprep.mubr.bf16.mxu0 %v8189_v1  ;;  %390 = vmatprep.mubr.bf16.mxu1 %v8189_v1  ;;  %8466 = vst [vmem:[#allocation8_spill] sm:$0xff] %v5810_v19 }
  0x20   :  { %659 = vmatpush1.bf16.msra.mxu1 %v5567_v38  ;;  %622 = vmatpush1.bf16.msra.mxu0 %v5579_v40 }
  0x21   :  { %660 = vmatprep.subr.bf16.mxu1 %v5584_v41  ;;  %623 = vmatprep.subr.bf16.mxu0 %v5591_v42 }
  0x24   :  { %661 = vmatpush1.bf16.msra.mxu1 %v5606_v45  ;;  %624 = vmatpush1.bf16.msra.mxu0 %v5613_v46 }
  0x25   :  { %662 = vmatprep.subr.bf16.mxu1 %v5618_v47  ;;  %625 = vmatprep.subr.bf16.mxu0 %v5625_v49 }
  0x26   :  { %4054 = vmatmul.mubr.msk.bf16.gmra.mrb[16].mxu0 %vm200_vm0, %v151_v48  ;;  %4060 = vmatmul.mubr.msk.bf16.gmra.mrb[16].mxu1 %vm200_vm0, %v149_v27  ;;  %v5834_v27 = vld [vmem:[%s8182_s4 + $0xac] ss:$16 sps:$4 sm:$0xff]  }
  0x27   :  { %307 = vmatprep.mubr.bf16.mxu0 %v8189_v1  ;;  %400 = vmatprep.mubr.bf16.mxu1 %v8189_v1  ;;  %8470 = vst [vmem:[#allocation12_spill] sm:$0xff] %v5834_v27 }
  0x28   :  { %663 = vmatpush1.bf16.msra.mxu1 %v5630_v50  ;;  %626 = vmatpush1.bf16.msra.mxu0 %v5636_v51 }
  0x29   :  { %664 = vmatprep.subr.bf16.mxu1 %v5642_v52  ;;  %914 = vmatprep.subr.bf16.mxu0 %v5709_v61 }
  0x2c   :  { %665 = vmatpush1.bf16.msra.mxu1 %v5659_v55 }
  0x2d   :  { %666 = vmatprep.subr.bf16.mxu1 %v5666_v56 }
  0x2e   :  { %4055 = vmatmul.mubr.msk.bf16.gmra.mrb[20].mxu0 %vm200_vm0, %v152_v57  ;;  %4061 = vmatmul.mubr.msk.bf16.gmra.mrb[20].mxu1 %vm200_vm0, %v150_v37  ;;  %v5849_v37 = vld [vmem:[%s8182_s4 + $0xc4] ss:$16 sps:$4 sm:$0xff]  }
  0x2f   :  { %410 = vmatprep.mubr.bf16.mxu1 %v8189_v1  ;;  %643 = vmatprep.mubr.bf16.mxu0 %v8189_v1  ;;  %8473 = vst [vmem:[#allocation15_spill] sm:$0xff] %v5849_v37 }
  0x30   :  { %667 = vmatpush1.bf16.msra.mxu1 %v5672_v58 }
  0x31   :  { %668 = vmatprep.subr.bf16.mxu1 %v5678_v59 }
  0x34   :  { %669 = vmatpush1.bf16.msra.mxu1 %v5688_v60 }
  0x35   :  { %957 = vmatprep.subr.bf16.mxu1 %v5714_v62 }
  0x36   :  { %4062 = vmatmul.mubr.msk.bf16.gmra.mrb[24].mxu1 %vm200_vm0, %v151_v48  ;;  %644 = vmatmul.mubr.bf16.vlgmr.msra.gmra.mrb[0].mxu0 %v8189_v1  ;;  %v5866_v48 = vld [vmem:[%s8182_s4 + $0xc8] ss:$16 sps:$4 sm:$0xff]  }
  0x37   :  { %420 = vmatprep.mubr.bf16.mxu1 %v8189_v1  ;;  %946 = vmatprep.mubr.bf16.mxu0 %v8189_v1  ;;  %8476 = vst [vmem:[#allocation18_spill] sm:$0xff] %v5866_v48 }
  0x38   :  { %915 = vmatpush1.bf16.msra.mxu0 %v5720_v63 }
  0x39   :  { %916 = vmatprep.subr.bf16.mxu0 %v5733_v2 }
  0x3c   :  { %917 = vmatpush1.bf16.msra.mxu0 %v5743_v4 }
  0x3d   :  { %918 = vmatprep.subr.bf16.mxu0 %v5757_v6 }
  0x3e   :  { %4063 = vmatmul.mubr.msk.bf16.gmra.mrb[28].mxu1 %vm200_vm0, %v152_v57  ;;  %v5885_v57 = vld [vmem:[%s8182_s4 + $0xe0] ss:$16 sps:$4 sm:$0xff]  }
  0x3f   :  { %430 = vmatprep.mubr.bf16.mxu1 %v8189_v1  ;;  %8479 = vst [vmem:[#allocation21_spill] sm:$0xff] %v5885_v57 }
  0x46   :  { %4064 = vmatmul.mubr.msk.bf16.gmra.mrb[32].mxu1 %vm200_vm0, %v5428_v8  ;;  %v5767_v8 = vld [vmem:[%s8182_s4 + $0x40] ss:$16 sps:$4 sm:$0xff]  }
  0x47   :  { %440 = vmatprep.mubr.bf16.mxu1 %v8189_v1  ;;  %919 = vmatpush1.bf16.msra.mxu0 %v5767_v8 }
  0x48   :  { %920 = vmatprep.subr.bf16.mxu0 %v5781_v10 }
  0x4b   :  { %921 = vmatpush1.bf16.msra.mxu0 %v5791_v12 }
  0x4c   :  { %922 = vmatprep.subr.bf16.mxu0 %v5805_v14 }
  0x4e   :  { %4065 = vmatmul.mubr.msk.bf16.gmra.mrb[36].mxu1 %vm200_vm0, %v5475_v20  ;;  %v5815_v20 = vld [vmem:[%s8182_s4 + $0x80] ss:$16 sps:$4 sm:$0xff]  }
  0x4f   :  { %686 = vmatprep.mubr.bf16.mxu1 %v8189_v1  ;;  %8467 = vst [vmem:[#allocation9_spill] sm:$0xff] %v5815_v20  ;;  %923 = vmatpush1.bf16.msra.mxu0 %v5815_v20 }
  0x50   :  { %924 = vmatprep.subr.bf16.mxu0 %v5829_v24 }
  0x53   :  { %925 = vmatpush1.bf16.msra.mxu0 %v5839_v31 }
  0x54   :  { %926 = vmatprep.subr.bf16.mxu0 %v5849_v37  ;;  %v5895_v37 = vld [vmem:[%s8183_s5 + $0x4] ss:$16 sps:$4 sm:$0xff]  }
  0x55   :  { %8481 = vst [vmem:[#allocation23_spill] sm:$0xff] %v5895_v37 }
  0x56   :  { %687 = vmatmul.mubr.bf16.vlgmr.msra.gmra.mrb[8].mxu1 %v8189_v1 }
  0x57   :  { %989 = vmatprep.mubr.bf16.mxu1 %v8189_v1  ;;  %958 = vmatpush1.bf16.msra.mxu1 %v5725_v0  ;;  %v5890_v1 = vld [vmem:[%s8182_s4 + $0xe8] ss:$16 sps:$4 sm:$0xff]  }
  0x58   :  { %959 = vmatprep.subr.bf16.mxu1 %v5738_v3  ;;  %8480 = vst [vmem:[#allocation22_spill] sm:$0xff] %v5890_v1  ;;  %927 = vmatpush1.bf16.msra.mxu0 %v5861_v44 }
  0x59   :  { %928 = vmatprep.subr.bf16.mxu0 %v5873_v53 }
  0x5b   :  { %960 = vmatpush1.bf16.msra.mxu1 %v5748_v5 }
  0x5c   :  { %961 = vmatprep.subr.bf16.mxu1 %v5762_v7  ;;  %929 = vmatpush1.bf16.msra.mxu0 %v5885_v57 }
  0x5d   :  { %1160 = vmatprep.subr.bf16.mxu0 %v5895_v37 }
  0x5f   :  { %962 = vmatpush1.bf16.msra.mxu1 %v5772_v9 }
  0x60   :  { %963 = vmatprep.subr.bf16.mxu1 %v5786_v11 }
  0x63   :  { %964 = vmatpush1.bf16.msra.mxu1 %v5796_v13 }
  0x64   :  { %965 = vmatprep.subr.bf16.mxu1 %v5810_v19 }
  0x67   :  { %966 = vmatpush1.bf16.msra.mxu1 %v5820_v23 }
  0x68   :  { %967 = vmatprep.subr.bf16.mxu1 %v5834_v27 }
  0x6b   :  { %968 = vmatpush1.bf16.msra.mxu1 %v5844_v33 }
  0x6c   :  { %969 = vmatprep.subr.bf16.mxu1 %v5854_v43  ;;  %v5900_v43 = vld [vmem:[%s8183_s5 + $0xc] ss:$16 sps:$4 sm:$0xff]  }
  0x6d   :  { %8482 = vst [vmem:[#allocation24_spill] sm:$0xff] %v5900_v43 }
  0x6f   :  { %970 = vmatpush1.bf16.msra.mxu1 %v5866_v48 }
  0x70   :  { %971 = vmatprep.subr.bf16.mxu1 %v5880_v54 }
  0x73   :  { %972 = vmatpush1.bf16.msra.mxu1 %v5890_v1  ;;  %v160_v1 = vlaneseq }
  0x74   :  { %1203 = vmatprep.subr.bf16.mxu1 %v5900_v43 }
  0x75   :  { %v5926_v37 = vshrl.u32 %v160_v1, 7 }
  0xd9   :  { %v5910_v33 = vpop.f32.mrb[0].mxu1 }
  0xda   :  { %8483 = vst [vmem:[#allocation25_spill] sm:$0xff] %v5910_v33  ;;  %v5912_v31 = vpop.f32.mrb[1].mxu1  ;;  %v8211_v33 = vsub.s32 0, %v5926_v37 }
  0xdb   :  { %8484 = vst [vmem:[#allocation26_spill] sm:$0xff] %v5912_v31  ;;  %v5914_v27 = vpop.f32.mrb[2].mxu1 }
  0xdc   :  { %8485 = vst [vmem:[#allocation27_spill] sm:$0xff] %v5914_v27  ;;  %v5916_v44 = vpop.f32.mrb[3].mxu1  ;;  %v129_v27 = vld [vmem:[%s8184_s3] sm:$0xf] }
  0xdd   :  { %8486 = vst [vmem:[#allocation28_spill] sm:$0xff] %v5916_v44  ;;  %v8212_v44 = vsub.s32 1, %v5926_v37 }
  0xdf   :  { %v5939_v1 = vrot.slane %v129_v27, %v8212_v44  ;;  %v8217_v44 = vsub.s32 2, %v5926_v37 }
  0xe1   :  { %v5918_v48 = vpop.f32.mrb[4].mxu1  ;;  %8492 = vst [vmem:[#allocation34_spill] sm:$0xff] %v5939_v1 }
  0xe2   :  { %8487 = vst [vmem:[#allocation29_spill] sm:$0xff] %v5918_v48  ;;  %v5920_v53 = vpop.f32.mrb[5].mxu1 }
  0xe3   :  { %8488 = vst [vmem:[#allocation30_spill] sm:$0xff] %v5920_v53  ;;  %v5922_v54 = vpop.f32.mrb[6].mxu1 }
  0xe4   :  { %8489 = vst [vmem:[#allocation31_spill] sm:$0xff] %v5922_v54  ;;  %v5924_v57 = vpop.f32.mrb[7].mxu1  ;;  %v5935_v54 = vrot.slane %v129_v27, %v8211_v33 }
  0xe5   :  { %8490 = vst [vmem:[#allocation32_spill] sm:$0xff] %v5924_v57 }
  0xe6   :  { %8491 = vst [vmem:[#allocation33_spill] sm:$0xff] %v5935_v54 }
 0x109   :  { %v645_v43 = vpop.f32.mrb[0].mxu0 }
 0x10a   :  { %v647_v24 = vpop.f32.mrb[1].mxu0  ;;  %v4298_v57 = vadd.f32 %v645_v43, %v5935_v54  ;;  %v8216_v43 = vsub.s32 3, %v5926_v37 }
 0x10b   :  { %v649_v48 = vpop.f32.mrb[2].mxu0  ;;  %v4299_v53 = vadd.f32 %v647_v24, %v5939_v1 }
 0x10c   :  { %v651_v31 = vpop.f32.mrb[3].mxu0  ;;  %v4300_v23 = vadd.f32 %v649_v48, %v5935_v54  ;;  %v4098_v19 = vmul.f32 -1.442695, %v4298_v57 }
 0x10d   :  { %v4301_v20 = vadd.f32 %v651_v31, %v5939_v1  ;;  %v4099_v14 = vmul.f32 -1.442695, %v4299_v53  ;;  %v5949_v31 = vrot.slane %v129_v27, %v8217_v44 }
 0x10e   :  { %v4101_v13 = vmul.f32 -1.442695, %v4300_v23  ;;  %4651 = vpow2.f32 %v4098_v19 }
 0x10f   :  { %v4102_v12 = vmul.f32 -1.442695, %v4301_v20  ;;  %4653 = vpow2.f32 %v4099_v14  ;;  %8493 = vst [vmem:[#allocation35_spill] sm:$0xff] %v5949_v31  ;;  %v5953_v14 = vrot.slane %v129_v27, %v8216_v43 }
 0x110   :  { %4655 = vpow2.f32 %v4101_v13 }
 0x111   :  { %4657 = vpow2.f32 %v4102_v12 }
 0x118   :  { %v4652_v33 = vpop.eup %4651 }
 0x119   :  { %v4654_v11 = vpop.eup %4653  ;;  %v723_v9 = vadd.f32 1.0, %v4652_v33 }
 0x11a   :  { %v4656_v10 = vpop.eup %4655  ;;  %v724_v48 = vadd.f32 1.0, %v4654_v11 }
 0x11b   :  { %v4658_v24 = vpop.eup %4657  ;;  %v726_v23 = vadd.f32 1.0, %v4656_v10  ;;  %4659 = vrcp.f32 %v723_v9 }
 0x11c   :  { %v727_v12 = vadd.f32 1.0, %v4658_v24  ;;  %4661 = vrcp.f32 %v724_v48 }
 0x11d   :  { %4663 = vrcp.f32 %v726_v23 }
 0x11e   :  { %4665 = vrcp.f32 %v727_v12 }
 0x125   :  { %v4660_v9 = vpop.eup %4659 }
 0x126   :  { %v4662_v48 = vpop.eup %4661 }
 0x129   :  { %v688_v13 = vpop.f32.mrb[8].mxu1 }
 0x12a   :  { %v4338_v19 = vadd.f32 %v688_v13, %v5949_v31  ;;  %v690_v20 = vpop.f32.mrb[9].mxu1  ;;  %v4664_v13 = vpop.eup %4663 }
 0x12b   :  { %v4339_v33 = vadd.f32 %v690_v20, %v5953_v14  ;;  %v692_v11 = vpop.f32.mrb[10].mxu1  ;;  %v4666_v43 = vpop.eup %4665  ;;  %v743_v20 = vmul.f32 0.0, %v4662_v48 }
 0x12c   :  { %v4100_v53 = vmul.f32 -1.442695, %v4338_v19  ;;  %v4340_v57 = vadd.f32 %v692_v11, %v5949_v31  ;;  %v694_v10 = vpop.f32.mrb[11].mxu1  ;;  %v744_v11 = vmul.f32 0.0, %v4666_v43 }
 0x12d   :  { %4667 = vtanh.f32 %v4339_v33  ;;  %v4341_v27 = vadd.f32 %v694_v10, %v5953_v14 }
 0x12e   :  { %4669 = vpow2.f32 %v4100_v53  ;;  %v4103_v24 = vmul.f32 -1.442695, %v4340_v57 }
 0x12f   :  { %4671 = vtanh.f32 %v4341_v27 }
 0x130   :  { %4673 = vpow2.f32 %v4103_v24 }
 0x137   :  { %v4668_v23 = vpop.eup %4667 }
 0x138   :  { %v4670_v44 = vpop.eup %4669  ;;  %v745_v1 = vmul.f32 %v4668_v23, %v4660_v9  ;;  %v5985_v23 = vld [vmem:[%s8183_s5 + $0x2c] ss:$16 sps:$4 sm:$0xff]  }
 0x139   :  { %v4672_v12 = vpop.eup %4671  ;;  %v725_v19 = vadd.f32 1.0, %v4670_v44 }
 0x13a   :  { %v4674_v54 = vpop.eup %4673  ;;  %v5959_v31 = vadd.f32 %v745_v1, %v743_v20  ;;  %v746_v33 = vmul.f32 %v4672_v12, %v4664_v13  ;;  %v5968_v1 = vld [vmem:[%s8183_s5] ss:$16 sps:$4 sm:$0xff]   ;;  %v5980_v13 = vld [vmem:[%s8183_s5 + $0x24] ss:$16 sps:$4 sm:$0xff]   ;;  %v5999_v12 = vld [vmem:[%s8183_s5 + $0x28] ss:$16 sps:$4 sm:$0xff]  }
 0x13b   :  { %4675 = vrcp.f32 %v725_v19  ;;  %v728_v53 = vadd.f32 1.0, %v4674_v54  ;;  %v5973_v54 = vld [vmem:[%s8183_s5 + $0x8] ss:$16 sps:$4 sm:$0xff]   ;;  %v5994_v20 = vld [vmem:[%s8183_s5 + $0x20] ss:$16 sps:$4 sm:$0xff]  }
 0x13c   :  { %4677 = vtanh.f32 %v5959_v31  ;;  %v5962_v57 = vadd.f32 %v746_v33, %v744_v11  ;;  %v6006_v19 = vld [vmem:[%s8183_s5 + $0x44] ss:$16 sps:$4 sm:$0xff]   ;;  %v6011_v11 = vld [vmem:[%s8183_s5 + $0x4c] ss:$16 sps:$4 sm:$0xff]   ;;  %v8494_v33 = vmov 0  }
 0x13d   :  { %4679 = vrcp.f32 %v728_v53  ;;  %v6020_v53 = vld [vmem:[%s8183_s5 + $0x40] ss:$16 sps:$4 sm:$0xff]  }
 0x13e   :  { %4681 = vtanh.f32 %v5962_v57 }
 0x145   :  { %v4676_v10 = vpop.eup %4675 }
 0x146   :  { %v4678_v27 = vpop.eup %4677 }
 0x147   :  { %v4680_v24 = vpop.eup %4679  ;;  %v751_v48 = vmul.f32 %v4678_v27, %v4676_v10  ;;  %v6025_v10 = vld [vmem:[%s8183_s5 + $0x48] ss:$16 sps:$4 sm:$0xff]   ;;  %v6032_v27 = vld [vmem:[%s8183_s5 + $0x64] ss:$16 sps:$4 sm:$0xff]  }
 0x148   :  { %v4682_v9 = vpop.eup %4681  ;;  %8495 = vst [vmem:[#allocation36_spill] sm:$0xff] %v6025_v10  ;;  %8496 = vst [vmem:[#allocation37_spill] sm:$0xff] %v6032_v27 }
 0x149   :  { %v752_v44 = vmul.f32 %v4682_v9, %v4680_v24  ;;  %v6037_v24 = vld [vmem:[%s8183_s5 + $0x6c] ss:$16 sps:$4 sm:$0xff]   ;;  %v6044_v9 = vld [vmem:[%s8183_s5 + $0x60] ss:$16 sps:$4 sm:$0xff]  }
 0x14a   :  { %8497 = vst [vmem:[#allocation38_spill] sm:$0xff] %v6037_v24  ;;  %8498 = vst [vmem:[#allocation39_spill] sm:$0xff] %v6044_v9 }
 0x14b   :  { %v5975_v43 = vpack.c.bf16 %v752_v44, %v751_v48  ;;  %v6049_v48 = vld [vmem:[%s8183_s5 + $0x68] ss:$16 sps:$4 sm:$0xff]   ;;  %v6056_v44 = vld [vmem:[%s8183_s5 + $0x84] ss:$16 sps:$4 sm:$0xff]  }
 0x14c   :  { %8499 = vst [vmem:[#allocation40_spill] sm:$0xff] %v6049_v48  ;;  %8500 = vst [vmem:[#allocation41_spill] sm:$0xff] %v6056_v44 }
 0x14d   :  { %947 = vmatmul.mubr.bf16.vlgmr.msra.gmra.mrb[24].mxu0 %v5975_v43  ;;  %990 = vmatmul.mubr.bf16.vlgmr.msra.gmra.mrb[40].mxu1 %v5975_v43 }
 0x14e   :  { %1161 = vmatpush1.bf16.msra.mxu0 %v5968_v1  ;;  %1204 = vmatpush1.bf16.msra.mxu1 %v5973_v54 }
 0x14f   :  { %1162 = vmatprep.subr.bf16.mxu0 %v5980_v13  ;;  %1205 = vmatprep.subr.bf16.mxu1 %v5985_v23 }
 0x150   :  { %1192 = vmatprep.mubr.bf16.mxu0 %v8494_v33  ;;  %1235 = vmatprep.mubr.bf16.mxu1 %v8494_v33 }
 0x152   :  { %1163 = vmatpush1.bf16.msra.mxu0 %v5994_v20  ;;  %1206 = vmatpush1.bf16.msra.mxu1 %v5999_v12 }
 0x153   :  { %1164 = vmatprep.subr.bf16.mxu0 %v6006_v19  ;;  %1207 = vmatprep.subr.bf16.mxu1 %v6011_v11 }
 0x156   :  { %1165 = vmatpush1.bf16.msra.mxu0 %v6020_v53  ;;  %1208 = vmatpush1.bf16.msra.mxu1 %v6025_v10  ;;  %v6061_v10 = vld [vmem:[%s8183_s5 + $0x8c] ss:$16 sps:$4 sm:$0xff]  }
 0x157   :  { %1166 = vmatprep.subr.bf16.mxu0 %v6032_v27  ;;  %1209 = vmatprep.subr.bf16.mxu1 %v6037_v24  ;;  %8501 = vst [vmem:[#allocation42_spill] sm:$0xff] %v6061_v10  ;;  %v6068_v27 = vld [vmem:[%s8183_s5 + $0x80] ss:$16 sps:$4 sm:$0xff]   ;;  %v6073_v24 = vld [vmem:[%s8183_s5 + $0x88] ss:$16 sps:$4 sm:$0xff]  }
 0x158   :  { %8502 = vst [vmem:[#allocation43_spill] sm:$0xff] %v6068_v27  ;;  %8503 = vst [vmem:[#allocation44_spill] sm:$0xff] %v6073_v24 }
 0x15a   :  { %1167 = vmatpush1.bf16.msra.mxu0 %v6044_v9  ;;  %1210 = vmatpush1.bf16.msra.mxu1 %v6049_v48  ;;  %v6080_v9 = vld [vmem:[%s8183_s5 + $0xa4] ss:$16 sps:$4 sm:$0xff]   ;;  %v6085_v48 = vld [vmem:[%s8183_s5 + $0xac] ss:$16 sps:$4 sm:$0xff]  }
 0x15b   :  { %1168 = vmatprep.subr.bf16.mxu0 %v6056_v44  ;;  %1211 = vmatprep.subr.bf16.mxu1 %v6061_v10  ;;  %8504 = vst [vmem:[#allocation45_spill] sm:$0xff] %v6080_v9  ;;  %8505 = vst [vmem:[#allocation46_spill] sm:$0xff] %v6085_v48  ;;  %v6092_v44 = vld [vmem:[%s8183_s5 + $0xa0] ss:$16 sps:$4 sm:$0xff]   ;;  %v6097_v10 = vld [vmem:[%s8183_s5 + $0xa8] ss:$16 sps:$4 sm:$0xff]  }
 0x15c   :  { %8506 = vst [vmem:[#allocation47_spill] sm:$0xff] %v6092_v44  ;;  %8507 = vst [vmem:[#allocation48_spill] sm:$0xff] %v6097_v10 }
 0x15e   :  { %1169 = vmatpush1.bf16.msra.mxu0 %v6068_v27  ;;  %1212 = vmatpush1.bf16.msra.mxu1 %v6073_v24  ;;  %v6104_v27 = vld [vmem:[%s8183_s5 + $0xc4] ss:$16 sps:$4 sm:$0xff]   ;;  %v6109_v24 = vld [vmem:[%s8183_s5 + $0xcc] ss:$16 sps:$4 sm:$0xff]  }
 0x15f   :  { %1170 = vmatprep.subr.bf16.mxu0 %v6080_v9  ;;  %1213 = vmatprep.subr.bf16.mxu1 %v6085_v48  ;;  %8508 = vst [vmem:[#allocation49_spill] sm:$0xff] %v6104_v27  ;;  %8509 = vst [vmem:[#allocation50_spill] sm:$0xff] %v6109_v24  ;;  %v6116_v9 = vld [vmem:[%s8183_s5 + $0xc0] ss:$16 sps:$4 sm:$0xff]   ;;  %v6121_v48 = vld [vmem:[%s8183_s5 + $0xc8] ss:$16 sps:$4 sm:$0xff]  }
 0x162   :  { %1171 = vmatpush1.bf16.msra.mxu0 %v6092_v44  ;;  %1214 = vmatpush1.bf16.msra.mxu1 %v6097_v10  ;;  %v6128_v44 = vld [vmem:[%s8183_s5 + $0xe4] ss:$16 sps:$4 sm:$0xff]   ;;  %v6133_v10 = vld [vmem:[%s8183_s5 + $0xec] ss:$16 sps:$4 sm:$0xff]  }
 0x163   :  { %1172 = vmatprep.subr.bf16.mxu0 %v6104_v27  ;;  %1215 = vmatprep.subr.bf16.mxu1 %v6109_v24  ;;  %v6140_v27 = vld [vmem:[%s8183_s5 + $0xe0] ss:$16 sps:$4 sm:$0xff]   ;;  %v6145_v24 = vld [vmem:[%s8183_s5 + $0xe8] ss:$16 sps:$4 sm:$0xff]  }
 0x166   :  { %1173 = vmatpush1.bf16.msra.mxu0 %v6116_v9  ;;  %1216 = vmatpush1.bf16.msra.mxu1 %v6121_v48 }
 0x167   :  { %1174 = vmatprep.subr.bf16.mxu0 %v6128_v44  ;;  %1217 = vmatprep.subr.bf16.mxu1 %v6133_v10 }
 0x16a   :  { %1175 = vmatpush1.bf16.msra.mxu0 %v6140_v27  ;;  %1218 = vmatpush1.bf16.msra.mxu1 %v6145_v24 }
 0x16b   :  { %1324 = vmatprep.subr.bf16.mxu0 %v5454_v15  ;;  %1367 = vmatprep.subr.bf16.mxu1 %v5460_v16  ;;  %v8510_v15 = vld [vmem:[#allocation2_spill] sm:$0xff]  ;;  %v8511_v16 = vld [vmem:[#allocation3_spill] sm:$0xff] }
 0x16d   :  { %1193 = vmatmul.mubr.bf16.vlgmr.msra.gmra.mrb[24].mxu0 %v8494_v33  ;;  %1236 = vmatmul.mubr.bf16.vlgmr.msra.gmra.mrb[40].mxu1 %v8494_v33 }
 0x16e   :  { %1325 = vmatpush1.bf16.msra.mxu0 %v5467_v17  ;;  %1368 = vmatpush1.bf16.msra.mxu1 %v5515_v28  ;;  %v8512_v17 = vld [vmem:[#allocation4_spill] sm:$0xff]  ;;  %v8518_v28 = vld [vmem:[#allocation10_spill] sm:$0xff] }
 0x16f   :  { %1326 = vmatprep.subr.bf16.mxu0 %v5473_v18  ;;  %1369 = vmatprep.subr.bf16.mxu1 %v5520_v29  ;;  %v8513_v18 = vld [vmem:[#allocation5_spill] sm:$0xff]  ;;  %v8519_v29 = vld [vmem:[#allocation11_spill] sm:$0xff] }
 0x170   :  { %1356 = vmatprep.mubr.bf16.mxu0 %v8494_v33  ;;  %1399 = vmatprep.mubr.bf16.mxu1 %v8494_v33 }
 0x172   :  { %1327 = vmatpush1.bf16.msra.mxu0 %v5482_v21  ;;  %1370 = vmatpush1.bf16.msra.mxu1 %v5547_v34  ;;  %v8514_v21 = vld [vmem:[#allocation6_spill] sm:$0xff] }
 0x173   :  { %1328 = vmatprep.subr.bf16.mxu0 %v5487_v22  ;;  %1371 = vmatprep.subr.bf16.mxu1 %v5554_v35  ;;  %v8515_v22 = vld [vmem:[#allocation7_spill] sm:$0xff]  ;;  %v8522_v34 = vld [vmem:[#allocation14_spill] sm:$0xff] }
 0x174   :  { %v8523_v35 = vld [vmem:[#allocation15_spill] sm:$0xff] }
 0x176   :  { %1329 = vmatpush1.bf16.msra.mxu0 %v5504_v25  ;;  %1372 = vmatpush1.bf16.msra.mxu1 %v5567_v38  ;;  %v8516_v25 = vld [vmem:[#allocation8_spill] sm:$0xff]  ;;  %v8525_v38 = vld [vmem:[#allocation17_spill] sm:$0xff] }
 0x177   :  { %1330 = vmatprep.subr.bf16.mxu0 %v5510_v26  ;;  %1373 = vmatprep.subr.bf16.mxu1 %v5584_v41  ;;  %v8517_v26 = vld [vmem:[#allocation9_spill] sm:$0xff]  ;;  %v8528_v41 = vld [vmem:[#allocation20_spill] sm:$0xff] }
 0x17a   :  { %1331 = vmatpush1.bf16.msra.mxu0 %v5527_v30  ;;  %1374 = vmatpush1.bf16.msra.mxu1 %v5606_v45  ;;  %v8520_v30 = vld [vmem:[#allocation12_spill] sm:$0xff]  ;;  %v8530_v45 = vld [vmem:[#allocation22_spill] sm:$0xff] }
 0x17b   :  { %1332 = vmatprep.subr.bf16.mxu0 %v5537_v32  ;;  %1375 = vmatprep.subr.bf16.mxu1 %v5618_v47  ;;  %v8521_v32 = vld [vmem:[#allocation13_spill] sm:$0xff]  ;;  %v8532_v47 = vld [vmem:[#allocation24_spill] sm:$0xff] }
 0x17e   :  { %1333 = vmatpush1.bf16.msra.mxu0 %v5560_v36  ;;  %1376 = vmatpush1.bf16.msra.mxu1 %v5630_v50  ;;  %v8524_v36 = vld [vmem:[#allocation16_spill] sm:$0xff]  ;;  %v8533_v50 = vsub.s32 0, %v5926_v37 }
 0x17f   :  { %1334 = vmatprep.subr.bf16.mxu0 %v5573_v39  ;;  %1377 = vmatprep.subr.bf16.mxu1 %v5642_v52  ;;  %v8526_v39 = vld [vmem:[#allocation18_spill] sm:$0xff]  ;;  %v8535_v52 = vsub.s32 1, %v5926_v37 }
 0x182   :  { %1335 = vmatpush1.bf16.msra.mxu0 %v5579_v40  ;;  %1378 = vmatpush1.bf16.msra.mxu1 %v5659_v55  ;;  %v8527_v40 = vld [vmem:[#allocation19_spill] sm:$0xff] }
 0x183   :  { %1336 = vmatprep.subr.bf16.mxu0 %v5591_v42  ;;  %1379 = vmatprep.subr.bf16.mxu1 %v5666_v56  ;;  %v8529_v42 = vld [vmem:[#allocation21_spill] sm:$0xff] }
 0x186   :  { %1337 = vmatpush1.bf16.msra.mxu0 %v5613_v46  ;;  %1380 = vmatpush1.bf16.msra.mxu1 %v5672_v58  ;;  %v8531_v46 = vld [vmem:[#allocation23_spill] sm:$0xff] }
 0x187   :  { %1338 = vmatprep.subr.bf16.mxu0 %v5625_v49  ;;  %1381 = vmatprep.subr.bf16.mxu1 %v5678_v59  ;;  %v130_v49 = vld [vmem:[%s8185_s6] sm:$0xf] }
 0x188   :  { %v6234_v55 = vrot.slane %v130_v49, %v8535_v52 }
 0x18a   :  { %1339 = vmatpush1.bf16.msra.mxu0 %v5636_v51  ;;  %1382 = vmatpush1.bf16.msra.mxu1 %v5688_v60  ;;  %v6230_v51 = vrot.slane %v130_v49, %v8533_v50  ;;  %8536 = vst [vmem:[#allocation3_spill] sm:$0xff] %v6234_v55 }
 0x18b   :  { %1467 = vmatprep.subr.bf16.mxu0 %v5709_v61  ;;  %1510 = vmatprep.subr.bf16.mxu1 %v5714_v62 }
 0x18c   :  { %8534 = vst [vmem:[#allocation2_spill] sm:$0xff] %v6230_v51 }
 0x18d   :  { %1357 = vmatmul.mubr.bf16.vlgmr.msra.gmra.mrb[4].mxu0 %v5975_v43  ;;  %1400 = vmatmul.mubr.bf16.vlgmr.msra.gmra.mrb[12].mxu1 %v5975_v43 }
 0x18e   :  { %1468 = vmatpush1.bf16.msra.mxu0 %v5720_v63  ;;  %1511 = vmatpush1.bf16.msra.mxu1 %v5725_v0 }
 0x18f   :  { %1469 = vmatprep.subr.bf16.mxu0 %v5733_v2  ;;  %1512 = vmatprep.subr.bf16.mxu1 %v5738_v3 }
 0x190   :  { %1499 = vmatprep.mubr.bf16.mxu0 %v8494_v33  ;;  %1542 = vmatprep.mubr.bf16.mxu1 %v8494_v33 }
 0x192   :  { %1470 = vmatpush1.bf16.msra.mxu0 %v5743_v4  ;;  %1513 = vmatpush1.bf16.msra.mxu1 %v5748_v5 }
 0x193   :  { %1471 = vmatprep.subr.bf16.mxu0 %v5757_v6  ;;  %1514 = vmatprep.subr.bf16.mxu1 %v5762_v7  ;;  %v8537_v6 = vsub.s32 2, %v5926_v37 }
 0x195   :  { %v6241_v7 = vrot.slane %v130_v49, %v8537_v6  ;;  %v8542_v6 = vld [vmem:[#allocation34_spill] sm:$0xff] }
 0x196   :  { %1472 = vmatpush1.bf16.msra.mxu0 %v5767_v8  ;;  %1515 = vmatpush1.bf16.msra.mxu1 %v8510_v15 }
 0x197   :  { %1473 = vmatprep.subr.bf16.mxu0 %v8511_v16  ;;  %1516 = vmatprep.subr.bf16.mxu1 %v8512_v17  ;;  %8538 = vst [vmem:[#allocation4_spill] sm:$0xff] %v6241_v7  ;;  %v8539_v17 = vsub.s32 3, %v5926_v37 }
 0x19a   :  { %1474 = vmatpush1.bf16.msra.mxu0 %v8513_v18  ;;  %1517 = vmatpush1.bf16.msra.mxu1 %v8514_v21  ;;  %v6246_v18 = vrot.slane %v130_v49, %v8539_v17 }
 0x19b   :  { %1475 = vmatprep.subr.bf16.mxu0 %v8515_v22  ;;  %1518 = vmatprep.subr.bf16.mxu1 %v8516_v25 }
 0x19c   :  { %8540 = vst [vmem:[#allocation5_spill] sm:$0xff] %v6246_v18 }
 0x19e   :  { %1476 = vmatpush1.bf16.msra.mxu0 %v8517_v26  ;;  %1519 = vmatpush1.bf16.msra.mxu1 %v8518_v28 }
 0x19f   :  { %1477 = vmatprep.subr.bf16.mxu0 %v8519_v29  ;;  %1520 = vmatprep.subr.bf16.mxu1 %v8520_v30 }
 0x1a2   :  { %1478 = vmatpush1.bf16.msra.mxu0 %v8521_v32  ;;  %1521 = vmatpush1.bf16.msra.mxu1 %v8522_v34 }
 0x1a3   :  { %1479 = vmatprep.subr.bf16.mxu0 %v8523_v35  ;;  %1522 = vmatprep.subr.bf16.mxu1 %v8524_v36 }
 0x1a6   :  { %1480 = vmatpush1.bf16.msra.mxu0 %v8525_v38  ;;  %1523 = vmatpush1.bf16.msra.mxu1 %v8526_v39 }
 0x1a7   :  { %1481 = vmatprep.subr.bf16.mxu0 %v8527_v40  ;;  %1524 = vmatprep.subr.bf16.mxu1 %v8528_v41 }
 0x1aa   :  { %1482 = vmatpush1.bf16.msra.mxu0 %v8529_v42  ;;  %1525 = vmatpush1.bf16.msra.mxu1 %v8530_v45 }
 0x1ab   :  { %1553 = vmatprep.subr.bf16.mxu0 %v8531_v46  ;;  %1596 = vmatprep.subr.bf16.mxu1 %v8532_v47 }
 0x240   :  { %v1194_v56 = vpop.f32.mrb[24].mxu0  ;;  %v1237_v58 = vpop.f32.mrb[40].mxu1 }
 0x241   :  { %v1267_v59 = vadd.f32 %v6230_v51, %v1194_v56  ;;  %v1196_v60 = vpop.f32.mrb[25].mxu0  ;;  %v1239_v61 = vpop.f32.mrb[41].mxu1  ;;  %v1269_v21 = vadd.f32 %v6241_v7, %v1237_v58 }
 0x242   :  { %v1268_v62 = vadd.f32 %v6234_v55, %v1196_v60  ;;  %v1198_v63 = vpop.f32.mrb[26].mxu0  ;;  %v1241_v0 = vpop.f32.mrb[42].mxu1  ;;  %v1270_v25 = vadd.f32 %v6246_v18, %v1239_v61 }
 0x243   :  { %v4168_v2 = vmul.f32 -1.442695, %v1267_v59  ;;  %v1271_v3 = vadd.f32 %v6230_v51, %v1198_v63  ;;  %v1200_v4 = vpop.f32.mrb[27].mxu0  ;;  %v1243_v5 = vpop.f32.mrb[43].mxu1  ;;  %v1273_v22 = vadd.f32 %v6241_v7, %v1241_v0  ;;  %v4170_v26 = vmul.f32 -1.442695, %v1269_v21 }
 0x244   :  { %v4169_v8 = vmul.f32 -1.442695, %v1268_v62  ;;  %v1272_v43 = vadd.f32 %v6234_v55, %v1200_v4  ;;  %v1274_v30 = vadd.f32 %v6246_v18, %v1243_v5  ;;  %v8541_v0 = vld [vmem:[#allocation33_spill] sm:$0xff] }
 0x245   :  { %4683 = vpow2.f32 %v4168_v2  ;;  %v4171_v15 = vmul.f32 -1.442695, %v1271_v3  ;;  %v4173_v28 = vmul.f32 -1.442695, %v1273_v22 }
 0x246   :  { %v4172_v16 = vmul.f32 -1.442695, %v1272_v43  ;;  %4685 = vpow2.f32 %v4169_v8 }
 0x247   :  { %4687 = vpow2.f32 %v4171_v15 }
 0x248   :  { %4689 = vpow2.f32 %v4172_v16 }
 0x249   :  { %4691 = vtanh.f32 %v1270_v25 }
 0x24a   :  { %4693 = vpow2.f32 %v4170_v26 }
 0x24b   :  { %4695 = vpow2.f32 %v4173_v28 }
 0x24f   :  { %v4684_v29 = vpop.eup %4683 }
 0x250   :  { %v1293_v32 = vadd.f32 1.0, %v4684_v29  ;;  %v4686_v34 = vpop.eup %4685 }
 0x251   :  { %v4688_v37 = vpop.eup %4687  ;;  %v1294_v35 = vadd.f32 1.0, %v4686_v34 }
 0x252   :  { %4697 = vrcp.f32 %v1293_v32  ;;  %v1296_v36 = vadd.f32 1.0, %v4688_v37  ;;  %v4690_v38 = vpop.eup %4689  ;;  %v8543_v32 = vld [vmem:[#allocation35_spill] sm:$0xff] }
 0x253   :  { %4699 = vtanh.f32 %v1274_v30  ;;  %v1297_v39 = vadd.f32 1.0, %v4690_v38  ;;  %v4692_v40 = vpop.eup %4691 }
 0x254   :  { %4701 = vrcp.f32 %v1294_v35  ;;  %v4694_v41 = vpop.eup %4693 }
 0x255   :  { %4703 = vrcp.f32 %v1296_v36  ;;  %v4696_v42 = vpop.eup %4695  ;;  %v1295_v50 = vadd.f32 1.0, %v4694_v41 }
 0x256   :  { %4705 = vrcp.f32 %v1297_v39  ;;  %v1298_v58 = vadd.f32 1.0, %v4696_v42 }
 0x257   :  { %4707 = vrcp.f32 %v1295_v50 }
 0x258   :  { %4709 = vrcp.f32 %v1298_v58 }
 0x25c   :  { %v4698_v45 = vpop.eup %4697 }
 0x25d   :  { %v4700_v46 = vpop.eup %4699  ;;  %v1315_v47 = vmul.f32 %v4698_v45, %v4692_v40 }
 0x25e   :  { %v4702_v49 = vpop.eup %4701 }
 0x25f   :  { %v4704_v52 = vpop.eup %4703  ;;  %v1313_v56 = vmul.f32 0.0, %v4702_v49 }
 0x260   :  { %v1316_v59 = vmul.f32 %v4704_v52, %v4700_v46  ;;  %v1358_v60 = vpop.f32.mrb[4].mxu0  ;;  %v1401_v61 = vpop.f32.mrb[12].mxu1 }
 0x261   :  { %v4706_v62 = vpop.eup %4705  ;;  %v6252_v63 = vadd.f32 %v1315_v47, %v1313_v56  ;;  %v4302_v2 = vadd.f32 %v1358_v60, %v8541_v0  ;;  %v1360_v3 = vpop.f32.mrb[5].mxu0  ;;  %v4342_v34 = vadd.f32 %v1401_v61, %v8543_v32 }
 0x262   :  { %v1403_v4 = vpop.f32.mrb[13].mxu1  ;;  %v1314_v5 = vmul.f32 0.0, %v4706_v62  ;;  %v4303_v8 = vadd.f32 %v1360_v3, %v8542_v6  ;;  %v1362_v43 = vpop.f32.mrb[6].mxu0 }
 0x263   :  { %v1405_v15 = vpop.f32.mrb[14].mxu1  ;;  %v4174_v16 = vmul.f32 -1.442695, %v4302_v2  ;;  %v4304_v17 = vadd.f32 %v1362_v43, %v8541_v0  ;;  %v1364_v21 = vpop.f32.mrb[7].mxu0  ;;  %4711 = vtanh.f32 %v6252_v63  ;;  %v4343_v36 = vadd.f32 %v1403_v4, %v5953_v14 }
 0x264   :  { %v1407_v22 = vpop.f32.mrb[15].mxu1  ;;  %v6258_v25 = vadd.f32 %v1316_v59, %v1314_v5  ;;  %v4175_v26 = vmul.f32 -1.442695, %v4303_v8  ;;  %v4305_v29 = vadd.f32 %v1364_v21, %v8542_v6  ;;  %v4344_v37 = vadd.f32 %v1405_v15, %v8543_v32  ;;  %v4708_v35 = vpop.eup %4707 }
 0x265   :  { %4713 = vpow2.f32 %v4174_v16  ;;  %v4177_v28 = vmul.f32 -1.442695, %v4304_v17  ;;  %v4710_v38 = vpop.eup %4709  ;;  %v4176_v39 = vmul.f32 -1.442695, %v4342_v34  ;;  %v4345_v47 = vadd.f32 %v1407_v22, %v5953_v14 }
 0x266   :  { %4715 = vtanh.f32 %v6258_v25  ;;  %v4178_v30 = vmul.f32 -1.442695, %v4305_v29  ;;  %v4179_v42 = vmul.f32 -1.442695, %v4344_v37 }
 0x267   :  { %4717 = vpow2.f32 %v4175_v26 }
 0x268   :  { %4719 = vpow2.f32 %v4177_v28 }
 0x269   :  { %4721 = vpow2.f32 %v4178_v30 }
 0x26a   :  { %4723 = vtanh.f32 %v4343_v36 }
 0x26b   :  { %4725 = vpow2.f32 %v4176_v39 }
 0x26d   :  { %v4712_v40 = vpop.eup %4711 }
 0x26e   :  { %v1321_v49 = vmul.f32 %v4712_v40, %v4708_v35 }
 0x26f   :  { %v4714_v41 = vpop.eup %4713 }
 0x270   :  { %v4716_v45 = vpop.eup %4715  ;;  %v1436_v46 = vadd.f32 1.0, %v4714_v41  ;;  %v8549_v41 = vld [vmem:[#allocation41_spill] sm:$0xff] }
 0x271   :  { %v1322_v50 = vmul.f32 %v4716_v45, %v4710_v38  ;;  %v4718_v52 = vpop.eup %4717  ;;  %v8556_v45 = vld [vmem:[#allocation48_spill] sm:$0xff] }
 0x272   :  { %4727 = vrcp.f32 %v1436_v46  ;;  %v4720_v56 = vpop.eup %4719  ;;  %v1437_v58 = vadd.f32 1.0, %v4718_v52  ;;  %v8557_v46 = vld [vmem:[#allocation49_spill] sm:$0xff]  ;;  %v6329_v52 = vld [vmem:[%s8181_s2] ss:$16 sps:$4 sm:$0xff]  }
 0x273   :  { %4729 = vpow2.f32 %v4179_v42  ;;  %v6266_v59 = vpack.c.bf16 %v1322_v50, %v1321_v49  ;;  %v1439_v60 = vadd.f32 1.0, %v4720_v56  ;;  %v4722_v61 = vpop.eup %4721  ;;  %v8555_v42 = vld [vmem:[#allocation47_spill] sm:$0xff]  ;;  %v6315_v49 = vld [vmem:[%s8181_s2 + $0x4] ss:$16 sps:$4 sm:$0xff]  }
 0x274   :  { %4731 = vtanh.f32 %v4345_v47  ;;  %v1440_v62 = vadd.f32 1.0, %v4722_v61  ;;  %v4724_v2 = vpop.eup %4723  ;;  %v8558_v47 = vld [vmem:[#allocation50_spill] sm:$0xff]  ;;  %v6321_v50 = vld [vmem:[%s8181_s2 + $0xc] ss:$16 sps:$4 sm:$0xff]   ;;  %v6335_v56 = vld [vmem:[%s8181_s2 + $0x8] ss:$16 sps:$4 sm:$0xff]  }
 0x275   :  { %4733 = vrcp.f32 %v1437_v58  ;;  %v4726_v3 = vpop.eup %4725  ;;  %v6341_v58 = vld [vmem:[%s8181_s2 + $0x24] ss:$16 sps:$4 sm:$0xff]   ;;  %v6361_v61 = vld [vmem:[%s8181_s2 + $0x28] ss:$16 sps:$4 sm:$0xff]  }
 0x276   :  { %4735 = vrcp.f32 %v1439_v60  ;;  %v1438_v17 = vadd.f32 1.0, %v4726_v3  ;;  %v6355_v60 = vld [vmem:[%s8181_s2 + $0x20] ss:$16 sps:$4 sm:$0xff]  }
 0x277   :  { %4737 = vrcp.f32 %v1440_v62  ;;  %v6367_v62 = vld [vmem:[%s8181_s2 + $0x44] ss:$16 sps:$4 sm:$0xff]   ;;  %v6379_v3 = vld [vmem:[%s8181_s2 + $0x40] ss:$16 sps:$4 sm:$0xff]  }
 0x278   :  { %4739 = vrcp.f32 %v1438_v17  ;;  %v6421_v17 = vld [vmem:[%s8181_s2 + $0x8c] ss:$16 sps:$4 sm:$0xff]  }
 0x279   :  { %8561 = vst [vmem:[#allocation8_spill] sm:$0xff] %v6421_v17 }
 0x27c   :  { %v4728_v4 = vpop.eup %4727 }
 0x27d   :  { %v4730_v5 = vpop.eup %4729  ;;  %v1458_v8 = vmul.f32 %v4728_v4, %v4724_v2  ;;  %v6373_v2 = vld [vmem:[%s8181_s2 + $0x4c] ss:$16 sps:$4 sm:$0xff]   ;;  %v6385_v4 = vld [vmem:[%s8181_s2 + $0x48] ss:$16 sps:$4 sm:$0xff]  }
 0x27e   :  { %v4732_v43 = vpop.eup %4731  ;;  %v1441_v29 = vadd.f32 1.0, %v4730_v5  ;;  %v6391_v5 = vld [vmem:[%s8181_s2 + $0x64] ss:$16 sps:$4 sm:$0xff]  }
 0x27f   :  { %v4734_v15 = vpop.eup %4733 }
 0x280   :  { %v4736_v16 = vpop.eup %4735  ;;  %v1456_v21 = vmul.f32 %v4734_v15, %v5959_v31  ;;  %v6409_v15 = vld [vmem:[%s8181_s2 + $0x68] ss:$16 sps:$4 sm:$0xff]  }
 0x281   :  { %v1459_v22 = vmul.f32 %v4736_v16, %v4732_v43  ;;  %v4738_v26 = vpop.eup %4737  ;;  %v6403_v43 = vld [vmem:[%s8181_s2 + $0x60] ss:$16 sps:$4 sm:$0xff]   ;;  %8559 = vst [vmem:[#allocation6_spill] sm:$0xff] %v6409_v15  ;;  %v6415_v16 = vld [vmem:[%s8181_s2 + $0x84] ss:$16 sps:$4 sm:$0xff]  }
 0x282   :  { %v6269_v28 = vadd.f32 %v1458_v8, %v1456_v21  ;;  %v1457_v30 = vmul.f32 %v4738_v26, %v5962_v57  ;;  %v4740_v37 = vpop.eup %4739  ;;  %v8544_v57 = vld [vmem:[#allocation36_spill] sm:$0xff]  ;;  %v6397_v8 = vld [vmem:[%s8181_s2 + $0x6c] ss:$16 sps:$4 sm:$0xff]   ;;  %8560 = vst [vmem:[#allocation7_spill] sm:$0xff] %v6415_v16 }
 0x283   :  { %v6427_v21 = vld [vmem:[%s8181_s2 + $0x80] ss:$16 sps:$4 sm:$0xff]   ;;  %v6439_v26 = vld [vmem:[%s8181_s2 + $0xa4] ss:$16 sps:$4 sm:$0xff]  }
 0x284   :  { %4741 = vtanh.f32 %v6269_v28  ;;  %v6273_v34 = vadd.f32 %v1459_v22, %v1457_v30  ;;  %8562 = vst [vmem:[#allocation9_spill] sm:$0xff] %v6427_v21  ;;  %v6433_v22 = vld [vmem:[%s8181_s2 + $0x88] ss:$16 sps:$4 sm:$0xff]   ;;  %8564 = vst [vmem:[#allocation11_spill] sm:$0xff] %v6439_v26  ;;  %v6451_v30 = vld [vmem:[%s8181_s2 + $0xa0] ss:$16 sps:$4 sm:$0xff]  }
 0x285   :  { %4743 = vrcp.f32 %v1441_v29  ;;  %8563 = vst [vmem:[#allocation10_spill] sm:$0xff] %v6433_v22  ;;  %v6445_v29 = vld [vmem:[%s8181_s2 + $0xac] ss:$16 sps:$4 sm:$0xff]   ;;  %8566 = vst [vmem:[#allocation13_spill] sm:$0xff] %v6451_v30 }
 0x286   :  { %4745 = vtanh.f32 %v6273_v34  ;;  %8565 = vst [vmem:[#allocation12_spill] sm:$0xff] %v6445_v29 }
 0x28e   :  { %v4742_v35 = vpop.eup %4741 }
 0x28f   :  { %v4744_v36 = vpop.eup %4743  ;;  %v1464_v31 = vmul.f32 %v4742_v35, %v4740_v37  ;;  %v6457_v37 = vld [vmem:[%s8181_s2 + $0xa8] ss:$16 sps:$4 sm:$0xff]   ;;  %v6463_v35 = vld [vmem:[%s8181_s2 + $0xc4] ss:$16 sps:$4 sm:$0xff]  }
 0x290   :  { %v4746_v38 = vpop.eup %4745  ;;  %8567 = vst [vmem:[#allocation14_spill] sm:$0xff] %v6457_v37  ;;  %8568 = vst [vmem:[#allocation15_spill] sm:$0xff] %v6463_v35 }
 0x291   :  { %v1465_v39 = vmul.f32 %v4746_v38, %v4744_v36  ;;  %v6469_v36 = vld [vmem:[%s8181_s2 + $0xcc] ss:$16 sps:$4 sm:$0xff]   ;;  %v6475_v38 = vld [vmem:[%s8181_s2 + $0xc0] ss:$16 sps:$4 sm:$0xff]  }
 0x292   :  { %8569 = vst [vmem:[#allocation16_spill] sm:$0xff] %v6469_v36  ;;  %8570 = vst [vmem:[#allocation17_spill] sm:$0xff] %v6475_v38 }
 0x293   :  { %v6276_v40 = vpack.c.bf16 %v1465_v39, %v1464_v31  ;;  %v6481_v31 = vld [vmem:[%s8181_s2 + $0xc8] ss:$16 sps:$4 sm:$0xff]   ;;  %v6487_v39 = vld [vmem:[%s8181_s2 + $0xe4] ss:$16 sps:$4 sm:$0xff]  }
 0x294   :  { %8571 = vst [vmem:[#allocation18_spill] sm:$0xff] %v6481_v31  ;;  %8572 = vst [vmem:[#allocation19_spill] sm:$0xff] %v6487_v39 }
 0x295   :  { %1500 = vmatmul.mubr.bf16.vlgmr.msra.gmra.mrb[28].mxu0 %v6276_v40  ;;  %1543 = vmatmul.mubr.bf16.vlgmr.msra.gmra.mrb[44].mxu1 %v6276_v40 }
 0x296   :  { %1554 = vmatpush1.bf16.msra.mxu0 %v5968_v1  ;;  %1597 = vmatpush1.bf16.msra.mxu1 %v5973_v54  ;;  %v8545_v1 = vld [vmem:[#allocation37_spill] sm:$0xff]  ;;  %v8546_v54 = vld [vmem:[#allocation38_spill] sm:$0xff] }
 0x297   :  { %1555 = vmatprep.subr.bf16.mxu0 %v5980_v13  ;;  %1598 = vmatprep.subr.bf16.mxu1 %v5985_v23  ;;  %v8547_v13 = vld [vmem:[#allocation39_spill] sm:$0xff]  ;;  %v8548_v23 = vld [vmem:[#allocation40_spill] sm:$0xff] }
 0x298   :  { %1585 = vmatprep.mubr.bf16.mxu0 %v8494_v33  ;;  %1628 = vmatprep.mubr.bf16.mxu1 %v8494_v33 }
 0x29a   :  { %1556 = vmatpush1.bf16.msra.mxu0 %v5994_v20  ;;  %1599 = vmatpush1.bf16.msra.mxu1 %v5999_v12  ;;  %v8550_v20 = vld [vmem:[#allocation42_spill] sm:$0xff]  ;;  %v8551_v12 = vld [vmem:[#allocation43_spill] sm:$0xff] }
 0x29b   :  { %1557 = vmatprep.subr.bf16.mxu0 %v6006_v19  ;;  %1600 = vmatprep.subr.bf16.mxu1 %v6011_v11  ;;  %v8552_v19 = vld [vmem:[#allocation44_spill] sm:$0xff]  ;;  %v8553_v11 = vld [vmem:[#allocation45_spill] sm:$0xff] }
 0x29e   :  { %1558 = vmatpush1.bf16.msra.mxu0 %v6020_v53  ;;  %1601 = vmatpush1.bf16.msra.mxu1 %v8544_v57  ;;  %v8554_v53 = vld [vmem:[#allocation46_spill] sm:$0xff]  ;;  %v6493_v57 = vld [vmem:[%s8181_s2 + $0xec] ss:$16 sps:$4 sm:$0xff]  }
 0x29f   :  { %1559 = vmatprep.subr.bf16.mxu0 %v8545_v1  ;;  %1602 = vmatprep.subr.bf16.mxu1 %v8546_v54  ;;  %8573 = vst [vmem:[#allocation20_spill] sm:$0xff] %v6493_v57  ;;  %v6499_v1 = vld [vmem:[%s8181_s2 + $0xe0] ss:$16 sps:$4 sm:$0xff]   ;;  %v6505_v54 = vld [vmem:[%s8181_s2 + $0xe8] ss:$16 sps:$4 sm:$0xff]  }
 0x2a0   :  { %8574 = vst [vmem:[#allocation21_spill] sm:$0xff] %v6499_v1  ;;  %8575 = vst [vmem:[#allocation22_spill] sm:$0xff] %v6505_v54 }
 0x2a2   :  { %1560 = vmatpush1.bf16.msra.mxu0 %v8547_v13  ;;  %1603 = vmatpush1.bf16.msra.mxu1 %v8548_v23  ;;  %v6511_v13 = vld [vmem:[%s8182_s4 + $0x4] ss:$16 sps:$4 sm:$0xff]   ;;  %v6517_v23 = vld [vmem:[%s8182_s4 + $0xc] ss:$16 sps:$4 sm:$0xff]  }
 0x2a3   :  { %1561 = vmatprep.subr.bf16.mxu0 %v8549_v41  ;;  %1604 = vmatprep.subr.bf16.mxu1 %v8550_v20  ;;  %8576 = vst [vmem:[#allocation23_spill] sm:$0xff] %v6511_v13  ;;  %8577 = vst [vmem:[#allocation24_spill] sm:$0xff] %v6517_v23  ;;  %v6525_v41 = vld [vmem:[%s8182_s4] ss:$16 sps:$4 sm:$0xff]   ;;  %v6531_v20 = vld [vmem:[%s8182_s4 + $0x8] ss:$16 sps:$4 sm:$0xff]  }
 0x2a4   :  { %8578 = vst [vmem:[#allocation33_spill] sm:$0xff] %v6525_v41  ;;  %8579 = vst [vmem:[#allocation34_spill] sm:$0xff] %v6531_v20 }
 0x2a6   :  { %1562 = vmatpush1.bf16.msra.mxu0 %v8551_v12  ;;  %1605 = vmatpush1.bf16.msra.mxu1 %v8552_v19  ;;  %v6537_v12 = vld [vmem:[%s8182_s4 + $0x24] ss:$16 sps:$4 sm:$0xff]   ;;  %v6551_v19 = vld [vmem:[%s8182_s4 + $0x20] ss:$16 sps:$4 sm:$0xff]  }
 0x2a7   :  { %1563 = vmatprep.subr.bf16.mxu0 %v8553_v11  ;;  %1606 = vmatprep.subr.bf16.mxu1 %v8554_v53  ;;  %8580 = vst [vmem:[#allocation35_spill] sm:$0xff] %v6537_v12  ;;  %8582 = vst [vmem:[#allocation37_spill] sm:$0xff] %v6551_v19  ;;  %v6557_v11 = vld [vmem:[%s8182_s4 + $0x28] ss:$16 sps:$4 sm:$0xff]   ;;  %v6563_v53 = vld [vmem:[%s8182_s4 + $0x44] ss:$16 sps:$4 sm:$0xff]  }
 0x2a8   :  { %8583 = vst [vmem:[#allocation38_spill] sm:$0xff] %v6557_v11  ;;  %8584 = vst [vmem:[#allocation39_spill] sm:$0xff] %v6563_v53 }
 0x2aa   :  { %1564 = vmatpush1.bf16.msra.mxu0 %v8555_v42  ;;  %1607 = vmatpush1.bf16.msra.mxu1 %v8556_v45 }
 0x2ab   :  { %1565 = vmatprep.subr.bf16.mxu0 %v8557_v46  ;;  %1608 = vmatprep.subr.bf16.mxu1 %v8558_v47 }
 0x2ae   :  { %1566 = vmatpush1.bf16.msra.mxu0 %v6116_v9  ;;  %1609 = vmatpush1.bf16.msra.mxu1 %v6121_v48 }
 0x2af   :  { %1567 = vmatprep.subr.bf16.mxu0 %v6128_v44  ;;  %1610 = vmatprep.subr.bf16.mxu1 %v6133_v10 }
 0x2b2   :  { %1568 = vmatpush1.bf16.msra.mxu0 %v6140_v27  ;;  %1611 = vmatpush1.bf16.msra.mxu1 %v6145_v24 }
 0x2b3   :  { %1696 = vmatprep.subr.bf16.mxu0 %v6315_v49  ;;  %1739 = vmatprep.subr.bf16.mxu1 %v6321_v50 }
 0x2b5   :  { %1586 = vmatmul.mubr.bf16.vlgmr.msra.gmra.mrb[28].mxu0 %v6266_v59  ;;  %1629 = vmatmul.mubr.bf16.vlgmr.msra.gmra.mrb[44].mxu1 %v6266_v59  ;;  %v6347_v59 = vld [vmem:[%s8181_s2 + $0x2c] ss:$16 sps:$4 sm:$0xff]  }
 0x2b6   :  { %1697 = vmatpush1.bf16.msra.mxu0 %v6329_v52  ;;  %1740 = vmatpush1.bf16.msra.mxu1 %v6335_v56 }
 0x2b7   :  { %1698 = vmatprep.subr.bf16.mxu0 %v6341_v58  ;;  %1741 = vmatprep.subr.bf16.mxu1 %v6347_v59 }
 0x2b8   :  { %1728 = vmatprep.mubr.bf16.mxu0 %v8494_v33  ;;  %1771 = vmatprep.mubr.bf16.mxu1 %v8494_v33 }
 0x2ba   :  { %1699 = vmatpush1.bf16.msra.mxu0 %v6355_v60  ;;  %1742 = vmatpush1.bf16.msra.mxu1 %v6361_v61 }
 0x2bb   :  { %1700 = vmatprep.subr.bf16.mxu0 %v6367_v62  ;;  %1743 = vmatprep.subr.bf16.mxu1 %v6373_v2 }
 0x2be   :  { %1701 = vmatpush1.bf16.msra.mxu0 %v6379_v3  ;;  %1744 = vmatpush1.bf16.msra.mxu1 %v6385_v4 }
 0x2bf   :  { %1702 = vmatprep.subr.bf16.mxu0 %v6391_v5  ;;  %1745 = vmatprep.subr.bf16.mxu1 %v6397_v8 }
 0x2c2   :  { %1703 = vmatpush1.bf16.msra.mxu0 %v6403_v43  ;;  %1746 = vmatpush1.bf16.msra.mxu1 %v6409_v15 }
 0x2c3   :  { %1704 = vmatprep.subr.bf16.mxu0 %v6415_v16  ;;  %1747 = vmatprep.subr.bf16.mxu1 %v6421_v17 }
 0x2c6   :  { %1705 = vmatpush1.bf16.msra.mxu0 %v6427_v21  ;;  %1748 = vmatpush1.bf16.msra.mxu1 %v6433_v22 }
 0x2c7   :  { %1706 = vmatprep.subr.bf16.mxu0 %v6439_v26  ;;  %1749 = vmatprep.subr.bf16.mxu1 %v6445_v29 }
 0x2ca   :  { %1707 = vmatpush1.bf16.msra.mxu0 %v6451_v30  ;;  %1750 = vmatpush1.bf16.msra.mxu1 %v6457_v37 }
 0x2cb   :  { %1708 = vmatprep.subr.bf16.mxu0 %v6463_v35  ;;  %1751 = vmatprep.subr.bf16.mxu1 %v6469_v36 }
 0x2ce   :  { %1709 = vmatpush1.bf16.msra.mxu0 %v6475_v38  ;;  %1752 = vmatpush1.bf16.msra.mxu1 %v6481_v31 }
 0x2cf   :  { %1710 = vmatprep.subr.bf16.mxu0 %v6487_v39  ;;  %1753 = vmatprep.subr.bf16.mxu1 %v6493_v57 }
 0x2d2   :  { %1711 = vmatpush1.bf16.msra.mxu0 %v6499_v1  ;;  %1754 = vmatpush1.bf16.msra.mxu1 %v6505_v54 }
 0x2d3   :  { %1839 = vmatprep.subr.bf16.mxu0 %v6511_v13  ;;  %1882 = vmatprep.subr.bf16.mxu1 %v6517_v23 }
 0x2d5   :  { %1729 = vmatmul.mubr.bf16.vlgmr.msra.gmra.mrb[8].mxu0 %v6276_v40  ;;  %1772 = vmatmul.mubr.bf16.vlgmr.msra.gmra.mrb[16].mxu1 %v6276_v40  ;;  %v6543_v40 = vld [vmem:[%s8182_s4 + $0x2c] ss:$16 sps:$4 sm:$0xff]  }
 0x2d6   :  { %1840 = vmatpush1.bf16.msra.mxu0 %v6525_v41  ;;  %1883 = vmatpush1.bf16.msra.mxu1 %v6531_v20  ;;  %8581 = vst [vmem:[#allocation36_spill] sm:$0xff] %v6543_v40 }
 0x2d7   :  { %1841 = vmatprep.subr.bf16.mxu0 %v6537_v12  ;;  %1884 = vmatprep.subr.bf16.mxu1 %v6543_v40  ;;  %v6569_v40 = vld [vmem:[%s8182_s4 + $0x4c] ss:$16 sps:$4 sm:$0xff]  }
 0x2d8   :  { %1871 = vmatprep.mubr.bf16.mxu0 %v8494_v33  ;;  %1914 = vmatprep.mubr.bf16.mxu1 %v8494_v33  ;;  %8585 = vst [vmem:[#allocation40_spill] sm:$0xff] %v6569_v40 }
 0x2da   :  { %1842 = vmatpush1.bf16.msra.mxu0 %v6551_v19  ;;  %1885 = vmatpush1.bf16.msra.mxu1 %v6557_v11  ;;  %v6575_v19 = vld [vmem:[%s8182_s4 + $0x40] ss:$16 sps:$4 sm:$0xff]   ;;  %v6581_v11 = vld [vmem:[%s8182_s4 + $0x48] ss:$16 sps:$4 sm:$0xff]  }
 0x2db   :  { %1843 = vmatprep.subr.bf16.mxu0 %v6563_v53  ;;  %1886 = vmatprep.subr.bf16.mxu1 %v6569_v40  ;;  %8586 = vst [vmem:[#allocation41_spill] sm:$0xff] %v6575_v19  ;;  %8587 = vst [vmem:[#allocation42_spill] sm:$0xff] %v6581_v11  ;;  %v6587_v53 = vld [vmem:[%s8182_s4 + $0x64] ss:$16 sps:$4 sm:$0xff]   ;;  %v6593_v40 = vld [vmem:[%s8182_s4 + $0x6c] ss:$16 sps:$4 sm:$0xff]  }
 0x2dc   :  { %8588 = vst [vmem:[#allocation43_spill] sm:$0xff] %v6587_v53  ;;  %8589 = vst [vmem:[#allocation44_spill] sm:$0xff] %v6593_v40 }
 0x2de   :  { %1844 = vmatpush1.bf16.msra.mxu0 %v6575_v19  ;;  %1887 = vmatpush1.bf16.msra.mxu1 %v6581_v11  ;;  %v6599_v19 = vld [vmem:[%s8182_s4 + $0x60] ss:$16 sps:$4 sm:$0xff]   ;;  %v6605_v11 = vld [vmem:[%s8182_s4 + $0x68] ss:$16 sps:$4 sm:$0xff]  }
 0x2df   :  { %1845 = vmatprep.subr.bf16.mxu0 %v6587_v53  ;;  %1888 = vmatprep.subr.bf16.mxu1 %v6593_v40  ;;  %8590 = vst [vmem:[#allocation45_spill] sm:$0xff] %v6599_v19  ;;  %8591 = vst [vmem:[#allocation46_spill] sm:$0xff] %v6605_v11  ;;  %v6611_v53 = vld [vmem:[%s8182_s4 + $0x84] ss:$16 sps:$4 sm:$0xff]   ;;  %v6617_v40 = vld [vmem:[%s8182_s4 + $0x8c] ss:$16 sps:$4 sm:$0xff]  }
 0x2e0   :  { %8592 = vst [vmem:[#allocation47_spill] sm:$0xff] %v6611_v53  ;;  %8593 = vst [vmem:[#allocation48_spill] sm:$0xff] %v6617_v40 }
 0x2e2   :  { %1846 = vmatpush1.bf16.msra.mxu0 %v6599_v19  ;;  %1889 = vmatpush1.bf16.msra.mxu1 %v6605_v11  ;;  %v6623_v19 = vld [vmem:[%s8182_s4 + $0x80] ss:$16 sps:$4 sm:$0xff]   ;;  %v6629_v11 = vld [vmem:[%s8182_s4 + $0x88] ss:$16 sps:$4 sm:$0xff]  }
 0x2e3   :  { %1847 = vmatprep.subr.bf16.mxu0 %v6611_v53  ;;  %1890 = vmatprep.subr.bf16.mxu1 %v6617_v40  ;;  %8594 = vst [vmem:[#allocation49_spill] sm:$0xff] %v6623_v19  ;;  %8595 = vst [vmem:[#allocation50_spill] sm:$0xff] %v6629_v11  ;;  %v6635_v53 = vld [vmem:[%s8182_s4 + $0xa4] ss:$16 sps:$4 sm:$0xff]   ;;  %v6641_v40 = vld [vmem:[%s8182_s4 + $0xac] ss:$16 sps:$4 sm:$0xff]  }
 0x2e4   :  { %8596 = vst [vmem:[#allocation51_spill] sm:$0xff] %v6635_v53  ;;  %8597 = vst [vmem:[#allocation52_spill] sm:$0xff] %v6641_v40 }
 0x2e6   :  { %1848 = vmatpush1.bf16.msra.mxu0 %v6623_v19  ;;  %1891 = vmatpush1.bf16.msra.mxu1 %v6629_v11  ;;  %v6647_v19 = vld [vmem:[%s8182_s4 + $0xa0] ss:$16 sps:$4 sm:$0xff]   ;;  %v6653_v11 = vld [vmem:[%s8182_s4 + $0xa8] ss:$16 sps:$4 sm:$0xff]  }
 0x2e7   :  { %1849 = vmatprep.subr.bf16.mxu0 %v6635_v53  ;;  %1892 = vmatprep.subr.bf16.mxu1 %v6641_v40  ;;  %8598 = vst [vmem:[#allocation53_spill] sm:$0xff] %v6647_v19  ;;  %8599 = vst [vmem:[#allocation54_spill] sm:$0xff] %v6653_v11  ;;  %v6659_v53 = vld [vmem:[%s8182_s4 + $0xc4] ss:$16 sps:$4 sm:$0xff]   ;;  %v6665_v40 = vld [vmem:[%s8182_s4 + $0xcc] ss:$16 sps:$4 sm:$0xff]  }
 0x2e8   :  { %8600 = vst [vmem:[#allocation55_spill] sm:$0xff] %v6659_v53  ;;  %8601 = vst [vmem:[#allocation56_spill] sm:$0xff] %v6665_v40 }
 0x2ea   :  { %1850 = vmatpush1.bf16.msra.mxu0 %v6647_v19  ;;  %1893 = vmatpush1.bf16.msra.mxu1 %v6653_v11  ;;  %v6671_v19 = vld [vmem:[%s8182_s4 + $0xc0] ss:$16 sps:$4 sm:$0xff]   ;;  %v6677_v11 = vld [vmem:[%s8182_s4 + $0xc8] ss:$16 sps:$4 sm:$0xff]  }
 0x2eb   :  { %1851 = vmatprep.subr.bf16.mxu0 %v6659_v53  ;;  %1894 = vmatprep.subr.bf16.mxu1 %v6665_v40  ;;  %8602 = vst [vmem:[#allocation57_spill] sm:$0xff] %v6671_v19  ;;  %8603 = vst [vmem:[#allocation58_spill] sm:$0xff] %v6677_v11  ;;  %v6683_v53 = vld [vmem:[%s8182_s4 + $0xe4] ss:$16 sps:$4 sm:$0xff]   ;;  %v6689_v40 = vld [vmem:[%s8182_s4 + $0xec] ss:$16 sps:$4 sm:$0xff]  }
 0x2ec   :  { %8604 = vst [vmem:[#allocation59_spill] sm:$0xff] %v6683_v53  ;;  %8605 = vst [vmem:[#allocation60_spill] sm:$0xff] %v6689_v40 }
 0x2ee   :  { %1852 = vmatpush1.bf16.msra.mxu0 %v6671_v19  ;;  %1895 = vmatpush1.bf16.msra.mxu1 %v6677_v11  ;;  %v6695_v19 = vld [vmem:[%s8182_s4 + $0xe0] ss:$16 sps:$4 sm:$0xff]   ;;  %v6701_v11 = vld [vmem:[%s8182_s4 + $0xe8] ss:$16 sps:$4 sm:$0xff]  }
 0x2ef   :  { %1853 = vmatprep.subr.bf16.mxu0 %v6683_v53  ;;  %1896 = vmatprep.subr.bf16.mxu1 %v6689_v40  ;;  %8606 = vst [vmem:[#allocation61_spill] sm:$0xff] %v6695_v19  ;;  %8607 = vst [vmem:[#allocation62_spill] sm:$0xff] %v6701_v11  ;;  %v6707_v53 = vld [vmem:[%s8183_s5 + $0x4] ss:$16 sps:$4 sm:$0xff]   ;;  %v6713_v40 = vld [vmem:[%s8183_s5 + $0xc] ss:$16 sps:$4 sm:$0xff]  }
 0x2f0   :  { %8608 = vst [vmem:[#allocation63_spill] sm:$0xff] %v6707_v53  ;;  %8609 = vst [vmem:[#allocation64_spill] sm:$0xff] %v6713_v40 }
 0x2f2   :  { %1854 = vmatpush1.bf16.msra.mxu0 %v6695_v19  ;;  %1897 = vmatpush1.bf16.msra.mxu1 %v6701_v11 }
 0x2f3   :  { %1925 = vmatprep.subr.bf16.mxu0 %v6707_v53  ;;  %1968 = vmatprep.subr.bf16.mxu1 %v6713_v40 }
 0x388   :  { %v1587_v19 = vpop.f32.mrb[28].mxu0  ;;  %v1630_v12 = vpop.f32.mrb[44].mxu1 }
 0x389   :  { %v1639_v20 = vadd.f32 %v1587_v19, %v6230_v51  ;;  %v1589_v41 = vpop.f32.mrb[29].mxu0  ;;  %v1632_v11 = vpop.f32.mrb[45].mxu1  ;;  %v1641_v19 = vadd.f32 %v1630_v12, %v6241_v7 }
 0x38a   :  { %v1640_v23 = vadd.f32 %v1589_v41, %v6234_v55  ;;  %v1591_v13 = vpop.f32.mrb[30].mxu0  ;;  %v1634_v54 = vpop.f32.mrb[46].mxu1  ;;  %v1642_v41 = vadd.f32 %v1632_v11, %v6246_v18 }
 0x38b   :  { %v4180_v1 = vmul.f32 -1.442695, %v1639_v20  ;;  %v1643_v53 = vadd.f32 %v1591_v13, %v6230_v51  ;;  %v1593_v57 = vpop.f32.mrb[31].mxu0  ;;  %v1636_v39 = vpop.f32.mrb[47].mxu1  ;;  %v1645_v35 = vadd.f32 %v1634_v54, %v6241_v7  ;;  %v4182_v20 = vmul.f32 -1.442695, %v1641_v19 }
 0x38c   :  { %v4181_v31 = vmul.f32 -1.442695, %v1640_v23  ;;  %v1644_v38 = vadd.f32 %v1593_v57, %v6234_v55  ;;  %v1646_v23 = vadd.f32 %v1636_v39, %v6246_v18 }
 0x38d   :  { %4747 = vpow2.f32 %v4180_v1  ;;  %v4183_v40 = vmul.f32 -1.442695, %v1643_v53  ;;  %v4185_v37 = vmul.f32 -1.442695, %v1645_v35 }
 0x38e   :  { %v4184_v36 = vmul.f32 -1.442695, %v1644_v38  ;;  %4749 = vpow2.f32 %v4181_v31 }
 0x38f   :  { %4751 = vpow2.f32 %v4183_v40 }
 0x390   :  { %4753 = vpow2.f32 %v4184_v36 }
 0x391   :  { %4755 = vtanh.f32 %v1642_v41 }
 0x392   :  { %4757 = vpow2.f32 %v4182_v20 }
 0x393   :  { %4759 = vpow2.f32 %v4185_v37 }
 0x397   :  { %v4748_v13 = vpop.eup %4747 }
 0x398   :  { %v1665_v51 = vadd.f32 1.0, %v4748_v13  ;;  %v4750_v57 = vpop.eup %4749 }
 0x399   :  { %v4752_v38 = vpop.eup %4751  ;;  %v1666_v31 = vadd.f32 1.0, %v4750_v57 }
 0x39a   :  { %4761 = vrcp.f32 %v1665_v51  ;;  %v1668_v1 = vadd.f32 1.0, %v4752_v38  ;;  %v4754_v12 = vpop.eup %4753 }
 0x39b   :  { %4763 = vtanh.f32 %v1646_v23  ;;  %v1669_v36 = vadd.f32 1.0, %v4754_v12  ;;  %v4756_v54 = vpop.eup %4755 }
 0x39c   :  { %4765 = vrcp.f32 %v1666_v31  ;;  %v4758_v35 = vpop.eup %4757 }
 0x39d   :  { %4767 = vrcp.f32 %v1668_v1  ;;  %v4760_v40 = vpop.eup %4759  ;;  %v1667_v41 = vadd.f32 1.0, %v4758_v35 }
 0x39e   :  { %4769 = vrcp.f32 %v1669_v36  ;;  %v1670_v51 = vadd.f32 1.0, %v4760_v40 }
 0x39f   :  { %4771 = vrcp.f32 %v1667_v41 }
 0x3a0   :  { %4773 = vrcp.f32 %v1670_v51 }
 0x3a4   :  { %v4762_v11 = vpop.eup %4761 }
 0x3a5   :  { %v4764_v53 = vpop.eup %4763  ;;  %v1687_v39 = vmul.f32 %v4762_v11, %v4756_v54 }
 0x3a6   :  { %v4766_v19 = vpop.eup %4765 }
 0x3a7   :  { %v4768_v20 = vpop.eup %4767  ;;  %v1685_v37 = vmul.f32 %v4766_v19, %v6252_v63 }
 0x3a8   :  { %v1688_v13 = vmul.f32 %v4768_v20, %v4764_v53  ;;  %v1730_v57 = vpop.f32.mrb[8].mxu0  ;;  %v1773_v23 = vpop.f32.mrb[16].mxu1 }
 0x3a9   :  { %v4770_v38 = vpop.eup %4769  ;;  %v6725_v31 = vadd.f32 %v1687_v39, %v1685_v37  ;;  %v4306_v1 = vadd.f32 %v1730_v57, %v8541_v0  ;;  %v1732_v12 = vpop.f32.mrb[9].mxu0  ;;  %v4346_v51 = vadd.f32 %v1773_v23, %v8543_v32 }
 0x3aa   :  { %v1775_v36 = vpop.f32.mrb[17].mxu1  ;;  %v1686_v18 = vmul.f32 %v4770_v38, %v6258_v25  ;;  %v4307_v54 = vadd.f32 %v1732_v12, %v8542_v6  ;;  %v1734_v35 = vpop.f32.mrb[10].mxu0 }
 0x3ab   :  { %v1777_v11 = vpop.f32.mrb[18].mxu1  ;;  %v4186_v63 = vmul.f32 -1.442695, %v4306_v1  ;;  %v4308_v40 = vadd.f32 %v1734_v35, %v8541_v0  ;;  %v1736_v53 = vpop.f32.mrb[11].mxu0  ;;  %4775 = vtanh.f32 %v6725_v31  ;;  %v4347_v1 = vadd.f32 %v1775_v36, %v5953_v14 }
 0x3ac   :  { %v1779_v19 = vpop.f32.mrb[19].mxu1  ;;  %v6732_v39 = vadd.f32 %v1688_v13, %v1686_v18  ;;  %v4187_v20 = vmul.f32 -1.442695, %v4307_v54  ;;  %v4309_v41 = vadd.f32 %v1736_v53, %v8542_v6  ;;  %v4348_v57 = vadd.f32 %v1777_v11, %v8543_v32  ;;  %v4772_v38 = vpop.eup %4771 }
 0x3ad   :  { %4777 = vpow2.f32 %v4186_v63  ;;  %v4189_v37 = vmul.f32 -1.442695, %v4308_v40  ;;  %v4774_v18 = vpop.eup %4773  ;;  %v4188_v13 = vmul.f32 -1.442695, %v4346_v51  ;;  %v4349_v53 = vadd.f32 %v1779_v19, %v5953_v14 }
 0x3ae   :  { %4779 = vtanh.f32 %v6732_v39  ;;  %v4190_v25 = vmul.f32 -1.442695, %v4309_v41  ;;  %v4191_v35 = vmul.f32 -1.442695, %v4348_v57 }
 0x3af   :  { %4781 = vpow2.f32 %v4187_v20 }
 0x3b0   :  { %4783 = vpow2.f32 %v4189_v37 }
 0x3b1   :  { %4785 = vpow2.f32 %v4190_v25 }
 0x3b2   :  { %4787 = vtanh.f32 %v4347_v1 }
 0x3b3   :  { %4789 = vpow2.f32 %v4188_v13 }
 0x3b5   :  { %v4776_v12 = vpop.eup %4775 }
 0x3b6   :  { %v1693_v20 = vmul.f32 %v4776_v12, %v4772_v38 }
 0x3b7   :  { %v4778_v54 = vpop.eup %4777 }
 0x3b8   :  { %v4780_v63 = vpop.eup %4779  ;;  %v1808_v40 = vadd.f32 1.0, %v4778_v54 }
 0x3b9   :  { %v1694_v23 = vmul.f32 %v4780_v63, %v4774_v18  ;;  %v4782_v37 = vpop.eup %4781 }
 0x3ba   :  { %4791 = vrcp.f32 %v1808_v40  ;;  %v4784_v11 = vpop.eup %4783  ;;  %v1809_v41 = vadd.f32 1.0, %v4782_v37 }
 0x3bb   :  { %4793 = vpow2.f32 %v4191_v35  ;;  %v6740_v25 = vpack.c.bf16 %v1694_v23, %v1693_v20  ;;  %v1811_v36 = vadd.f32 1.0, %v4784_v11  ;;  %v4786_v51 = vpop.eup %4785 }
 0x3bc   :  { %4795 = vtanh.f32 %v4349_v53  ;;  %v1812_v57 = vadd.f32 1.0, %v4786_v51  ;;  %v4788_v1 = vpop.eup %4787 }
 0x3bd   :  { %4797 = vrcp.f32 %v1809_v41  ;;  %v4790_v54 = vpop.eup %4789 }
 0x3be   :  { %4799 = vrcp.f32 %v1811_v36  ;;  %v1810_v40 = vadd.f32 1.0, %v4790_v54 }
 0x3bf   :  { %4801 = vrcp.f32 %v1812_v57 }
 0x3c0   :  { %4803 = vrcp.f32 %v1810_v40  ;;  %v6795_v40 = vld [vmem:[%s8183_s5 + $0x44] ss:$16 sps:$4 sm:$0xff]  }
 0x3c4   :  { %v4792_v19 = vpop.eup %4791 }
 0x3c5   :  { %v4794_v13 = vpop.eup %4793  ;;  %v1830_v38 = vmul.f32 %v4792_v19, %v4788_v1 }
 0x3c6   :  { %v4796_v18 = vpop.eup %4795  ;;  %v1813_v53 = vadd.f32 1.0, %v4794_v13  ;;  %v6763_v13 = vld [vmem:[%s8183_s5 + $0x8] ss:$16 sps:$4 sm:$0xff]  }
 0x3c7   :  { %v4798_v12 = vpop.eup %4797 }
 0x3c8   :  { %v4800_v63 = vpop.eup %4799  ;;  %v1828_v35 = vmul.f32 %v4798_v12, %v6269_v28  ;;  %v6783_v12 = vld [vmem:[%s8183_s5 + $0x20] ss:$16 sps:$4 sm:$0xff]  }
 0x3c9   :  { %v1831_v20 = vmul.f32 %v4800_v63, %v4796_v18  ;;  %v4802_v23 = vpop.eup %4801  ;;  %v6775_v18 = vld [vmem:[%s8183_s5 + $0x2c] ss:$16 sps:$4 sm:$0xff]   ;;  %v6789_v63 = vld [vmem:[%s8183_s5 + $0x28] ss:$16 sps:$4 sm:$0xff]  }
 0x3ca   :  { %v6743_v37 = vadd.f32 %v1830_v38, %v1828_v35  ;;  %v1829_v11 = vmul.f32 %v4802_v23, %v6273_v34  ;;  %v4804_v36 = vpop.eup %4803  ;;  %v6757_v34 = vld [vmem:[%s8183_s5] ss:$16 sps:$4 sm:$0xff]   ;;  %v6769_v38 = vld [vmem:[%s8183_s5 + $0x24] ss:$16 sps:$4 sm:$0xff]   ;;  %v6801_v35 = vld [vmem:[%s8183_s5 + $0x4c] ss:$16 sps:$4 sm:$0xff]  }
 0x3cb   :  { %v6813_v23 = vld [vmem:[%s8183_s5 + $0x48] ss:$16 sps:$4 sm:$0xff]  }
 0x3cc   :  { %4805 = vtanh.f32 %v6743_v37  ;;  %v6747_v41 = vadd.f32 %v1831_v20, %v1829_v11  ;;  %v6807_v20 = vld [vmem:[%s8183_s5 + $0x40] ss:$16 sps:$4 sm:$0xff]   ;;  %v6825_v11 = vld [vmem:[%s8183_s5 + $0x6c] ss:$16 sps:$4 sm:$0xff]  }
 0x3cd   :  { %4807 = vrcp.f32 %v1813_v53  ;;  %v6819_v53 = vld [vmem:[%s8183_s5 + $0x64] ss:$16 sps:$4 sm:$0xff]  }
 0x3ce   :  { %4809 = vtanh.f32 %v6747_v41 }
 0x3d6   :  { %v4806_v51 = vpop.eup %4805 }
 0x3d7   :  { %v4808_v57 = vpop.eup %4807  ;;  %v1836_v28 = vmul.f32 %v4806_v51, %v4804_v36  ;;  %v6831_v36 = vld [vmem:[%s8183_s5 + $0x60] ss:$16 sps:$4 sm:$0xff]   ;;  %v6837_v51 = vld [vmem:[%s8183_s5 + $0x68] ss:$16 sps:$4 sm:$0xff]  }
 0x3d8   :  { %v4810_v1 = vpop.eup %4809 }
 0x3d9   :  { %v1837_v54 = vmul.f32 %v4810_v1, %v4808_v57  ;;  %v6843_v57 = vld [vmem:[%s8183_s5 + $0x84] ss:$16 sps:$4 sm:$0xff]   ;;  %v6849_v1 = vld [vmem:[%s8183_s5 + $0x8c] ss:$16 sps:$4 sm:$0xff]  }
 0x3da   :  { %8610 = vst [vmem:[#allocation65_spill] sm:$0xff] %v6843_v57  ;;  %8611 = vst [vmem:[#allocation66_spill] sm:$0xff] %v6849_v1 }
 0x3db   :  { %v6750_v19 = vpack.c.bf16 %v1837_v54, %v1836_v28  ;;  %v6855_v28 = vld [vmem:[%s8183_s5 + $0x80] ss:$16 sps:$4 sm:$0xff]   ;;  %v6861_v54 = vld [vmem:[%s8183_s5 + $0x88] ss:$16 sps:$4 sm:$0xff]  }
 0x3dd   :  { %1872 = vmatmul.mubr.bf16.vlgmr.msra.gmra.mrb[32].mxu0 %v6750_v19  ;;  %1915 = vmatmul.mubr.bf16.vlgmr.msra.gmra.mrb[48].mxu1 %v6750_v19 }
 0x3de   :  { %1926 = vmatpush1.bf16.msra.mxu0 %v6757_v34  ;;  %1969 = vmatpush1.bf16.msra.mxu1 %v6763_v13 }
 0x3df   :  { %1927 = vmatprep.subr.bf16.mxu0 %v6769_v38  ;;  %1970 = vmatprep.subr.bf16.mxu1 %v6775_v18 }
 0x3e0   :  { %1957 = vmatprep.mubr.bf16.mxu0 %v8494_v33  ;;  %2000 = vmatprep.mubr.bf16.mxu1 %v8494_v33 }
 0x3e2   :  { %1928 = vmatpush1.bf16.msra.mxu0 %v6783_v12  ;;  %1971 = vmatpush1.bf16.msra.mxu1 %v6789_v63 }
 0x3e3   :  { %1929 = vmatprep.subr.bf16.mxu0 %v6795_v40  ;;  %1972 = vmatprep.subr.bf16.mxu1 %v6801_v35 }
 0x3e6   :  { %1930 = vmatpush1.bf16.msra.mxu0 %v6807_v20  ;;  %1973 = vmatpush1.bf16.msra.mxu1 %v6813_v23 }
 0x3e7   :  { %1931 = vmatprep.subr.bf16.mxu0 %v6819_v53  ;;  %1974 = vmatprep.subr.bf16.mxu1 %v6825_v11 }
 0x3ea   :  { %1932 = vmatpush1.bf16.msra.mxu0 %v6831_v36  ;;  %1975 = vmatpush1.bf16.msra.mxu1 %v6837_v51 }
 0x3eb   :  { %1933 = vmatprep.subr.bf16.mxu0 %v6843_v57  ;;  %1976 = vmatprep.subr.bf16.mxu1 %v6849_v1  ;;  %v6867_v57 = vld [vmem:[%s8183_s5 + $0xa4] ss:$16 sps:$4 sm:$0xff]   ;;  %v6873_v1 = vld [vmem:[%s8183_s5 + $0xac] ss:$16 sps:$4 sm:$0xff]  }
 0x3ee   :  { %1934 = vmatpush1.bf16.msra.mxu0 %v6855_v28  ;;  %1977 = vmatpush1.bf16.msra.mxu1 %v6861_v54 }
 0x3ef   :  { %1935 = vmatprep.subr.bf16.mxu0 %v6867_v57  ;;  %1978 = vmatprep.subr.bf16.mxu1 %v6873_v1 }
 0x3f2   :  { %1936 = vmatpush1.bf16.msra.mxu0 %v8555_v42  ;;  %1979 = vmatpush1.bf16.msra.mxu1 %v8556_v45  ;;  %v8618_v42 = vld [vmem:[#allocation20_spill] sm:$0xff]  ;;  %v8619_v45 = vld [vmem:[#allocation21_spill] sm:$0xff] }
 0x3f3   :  { %1937 = vmatprep.subr.bf16.mxu0 %v8557_v46  ;;  %1980 = vmatprep.subr.bf16.mxu1 %v8558_v47  ;;  %v8620_v46 = vld [vmem:[#allocation22_spill] sm:$0xff]  ;;  %v8621_v47 = vld [vmem:[#allocation23_spill] sm:$0xff] }
 0x3f6   :  { %1938 = vmatpush1.bf16.msra.mxu0 %v6116_v9  ;;  %1981 = vmatpush1.bf16.msra.mxu1 %v6121_v48  ;;  %v8615_v9 = vld [vmem:[#allocation17_spill] sm:$0xff]  ;;  %v8616_v48 = vld [vmem:[#allocation18_spill] sm:$0xff] }
 0x3f7   :  { %1939 = vmatprep.subr.bf16.mxu0 %v6128_v44  ;;  %1982 = vmatprep.subr.bf16.mxu1 %v6133_v10  ;;  %v8612_v10 = vld [vmem:[#allocation14_spill] sm:$0xff]  ;;  %v8617_v44 = vld [vmem:[#allocation19_spill] sm:$0xff] }
 0x3fa   :  { %1940 = vmatpush1.bf16.msra.mxu0 %v6140_v27  ;;  %1983 = vmatpush1.bf16.msra.mxu1 %v6145_v24  ;;  %v8613_v27 = vld [vmem:[#allocation15_spill] sm:$0xff]  ;;  %v8614_v24 = vld [vmem:[#allocation16_spill] sm:$0xff] }
 0x3fb   :  { %2068 = vmatprep.subr.bf16.mxu0 %v6315_v49  ;;  %2111 = vmatprep.subr.bf16.mxu1 %v6321_v50 }
 0x3fd   :  { %1958 = vmatmul.mubr.bf16.vlgmr.msra.gmra.mrb[32].mxu0 %v6740_v25  ;;  %2001 = vmatmul.mubr.bf16.vlgmr.msra.gmra.mrb[48].mxu1 %v6740_v25  ;;  %v8622_v25 = vld [vmem:[#allocation24_spill] sm:$0xff] }
 0x3fe   :  { %2069 = vmatpush1.bf16.msra.mxu0 %v6329_v52  ;;  %2112 = vmatpush1.bf16.msra.mxu1 %v6335_v56 }
 0x3ff   :  { %2070 = vmatprep.subr.bf16.mxu0 %v6341_v58  ;;  %2113 = vmatprep.subr.bf16.mxu1 %v6347_v59 }
 0x400   :  { %2100 = vmatprep.mubr.bf16.mxu0 %v8494_v33  ;;  %2143 = vmatprep.mubr.bf16.mxu1 %v8494_v33 }
 0x402   :  { %2071 = vmatpush1.bf16.msra.mxu0 %v6355_v60  ;;  %2114 = vmatpush1.bf16.msra.mxu1 %v6361_v61 }
 0x403   :  { %2072 = vmatprep.subr.bf16.mxu0 %v6367_v62  ;;  %2115 = vmatprep.subr.bf16.mxu1 %v6373_v2 }
 0x406   :  { %2073 = vmatpush1.bf16.msra.mxu0 %v6379_v3  ;;  %2116 = vmatpush1.bf16.msra.mxu1 %v6385_v4 }
 0x407   :  { %2074 = vmatprep.subr.bf16.mxu0 %v6391_v5  ;;  %2117 = vmatprep.subr.bf16.mxu1 %v6397_v8 }
 0x40a   :  { %2075 = vmatpush1.bf16.msra.mxu0 %v6403_v43  ;;  %2118 = vmatpush1.bf16.msra.mxu1 %v6409_v15 }
 0x40b   :  { %2076 = vmatprep.subr.bf16.mxu0 %v6415_v16  ;;  %2119 = vmatprep.subr.bf16.mxu1 %v6421_v17 }
 0x40e   :  { %2077 = vmatpush1.bf16.msra.mxu0 %v6427_v21  ;;  %2120 = vmatpush1.bf16.msra.mxu1 %v6433_v22 }
 0x40f   :  { %2078 = vmatprep.subr.bf16.mxu0 %v6439_v26  ;;  %2121 = vmatprep.subr.bf16.mxu1 %v6445_v29 }
 0x412   :  { %2079 = vmatpush1.bf16.msra.mxu0 %v6451_v30  ;;  %2122 = vmatpush1.bf16.msra.mxu1 %v8612_v10  ;;  %v8655_v10 = vld [vmem:[#allocation2_spill] sm:$0xff] }
 0x413   :  { %2080 = vmatprep.subr.bf16.mxu0 %v8613_v27  ;;  %2123 = vmatprep.subr.bf16.mxu1 %v8614_v24  ;;  %v8623_v24 = vld [vmem:[#allocation33_spill] sm:$0xff]  ;;  %v8637_v27 = vld [vmem:[#allocation47_spill] sm:$0xff] }
 0x416   :  { %2081 = vmatpush1.bf16.msra.mxu0 %v8615_v9  ;;  %2124 = vmatpush1.bf16.msra.mxu1 %v8616_v48  ;;  %v8624_v9 = vld [vmem:[#allocation34_spill] sm:$0xff]  ;;  %v8625_v48 = vld [vmem:[#allocation35_spill] sm:$0xff] }
 0x417   :  { %2082 = vmatprep.subr.bf16.mxu0 %v8617_v44  ;;  %2125 = vmatprep.subr.bf16.mxu1 %v8618_v42  ;;  %v8626_v44 = vld [vmem:[#allocation36_spill] sm:$0xff]  ;;  %v8636_v42 = vld [vmem:[#allocation46_spill] sm:$0xff] }
 0x41a   :  { %2083 = vmatpush1.bf16.msra.mxu0 %v8619_v45  ;;  %2126 = vmatpush1.bf16.msra.mxu1 %v8620_v46  ;;  %v8627_v46 = vld [vmem:[#allocation37_spill] sm:$0xff]  ;;  %v8630_v45 = vld [vmem:[#allocation40_spill] sm:$0xff] }
 0x41b   :  { %2211 = vmatprep.subr.bf16.mxu0 %v8621_v47  ;;  %2254 = vmatprep.subr.bf16.mxu1 %v8622_v25  ;;  %v8628_v47 = vld [vmem:[#allocation38_spill] sm:$0xff]  ;;  %v8629_v25 = vld [vmem:[#allocation39_spill] sm:$0xff] }
 0x41d   :  { %2101 = vmatmul.mubr.bf16.vlgmr.msra.gmra.mrb[12].mxu0 %v6750_v19  ;;  %2144 = vmatmul.mubr.bf16.vlgmr.msra.gmra.mrb[20].mxu1 %v6750_v19  ;;  %v8631_v19 = vld [vmem:[#allocation41_spill] sm:$0xff] }
 0x41e   :  { %2212 = vmatpush1.bf16.msra.mxu0 %v8623_v24  ;;  %2255 = vmatpush1.bf16.msra.mxu1 %v8624_v9  ;;  %v8632_v24 = vld [vmem:[#allocation42_spill] sm:$0xff]  ;;  %v8633_v9 = vld [vmem:[#allocation43_spill] sm:$0xff] }
 0x41f   :  { %2213 = vmatprep.subr.bf16.mxu0 %v8625_v48  ;;  %2256 = vmatprep.subr.bf16.mxu1 %v8626_v44  ;;  %v8634_v48 = vld [vmem:[#allocation44_spill] sm:$0xff]  ;;  %v8635_v44 = vld [vmem:[#allocation45_spill] sm:$0xff] }
 0x420   :  { %2243 = vmatprep.mubr.bf16.mxu0 %v8494_v33  ;;  %2286 = vmatprep.mubr.bf16.mxu1 %v8494_v33 }
 0x422   :  { %2214 = vmatpush1.bf16.msra.mxu0 %v8627_v46  ;;  %2257 = vmatpush1.bf16.msra.mxu1 %v8628_v47  ;;  %v8638_v46 = vld [vmem:[#allocation48_spill] sm:$0xff]  ;;  %v8639_v47 = vld [vmem:[#allocation49_spill] sm:$0xff] }
 0x423   :  { %2215 = vmatprep.subr.bf16.mxu0 %v8629_v25  ;;  %2258 = vmatprep.subr.bf16.mxu1 %v8630_v45  ;;  %v8640_v25 = vld [vmem:[#allocation50_spill] sm:$0xff]  ;;  %v8641_v45 = vld [vmem:[#allocation51_spill] sm:$0xff] }
 0x426   :  { %2216 = vmatpush1.bf16.msra.mxu0 %v8631_v19  ;;  %2259 = vmatpush1.bf16.msra.mxu1 %v8632_v24  ;;  %v8642_v19 = vld [vmem:[#allocation52_spill] sm:$0xff]  ;;  %v8643_v24 = vld [vmem:[#allocation53_spill] sm:$0xff] }
 0x427   :  { %2217 = vmatprep.subr.bf16.mxu0 %v8633_v9  ;;  %2260 = vmatprep.subr.bf16.mxu1 %v8634_v48  ;;  %v8644_v9 = vld [vmem:[#allocation54_spill] sm:$0xff]  ;;  %v8645_v48 = vld [vmem:[#allocation55_spill] sm:$0xff] }
 0x42a   :  { %2218 = vmatpush1.bf16.msra.mxu0 %v8635_v44  ;;  %2261 = vmatpush1.bf16.msra.mxu1 %v8636_v42  ;;  %v8646_v44 = vld [vmem:[#allocation56_spill] sm:$0xff]  ;;  %v8647_v42 = vld [vmem:[#allocation57_spill] sm:$0xff] }
 0x42b   :  { %2219 = vmatprep.subr.bf16.mxu0 %v8637_v27  ;;  %2262 = vmatprep.subr.bf16.mxu1 %v8638_v46  ;;  %v8648_v27 = vld [vmem:[#allocation58_spill] sm:$0xff]  ;;  %v8649_v46 = vld [vmem:[#allocation59_spill] sm:$0xff] }
 0x42e   :  { %2220 = vmatpush1.bf16.msra.mxu0 %v8639_v47  ;;  %2263 = vmatpush1.bf16.msra.mxu1 %v8640_v25  ;;  %v8650_v47 = vld [vmem:[#allocation60_spill] sm:$0xff]  ;;  %v8651_v25 = vld [vmem:[#allocation61_spill] sm:$0xff] }
 0x42f   :  { %2221 = vmatprep.subr.bf16.mxu0 %v8641_v45  ;;  %2264 = vmatprep.subr.bf16.mxu1 %v8642_v19  ;;  %v8652_v45 = vld [vmem:[#allocation62_spill] sm:$0xff]  ;;  %v8653_v19 = vld [vmem:[#allocation63_spill] sm:$0xff] }
 0x432   :  { %2222 = vmatpush1.bf16.msra.mxu0 %v8643_v24  ;;  %2265 = vmatpush1.bf16.msra.mxu1 %v8644_v9  ;;  %v8654_v24 = vld [vmem:[#allocation64_spill] sm:$0xff] }
 0x433   :  { %2223 = vmatprep.subr.bf16.mxu0 %v8645_v48  ;;  %2266 = vmatprep.subr.bf16.mxu1 %v8646_v44 }
 0x436   :  { %2224 = vmatpush1.bf16.msra.mxu0 %v8647_v42  ;;  %2267 = vmatpush1.bf16.msra.mxu1 %v8648_v27 }
 0x437   :  { %2225 = vmatprep.subr.bf16.mxu0 %v8649_v46  ;;  %2268 = vmatprep.subr.bf16.mxu1 %v8650_v47 }
 0x43a   :  { %2226 = vmatpush1.bf16.msra.mxu0 %v8651_v25  ;;  %2269 = vmatpush1.bf16.msra.mxu1 %v8652_v45 }
 0x43b   :  { %2297 = vmatprep.subr.bf16.mxu0 %v8653_v19  ;;  %2340 = vmatprep.subr.bf16.mxu1 %v8654_v24 }
 0x4d0   :  { %v1959_v9 = vpop.f32.mrb[32].mxu0  ;;  %v2002_v48 = vpop.f32.mrb[48].mxu1 }
 0x4d1   :  { %v2011_v44 = vadd.f32 %v1959_v9, %v8655_v10  ;;  %v1961_v30 = vpop.f32.mrb[33].mxu0  ;;  %v2004_v42 = vpop.f32.mrb[49].mxu1  ;;  %v2013_v9 = vadd.f32 %v2002_v48, %v6241_v7 }
 0x4d2   :  { %v2012_v27 = vadd.f32 %v1961_v30, %v6234_v55  ;;  %v1963_v29 = vpop.f32.mrb[34].mxu0  ;;  %v2006_v46 = vpop.f32.mrb[50].mxu1  ;;  %v8656_v30 = vld [vmem:[#allocation5_spill] sm:$0xff] }
 0x4d3   :  { %v4192_v26 = vmul.f32 -1.442695, %v2011_v44  ;;  %v2015_v47 = vadd.f32 %v1963_v29, %v8655_v10  ;;  %v1965_v25 = vpop.f32.mrb[35].mxu0  ;;  %v2008_v22 = vpop.f32.mrb[51].mxu1  ;;  %v2017_v17 = vadd.f32 %v2006_v46, %v6241_v7  ;;  %v2014_v16 = vadd.f32 %v2004_v42, %v8656_v30 }
 0x4d4   :  { %v4193_v45 = vmul.f32 -1.442695, %v2012_v27  ;;  %v2016_v19 = vadd.f32 %v1965_v25, %v6234_v55  ;;  %v4194_v44 = vmul.f32 -1.442695, %v2013_v9  ;;  %v2018_v27 = vadd.f32 %v2008_v22, %v8656_v30 }
 0x4d5   :  { %4811 = vpow2.f32 %v4192_v26  ;;  %v4195_v24 = vmul.f32 -1.442695, %v2015_v47  ;;  %v4197_v15 = vmul.f32 -1.442695, %v2017_v17 }
 0x4d6   :  { %v4196_v21 = vmul.f32 -1.442695, %v2016_v19  ;;  %4813 = vpow2.f32 %v4193_v45 }
 0x4d7   :  { %4815 = vpow2.f32 %v4195_v24 }
 0x4d8   :  { %4817 = vpow2.f32 %v4196_v21 }
 0x4d9   :  { %4819 = vtanh.f32 %v2014_v16 }
 0x4da   :  { %4821 = vpow2.f32 %v4194_v44 }
 0x4db   :  { %4823 = vpow2.f32 %v4197_v15 }
 0x4df   :  { %v4812_v29 = vpop.eup %4811 }
 0x4e0   :  { %v2037_v10 = vadd.f32 1.0, %v4812_v29  ;;  %v4814_v26 = vpop.eup %4813 }
 0x4e1   :  { %v4816_v47 = vpop.eup %4815  ;;  %v2038_v45 = vadd.f32 1.0, %v4814_v26 }
 0x4e2   :  { %4825 = vrcp.f32 %v2037_v10  ;;  %v2040_v48 = vadd.f32 1.0, %v4816_v47  ;;  %v4818_v24 = vpop.eup %4817 }
 0x4e3   :  { %4827 = vtanh.f32 %v2018_v27  ;;  %v2041_v21 = vadd.f32 1.0, %v4818_v24  ;;  %v4820_v42 = vpop.eup %4819 }
 0x4e4   :  { %4829 = vrcp.f32 %v2038_v45  ;;  %v4822_v17 = vpop.eup %4821 }
 0x4e5   :  { %4831 = vrcp.f32 %v2040_v48  ;;  %v4824_v46 = vpop.eup %4823  ;;  %v2039_v9 = vadd.f32 1.0, %v4822_v17 }
 0x4e6   :  { %4833 = vrcp.f32 %v2041_v21  ;;  %v2042_v10 = vadd.f32 1.0, %v4824_v46 }
 0x4e7   :  { %4835 = vrcp.f32 %v2039_v9 }
 0x4e8   :  { %4837 = vrcp.f32 %v2042_v10 }
 0x4ec   :  { %v4826_v16 = vpop.eup %4825 }
 0x4ed   :  { %v4828_v25 = vpop.eup %4827  ;;  %v2059_v22 = vmul.f32 %v4826_v16, %v4820_v42 }
 0x4ee   :  { %v4830_v19 = vpop.eup %4829 }
 0x4ef   :  { %v4832_v44 = vpop.eup %4831  ;;  %v2057_v15 = vmul.f32 %v4830_v19, %v6725_v31 }
 0x4f0   :  { %v2060_v29 = vmul.f32 %v4832_v44, %v4828_v25  ;;  %v2102_v26 = vpop.f32.mrb[12].mxu0  ;;  %v2145_v27 = vpop.f32.mrb[20].mxu1 }
 0x4f1   :  { %v4834_v47 = vpop.eup %4833  ;;  %v6969_v45 = vadd.f32 %v2059_v22, %v2057_v15  ;;  %v4310_v48 = vadd.f32 %v2102_v26, %v8541_v0  ;;  %v2104_v24 = vpop.f32.mrb[13].mxu0  ;;  %v4350_v10 = vadd.f32 %v2145_v27, %v8543_v32 }
 0x4f2   :  { %v2147_v21 = vpop.f32.mrb[21].mxu1  ;;  %v2058_v30 = vmul.f32 %v4834_v47, %v6732_v39  ;;  %v4311_v42 = vadd.f32 %v2104_v24, %v8542_v6  ;;  %v2106_v17 = vpop.f32.mrb[14].mxu0 }
 0x4f3   :  { %v2149_v16 = vpop.f32.mrb[22].mxu1  ;;  %v4198_v31 = vmul.f32 -1.442695, %v4310_v48  ;;  %v4312_v46 = vadd.f32 %v2106_v17, %v8541_v0  ;;  %v2108_v25 = vpop.f32.mrb[15].mxu0  ;;  %4839 = vtanh.f32 %v6969_v45  ;;  %v4351_v48 = vadd.f32 %v2147_v21, %v5953_v14 }
 0x4f4   :  { %v2151_v19 = vpop.f32.mrb[23].mxu1  ;;  %v6976_v22 = vadd.f32 %v2060_v29, %v2058_v30  ;;  %v4199_v44 = vmul.f32 -1.442695, %v4311_v42  ;;  %v4313_v9 = vadd.f32 %v2108_v25, %v8542_v6  ;;  %v4352_v26 = vadd.f32 %v2149_v16, %v8543_v32  ;;  %v4836_v47 = vpop.eup %4835 }
 0x4f5   :  { %4841 = vpow2.f32 %v4198_v31  ;;  %v4201_v15 = vmul.f32 -1.442695, %v4312_v46  ;;  %v4838_v30 = vpop.eup %4837  ;;  %v4200_v29 = vmul.f32 -1.442695, %v4350_v10  ;;  %v4353_v25 = vadd.f32 %v2151_v19, %v5953_v14 }
 0x4f6   :  { %4843 = vtanh.f32 %v6976_v22  ;;  %v4202_v39 = vmul.f32 -1.442695, %v4313_v9  ;;  %v4203_v17 = vmul.f32 -1.442695, %v4352_v26 }
 0x4f7   :  { %4845 = vpow2.f32 %v4199_v44 }
 0x4f8   :  { %4847 = vpow2.f32 %v4201_v15 }
 0x4f9   :  { %4849 = vpow2.f32 %v4202_v39 }
 0x4fa   :  { %4851 = vtanh.f32 %v4351_v48 }
 0x4fb   :  { %4853 = vpow2.f32 %v4200_v29 }
 0x4fd   :  { %v4840_v24 = vpop.eup %4839 }
 0x4fe   :  { %v2065_v44 = vmul.f32 %v4840_v24, %v4836_v47 }
 0x4ff   :  { %v4842_v42 = vpop.eup %4841 }
 0x500   :  { %v4844_v31 = vpop.eup %4843  ;;  %v2180_v46 = vadd.f32 1.0, %v4842_v42 }
 0x501   :  { %v2066_v27 = vmul.f32 %v4844_v31, %v4838_v30  ;;  %v4846_v15 = vpop.eup %4845 }
 0x502   :  { %4855 = vrcp.f32 %v2180_v46  ;;  %v4848_v16 = vpop.eup %4847  ;;  %v2181_v9 = vadd.f32 1.0, %v4846_v15 }
 0x503   :  { %4857 = vpow2.f32 %v4203_v17  ;;  %v6984_v39 = vpack.c.bf16 %v2066_v27, %v2065_v44  ;;  %v2183_v21 = vadd.f32 1.0, %v4848_v16  ;;  %v4850_v10 = vpop.eup %4849 }
 0x504   :  { %4859 = vtanh.f32 %v4353_v25  ;;  %v2184_v26 = vadd.f32 1.0, %v4850_v10  ;;  %v4852_v48 = vpop.eup %4851 }
 0x505   :  { %4861 = vrcp.f32 %v2181_v9  ;;  %v4854_v42 = vpop.eup %4853 }
 0x506   :  { %4863 = vrcp.f32 %v2183_v21  ;;  %v2182_v46 = vadd.f32 1.0, %v4854_v42 }
 0x507   :  { %4865 = vrcp.f32 %v2184_v26 }
 0x508   :  { %4867 = vrcp.f32 %v2182_v46  ;;  %v7047_v46 = vld [vmem:[%s8183_s5 + $0xc0] ss:$16 sps:$4 sm:$0xff]  }
 0x50c   :  { %v4856_v19 = vpop.eup %4855 }
 0x50d   :  { %v4858_v29 = vpop.eup %4857  ;;  %v2202_v47 = vmul.f32 %v4856_v19, %v4852_v48 }
 0x50e   :  { %v4860_v30 = vpop.eup %4859  ;;  %v2185_v25 = vadd.f32 1.0, %v4858_v29  ;;  %v8658_v29 = vld [vmem:[#allocation66_spill] sm:$0xff] }
 0x50f   :  { %v4862_v24 = vpop.eup %4861 }
 0x510   :  { %v4864_v31 = vpop.eup %4863  ;;  %v2200_v17 = vmul.f32 %v4862_v24, %v6743_v37  ;;  %v7035_v24 = vld [vmem:[%s8183_s5 + $0xc4] ss:$16 sps:$4 sm:$0xff]  }
 0x511   :  { %v2203_v44 = vmul.f32 %v4864_v31, %v4860_v30  ;;  %v4866_v27 = vpop.eup %4865  ;;  %v7029_v30 = vld [vmem:[%s8183_s5 + $0xa8] ss:$16 sps:$4 sm:$0xff]   ;;  %v7041_v31 = vld [vmem:[%s8183_s5 + $0xcc] ss:$16 sps:$4 sm:$0xff]  }
 0x512   :  { %v6987_v15 = vadd.f32 %v2202_v47, %v2200_v17  ;;  %v2201_v16 = vmul.f32 %v4866_v27, %v6747_v41  ;;  %v4868_v21 = vpop.eup %4867  ;;  %v8657_v41 = vld [vmem:[#allocation65_spill] sm:$0xff]  ;;  %v7023_v47 = vld [vmem:[%s8183_s5 + $0xa0] ss:$16 sps:$4 sm:$0xff]  }
 0x513   :  { %v7053_v17 = vld [vmem:[%s8183_s5 + $0xc8] ss:$16 sps:$4 sm:$0xff]   ;;  %v7065_v27 = vld [vmem:[%s8183_s5 + $0xec] ss:$16 sps:$4 sm:$0xff]  }
 0x514   :  { %4869 = vtanh.f32 %v6987_v15  ;;  %v6991_v9 = vadd.f32 %v2203_v44, %v2201_v16  ;;  %v7059_v44 = vld [vmem:[%s8183_s5 + $0xe4] ss:$16 sps:$4 sm:$0xff]   ;;  %v7077_v16 = vld [vmem:[%s8183_s5 + $0xe8] ss:$16 sps:$4 sm:$0xff]  }
 0x515   :  { %4871 = vrcp.f32 %v2185_v25  ;;  %v7071_v25 = vld [vmem:[%s8183_s5 + $0xe0] ss:$16 sps:$4 sm:$0xff]  }
 0x516   :  { %4873 = vtanh.f32 %v6991_v9 }
 0x51e   :  { %v4870_v10 = vpop.eup %4869 }
 0x51f   :  { %v4872_v26 = vpop.eup %4871  ;;  %v2208_v37 = vmul.f32 %v4870_v10, %v4868_v21  ;;  %v8675_v21 = vld [vmem:[#allocation22_spill] sm:$0xff]  ;;  %v8676_v10 = vld [vmem:[#allocation23_spill] sm:$0xff] }
 0x520   :  { %v4874_v48 = vpop.eup %4873 }
 0x521   :  { %v2209_v42 = vmul.f32 %v4874_v48, %v4872_v26  ;;  %v8677_v26 = vld [vmem:[#allocation24_spill] sm:$0xff]  ;;  %v8678_v48 = vld [vmem:[#allocation33_spill] sm:$0xff] }
 0x523   :  { %v6994_v19 = vpack.c.bf16 %v2209_v42, %v2208_v37  ;;  %v8679_v37 = vld [vmem:[#allocation34_spill] sm:$0xff]  ;;  %v8680_v42 = vld [vmem:[#allocation35_spill] sm:$0xff] }
 0x525   :  { %2244 = vmatmul.mubr.bf16.vlgmr.msra.gmra.mrb[36].mxu0 %v6994_v19  ;;  %2287 = vmatmul.mubr.bf16.vlgmr.msra.gmra.mrb[52].mxu1 %v6994_v19 }
 0x526   :  { %2298 = vmatpush1.bf16.msra.mxu0 %v6757_v34  ;;  %2341 = vmatpush1.bf16.msra.mxu1 %v6763_v13 }
 0x527   :  { %2299 = vmatprep.subr.bf16.mxu0 %v6769_v38  ;;  %2342 = vmatprep.subr.bf16.mxu1 %v6775_v18 }
 0x528   :  { %2329 = vmatprep.mubr.bf16.mxu0 %v8494_v33  ;;  %2372 = vmatprep.mubr.bf16.mxu1 %v8494_v33 }
 0x52a   :  { %2300 = vmatpush1.bf16.msra.mxu0 %v6783_v12  ;;  %2343 = vmatpush1.bf16.msra.mxu1 %v6789_v63 }
 0x52b   :  { %2301 = vmatprep.subr.bf16.mxu0 %v6795_v40  ;;  %2344 = vmatprep.subr.bf16.mxu1 %v6801_v35 }
 0x52e   :  { %2302 = vmatpush1.bf16.msra.mxu0 %v6807_v20  ;;  %2345 = vmatpush1.bf16.msra.mxu1 %v6813_v23 }
 0x52f   :  { %2303 = vmatprep.subr.bf16.mxu0 %v6819_v53  ;;  %2346 = vmatprep.subr.bf16.mxu1 %v6825_v11 }
 0x532   :  { %2304 = vmatpush1.bf16.msra.mxu0 %v6831_v36  ;;  %2347 = vmatpush1.bf16.msra.mxu1 %v6837_v51 }
 0x533   :  { %2305 = vmatprep.subr.bf16.mxu0 %v8657_v41  ;;  %2348 = vmatprep.subr.bf16.mxu1 %v8658_v29 }
 0x536   :  { %2306 = vmatpush1.bf16.msra.mxu0 %v6855_v28  ;;  %2349 = vmatpush1.bf16.msra.mxu1 %v6861_v54 }
 0x537   :  { %2307 = vmatprep.subr.bf16.mxu0 %v6867_v57  ;;  %2350 = vmatprep.subr.bf16.mxu1 %v6873_v1 }
 0x53a   :  { %2308 = vmatpush1.bf16.msra.mxu0 %v7023_v47  ;;  %2351 = vmatpush1.bf16.msra.mxu1 %v7029_v30 }
 0x53b   :  { %2309 = vmatprep.subr.bf16.mxu0 %v7035_v24  ;;  %2352 = vmatprep.subr.bf16.mxu1 %v7041_v31 }
 0x53e   :  { %2310 = vmatpush1.bf16.msra.mxu0 %v7047_v46  ;;  %2353 = vmatpush1.bf16.msra.mxu1 %v7053_v17 }
 0x53f   :  { %2311 = vmatprep.subr.bf16.mxu0 %v7059_v44  ;;  %2354 = vmatprep.subr.bf16.mxu1 %v7065_v27 }
 0x542   :  { %2312 = vmatpush1.bf16.msra.mxu0 %v7071_v25  ;;  %2355 = vmatpush1.bf16.msra.mxu1 %v7077_v16 }
 0x543   :  { %2440 = vmatprep.subr.bf16.mxu0 %v6315_v49  ;;  %2483 = vmatprep.subr.bf16.mxu1 %v6321_v50  ;;  %v8659_v49 = vld [vmem:[#allocation6_spill] sm:$0xff]  ;;  %v8660_v50 = vld [vmem:[#allocation7_spill] sm:$0xff] }
 0x545   :  { %2330 = vmatmul.mubr.bf16.vlgmr.msra.gmra.mrb[36].mxu0 %v6984_v39  ;;  %2373 = vmatmul.mubr.bf16.vlgmr.msra.gmra.mrb[52].mxu1 %v6984_v39  ;;  %v8674_v39 = vld [vmem:[#allocation21_spill] sm:$0xff] }
 0x546   :  { %2441 = vmatpush1.bf16.msra.mxu0 %v6329_v52  ;;  %2484 = vmatpush1.bf16.msra.mxu1 %v6335_v56  ;;  %v8661_v52 = vld [vmem:[#allocation8_spill] sm:$0xff]  ;;  %v8662_v56 = vld [vmem:[#allocation9_spill] sm:$0xff] }
 0x547   :  { %2442 = vmatprep.subr.bf16.mxu0 %v6341_v58  ;;  %2485 = vmatprep.subr.bf16.mxu1 %v6347_v59  ;;  %v8663_v58 = vld [vmem:[#allocation10_spill] sm:$0xff]  ;;  %v8664_v59 = vld [vmem:[#allocation11_spill] sm:$0xff] }
 0x548   :  { %2472 = vmatprep.mubr.bf16.mxu0 %v8494_v33  ;;  %2515 = vmatprep.mubr.bf16.mxu1 %v8494_v33 }
 0x54a   :  { %2443 = vmatpush1.bf16.msra.mxu0 %v6355_v60  ;;  %2486 = vmatpush1.bf16.msra.mxu1 %v6361_v61  ;;  %v8665_v60 = vld [vmem:[#allocation12_spill] sm:$0xff]  ;;  %v8666_v61 = vld [vmem:[#allocation13_spill] sm:$0xff] }
 0x54b   :  { %2444 = vmatprep.subr.bf16.mxu0 %v6367_v62  ;;  %2487 = vmatprep.subr.bf16.mxu1 %v6373_v2  ;;  %v8667_v62 = vld [vmem:[#allocation14_spill] sm:$0xff]  ;;  %v8668_v2 = vld [vmem:[#allocation15_spill] sm:$0xff] }
 0x54e   :  { %2445 = vmatpush1.bf16.msra.mxu0 %v6379_v3  ;;  %2488 = vmatpush1.bf16.msra.mxu1 %v6385_v4  ;;  %v8669_v3 = vld [vmem:[#allocation16_spill] sm:$0xff]  ;;  %v8670_v4 = vld [vmem:[#allocation17_spill] sm:$0xff] }
 0x54f   :  { %2446 = vmatprep.subr.bf16.mxu0 %v6391_v5  ;;  %2489 = vmatprep.subr.bf16.mxu1 %v6397_v8  ;;  %v8671_v5 = vld [vmem:[#allocation18_spill] sm:$0xff]  ;;  %v8672_v8 = vld [vmem:[#allocation19_spill] sm:$0xff] }
 0x552   :  { %2447 = vmatpush1.bf16.msra.mxu0 %v6403_v43  ;;  %2490 = vmatpush1.bf16.msra.mxu1 %v8659_v49  ;;  %v8673_v43 = vld [vmem:[#allocation20_spill] sm:$0xff] }
 0x553   :  { %2448 = vmatprep.subr.bf16.mxu0 %v8660_v50  ;;  %2491 = vmatprep.subr.bf16.mxu1 %v8661_v52  ;;  %v8681_v49 = vld [vmem:[#allocation36_spill] sm:$0xff]  ;;  %v8682_v50 = vld [vmem:[#allocation37_spill] sm:$0xff]  ;;  %v8683_v52 = vld [vmem:[#allocation38_spill] sm:$0xff] }
 0x556   :  { %2449 = vmatpush1.bf16.msra.mxu0 %v8662_v56  ;;  %2492 = vmatpush1.bf16.msra.mxu1 %v8663_v58  ;;  %v8684_v56 = vld [vmem:[#allocation39_spill] sm:$0xff]  ;;  %v8685_v58 = vld [vmem:[#allocation40_spill] sm:$0xff] }
 0x557   :  { %2450 = vmatprep.subr.bf16.mxu0 %v8664_v59  ;;  %2493 = vmatprep.subr.bf16.mxu1 %v8665_v60  ;;  %v8687_v59 = vld [vmem:[#allocation42_spill] sm:$0xff]  ;;  %v8688_v60 = vld [vmem:[#allocation43_spill] sm:$0xff] }
 0x55a   :  { %2451 = vmatpush1.bf16.msra.mxu0 %v8666_v61  ;;  %2494 = vmatpush1.bf16.msra.mxu1 %v8667_v62  ;;  %v8689_v61 = vld [vmem:[#allocation44_spill] sm:$0xff]  ;;  %v8690_v62 = vld [vmem:[#allocation45_spill] sm:$0xff] }
 0x55b   :  { %2452 = vmatprep.subr.bf16.mxu0 %v8668_v2  ;;  %2495 = vmatprep.subr.bf16.mxu1 %v8669_v3  ;;  %v8691_v2 = vld [vmem:[#allocation46_spill] sm:$0xff]  ;;  %v8692_v3 = vld [vmem:[#allocation47_spill] sm:$0xff] }
 0x55e   :  { %2453 = vmatpush1.bf16.msra.mxu0 %v8670_v4  ;;  %2496 = vmatpush1.bf16.msra.mxu1 %v8671_v5  ;;  %v8693_v4 = vld [vmem:[#allocation48_spill] sm:$0xff]  ;;  %v8694_v5 = vld [vmem:[#allocation49_spill] sm:$0xff] }
 0x55f   :  { %2454 = vmatprep.subr.bf16.mxu0 %v8672_v8  ;;  %2497 = vmatprep.subr.bf16.mxu1 %v8673_v43  ;;  %v8695_v8 = vld [vmem:[#allocation50_spill] sm:$0xff]  ;;  %v8696_v43 = vld [vmem:[#allocation51_spill] sm:$0xff] }
 0x562   :  { %2455 = vmatpush1.bf16.msra.mxu0 %v8674_v39  ;;  %2498 = vmatpush1.bf16.msra.mxu1 %v8675_v21  ;;  %v8697_v39 = vld [vmem:[#allocation52_spill] sm:$0xff]  ;;  %v8698_v21 = vld [vmem:[#allocation53_spill] sm:$0xff] }
 0x563   :  { %2583 = vmatprep.subr.bf16.mxu0 %v8676_v10  ;;  %2626 = vmatprep.subr.bf16.mxu1 %v8677_v26  ;;  %v8699_v10 = vld [vmem:[#allocation54_spill] sm:$0xff]  ;;  %v8700_v26 = vld [vmem:[#allocation55_spill] sm:$0xff] }
 0x565   :  { %2473 = vmatmul.mubr.bf16.vlgmr.msra.gmra.mrb[16].mxu0 %v6994_v19  ;;  %2516 = vmatmul.mubr.bf16.vlgmr.msra.gmra.mrb[24].mxu1 %v6994_v19  ;;  %v8686_v19 = vld [vmem:[#allocation41_spill] sm:$0xff] }
 0x566   :  { %2584 = vmatpush1.bf16.msra.mxu0 %v8678_v48  ;;  %2627 = vmatpush1.bf16.msra.mxu1 %v8679_v37  ;;  %v8701_v48 = vld [vmem:[#allocation56_spill] sm:$0xff]  ;;  %v8702_v37 = vld [vmem:[#allocation57_spill] sm:$0xff] }
 0x567   :  { %2585 = vmatprep.subr.bf16.mxu0 %v8680_v42  ;;  %2628 = vmatprep.subr.bf16.mxu1 %v8681_v49  ;;  %v8703_v42 = vld [vmem:[#allocation58_spill] sm:$0xff]  ;;  %v8704_v49 = vld [vmem:[#allocation59_spill] sm:$0xff] }
 0x568   :  { %2615 = vmatprep.mubr.bf16.mxu0 %v8494_v33  ;;  %2658 = vmatprep.mubr.bf16.mxu1 %v8494_v33 }
 0x56a   :  { %2586 = vmatpush1.bf16.msra.mxu0 %v8682_v50  ;;  %2629 = vmatpush1.bf16.msra.mxu1 %v8683_v52  ;;  %v8705_v50 = vld [vmem:[#allocation60_spill] sm:$0xff]  ;;  %v8706_v52 = vld [vmem:[#allocation61_spill] sm:$0xff] }
 0x56b   :  { %2587 = vmatprep.subr.bf16.mxu0 %v8684_v56  ;;  %2630 = vmatprep.subr.bf16.mxu1 %v8685_v58  ;;  %v8707_v56 = vld [vmem:[#allocation62_spill] sm:$0xff]  ;;  %v8708_v58 = vld [vmem:[#allocation63_spill] sm:$0xff] }
 0x56e   :  { %2588 = vmatpush1.bf16.msra.mxu0 %v8686_v19  ;;  %2631 = vmatpush1.bf16.msra.mxu1 %v8687_v59  ;;  %v8709_v19 = vld [vmem:[#allocation64_spill] sm:$0xff] }
 0x56f   :  { %2589 = vmatprep.subr.bf16.mxu0 %v8688_v60  ;;  %2632 = vmatprep.subr.bf16.mxu1 %v8689_v61  ;;  %v8710_v61 = vld [vmem:[#allocation2_spill] sm:$0xff] }
 0x572   :  { %2590 = vmatpush1.bf16.msra.mxu0 %v8690_v62  ;;  %2633 = vmatpush1.bf16.msra.mxu1 %v8691_v2 }
 0x573   :  { %2591 = vmatprep.subr.bf16.mxu0 %v8692_v3  ;;  %2634 = vmatprep.subr.bf16.mxu1 %v8693_v4 }
 0x576   :  { %2592 = vmatpush1.bf16.msra.mxu0 %v8694_v5  ;;  %2635 = vmatpush1.bf16.msra.mxu1 %v8695_v8 }
 0x577   :  { %2593 = vmatprep.subr.bf16.mxu0 %v8696_v43  ;;  %2636 = vmatprep.subr.bf16.mxu1 %v8697_v39 }
 0x57a   :  { %2594 = vmatpush1.bf16.msra.mxu0 %v8698_v21  ;;  %2637 = vmatpush1.bf16.msra.mxu1 %v8699_v10 }
 0x57b   :  { %2595 = vmatprep.subr.bf16.mxu0 %v8700_v26  ;;  %2638 = vmatprep.subr.bf16.mxu1 %v8701_v48 }
 0x57e   :  { %2596 = vmatpush1.bf16.msra.mxu0 %v8702_v37  ;;  %2639 = vmatpush1.bf16.msra.mxu1 %v8703_v42 }
 0x57f   :  { %2597 = vmatprep.subr.bf16.mxu0 %v8704_v49  ;;  %2640 = vmatprep.subr.bf16.mxu1 %v8705_v50 }
 0x582   :  { %2598 = vmatpush1.bf16.msra.mxu0 %v8706_v52  ;;  %2641 = vmatpush1.bf16.msra.mxu1 %v8707_v56  ;;  %v8711_v52 = vld [vmem:[#allocation5_spill] sm:$0xff] }
 0x583   :  { %2669 = vmatprep.subr.bf16.mxu0 %v8708_v58  ;;  %2712 = vmatprep.subr.bf16.mxu1 %v8709_v19 }
 0x618   :  { %v2331_v59 = vpop.f32.mrb[36].mxu0  ;;  %v2374_v60 = vpop.f32.mrb[52].mxu1 }
 0x619   :  { %v2383_v62 = vadd.f32 %v2331_v59, %v8710_v61  ;;  %v2333_v2 = vpop.f32.mrb[37].mxu0  ;;  %v2376_v3 = vpop.f32.mrb[53].mxu1  ;;  %v2385_v49 = vadd.f32 %v2374_v60, %v6241_v7 }
 0x61a   :  { %v2384_v4 = vadd.f32 %v2333_v2, %v6234_v55  ;;  %v2335_v5 = vpop.f32.mrb[38].mxu0  ;;  %v2378_v8 = vpop.f32.mrb[54].mxu1  ;;  %v2386_v56 = vadd.f32 %v2376_v3, %v8711_v52 }
 0x61b   :  { %v4204_v43 = vmul.f32 -1.442695, %v2383_v62  ;;  %v2387_v39 = vadd.f32 %v2335_v5, %v8710_v61  ;;  %v2337_v21 = vpop.f32.mrb[39].mxu0  ;;  %v2380_v10 = vpop.f32.mrb[55].mxu1  ;;  %v2389_v50 = vadd.f32 %v2378_v8, %v6241_v7  ;;  %v4206_v58 = vmul.f32 -1.442695, %v2385_v49 }
 0x61c   :  { %v4205_v26 = vmul.f32 -1.442695, %v2384_v4  ;;  %v2388_v48 = vadd.f32 %v2337_v21, %v6234_v55  ;;  %v2390_v62 = vadd.f32 %v2380_v10, %v8711_v52 }
 0x61d   :  { %4875 = vpow2.f32 %v4204_v43  ;;  %v4207_v37 = vmul.f32 -1.442695, %v2387_v39  ;;  %v4209_v19 = vmul.f32 -1.442695, %v2389_v50 }
 0x61e   :  { %v4208_v42 = vmul.f32 -1.442695, %v2388_v48  ;;  %4877 = vpow2.f32 %v4205_v26 }
 0x61f   :  { %4879 = vpow2.f32 %v4207_v37 }
 0x620   :  { %4881 = vpow2.f32 %v4208_v42 }
 0x621   :  { %4883 = vtanh.f32 %v2386_v56 }
 0x622   :  { %4885 = vpow2.f32 %v4206_v58 }
 0x623   :  { %4887 = vpow2.f32 %v4209_v19 }
 0x627   :  { %v4876_v59 = vpop.eup %4875 }
 0x628   :  { %v2409_v2 = vadd.f32 1.0, %v4876_v59  ;;  %v4878_v4 = vpop.eup %4877 }
 0x629   :  { %v4880_v5 = vpop.eup %4879  ;;  %v2410_v43 = vadd.f32 1.0, %v4878_v4 }
 0x62a   :  { %4889 = vrcp.f32 %v2409_v2  ;;  %v2412_v60 = vadd.f32 1.0, %v4880_v5  ;;  %v4882_v39 = vpop.eup %4881 }
 0x62b   :  { %4891 = vtanh.f32 %v2390_v62  ;;  %v2413_v8 = vadd.f32 1.0, %v4882_v39  ;;  %v4884_v3 = vpop.eup %4883 }
 0x62c   :  { %4893 = vrcp.f32 %v2410_v43  ;;  %v4886_v21 = vpop.eup %4885 }
 0x62d   :  { %4895 = vrcp.f32 %v2412_v60  ;;  %v4888_v26 = vpop.eup %4887  ;;  %v2411_v49 = vadd.f32 1.0, %v4886_v21 }
 0x62e   :  { %4897 = vrcp.f32 %v2413_v8  ;;  %v2414_v58 = vadd.f32 1.0, %v4888_v26 }
 0x62f   :  { %4899 = vrcp.f32 %v2411_v49 }
 0x630   :  { %4901 = vrcp.f32 %v2414_v58 }
 0x634   :  { %v4890_v48 = vpop.eup %4889 }
 0x635   :  { %v4892_v37 = vpop.eup %4891  ;;  %v2431_v10 = vmul.f32 %v4890_v48, %v4884_v3 }
 0x636   :  { %v4894_v42 = vpop.eup %4893 }
 0x637   :  { %v4896_v50 = vpop.eup %4895  ;;  %v2429_v56 = vmul.f32 %v4894_v42, %v6969_v45 }
 0x638   :  { %v2432_v19 = vmul.f32 %v4896_v50, %v4892_v37  ;;  %v2474_v59 = vpop.f32.mrb[16].mxu0  ;;  %v2517_v62 = vpop.f32.mrb[24].mxu1 }
 0x639   :  { %v4898_v2 = vpop.eup %4897  ;;  %v7163_v4 = vadd.f32 %v2431_v10, %v2429_v56  ;;  %v4314_v5 = vadd.f32 %v2474_v59, %v8541_v0  ;;  %v2476_v43 = vpop.f32.mrb[17].mxu0  ;;  %v4354_v56 = vadd.f32 %v2517_v62, %v8543_v32 }
 0x63a   :  { %v2519_v60 = vpop.f32.mrb[25].mxu1  ;;  %v2430_v39 = vmul.f32 %v4898_v2, %v6976_v22  ;;  %v4315_v8 = vadd.f32 %v2476_v43, %v8542_v6  ;;  %v2478_v3 = vpop.f32.mrb[18].mxu0 }
 0x63b   :  { %v2521_v21 = vpop.f32.mrb[26].mxu1  ;;  %v4210_v45 = vmul.f32 -1.442695, %v4314_v5  ;;  %v4316_v26 = vadd.f32 %v2478_v3, %v8541_v0  ;;  %v2480_v48 = vpop.f32.mrb[19].mxu0  ;;  %4903 = vtanh.f32 %v7163_v4  ;;  %v4355_v2 = vadd.f32 %v2519_v60, %v5953_v14 }
 0x63c   :  { %v2523_v37 = vpop.f32.mrb[27].mxu1  ;;  %v7170_v10 = vadd.f32 %v2432_v19, %v2430_v39  ;;  %v4211_v42 = vmul.f32 -1.442695, %v4315_v8  ;;  %v4317_v49 = vadd.f32 %v2480_v48, %v8542_v6  ;;  %v4356_v58 = vadd.f32 %v2521_v21, %v8543_v32  ;;  %v4900_v59 = vpop.eup %4899 }
 0x63d   :  { %4905 = vpow2.f32 %v4210_v45  ;;  %v4213_v50 = vmul.f32 -1.442695, %v4316_v26  ;;  %v4902_v19 = vpop.eup %4901  ;;  %v4212_v5 = vmul.f32 -1.442695, %v4354_v56  ;;  %v4357_v26 = vadd.f32 %v2523_v37, %v5953_v14 }
 0x63e   :  { %4907 = vtanh.f32 %v7170_v10  ;;  %v4214_v22 = vmul.f32 -1.442695, %v4317_v49  ;;  %v4215_v8 = vmul.f32 -1.442695, %v4356_v58 }
 0x63f   :  { %4909 = vpow2.f32 %v4211_v42 }
 0x640   :  { %4911 = vpow2.f32 %v4213_v50 }
 0x641   :  { %4913 = vpow2.f32 %v4214_v22 }
 0x642   :  { %4915 = vtanh.f32 %v4355_v2 }
 0x643   :  { %4917 = vpow2.f32 %v4212_v5 }
 0x645   :  { %v4904_v43 = vpop.eup %4903 }
 0x646   :  { %v2437_v48 = vmul.f32 %v4904_v43, %v4900_v59 }
 0x647   :  { %v4906_v39 = vpop.eup %4905 }
 0x648   :  { %v4908_v3 = vpop.eup %4907  ;;  %v2552_v45 = vadd.f32 1.0, %v4906_v39 }
 0x649   :  { %v2438_v62 = vmul.f32 %v4908_v3, %v4902_v19  ;;  %v4910_v42 = vpop.eup %4909 }
 0x64a   :  { %4919 = vrcp.f32 %v2552_v45  ;;  %v4912_v21 = vpop.eup %4911  ;;  %v2553_v50 = vadd.f32 1.0, %v4910_v42 }
 0x64b   :  { %4921 = vpow2.f32 %v4215_v8  ;;  %v7178_v49 = vpack.c.bf16 %v2438_v62, %v2437_v48  ;;  %v2555_v60 = vadd.f32 1.0, %v4912_v21  ;;  %v4914_v22 = vpop.eup %4913 }
 0x64c   :  { %4923 = vtanh.f32 %v4357_v26  ;;  %v2556_v56 = vadd.f32 1.0, %v4914_v22  ;;  %v4916_v58 = vpop.eup %4915 }
 0x64d   :  { %4925 = vrcp.f32 %v2553_v50  ;;  %v4918_v2 = vpop.eup %4917 }
 0x64e   :  { %4927 = vrcp.f32 %v2555_v60  ;;  %v2554_v3 = vadd.f32 1.0, %v4918_v2 }
 0x64f   :  { %4929 = vrcp.f32 %v2556_v56 }
 0x650   :  { %4931 = vrcp.f32 %v2554_v3  ;;  %v7399_v3 = vld [vmem:[%s8181_s2 + $0xe4] ss:$16 sps:$4 sm:$0xff]  }
 0x651   :  { %8728 = vst [vmem:[#allocation20_spill] sm:$0xff] %v7399_v3 }
 0x654   :  { %v4920_v37 = vpop.eup %4919 }
 0x655   :  { %v4922_v5 = vpop.eup %4921  ;;  %v2574_v59 = vmul.f32 %v4920_v37, %v4916_v58  ;;  %v7363_v37 = vld [vmem:[%s8181_s2 + $0xa0] ss:$16 sps:$4 sm:$0xff]  }
 0x656   :  { %v4924_v19 = vpop.eup %4923  ;;  %v2557_v26 = vadd.f32 1.0, %v4922_v5  ;;  %8722 = vst [vmem:[#allocation14_spill] sm:$0xff] %v7363_v37  ;;  %v7369_v5 = vld [vmem:[%s8181_s2 + $0xa8] ss:$16 sps:$4 sm:$0xff]  }
 0x657   :  { %v4926_v43 = vpop.eup %4925  ;;  %8723 = vst [vmem:[#allocation15_spill] sm:$0xff] %v7369_v5 }
 0x658   :  { %v4928_v39 = vpop.eup %4927  ;;  %v2572_v8 = vmul.f32 %v4926_v43, %v6987_v15  ;;  %v7387_v43 = vld [vmem:[%s8181_s2 + $0xc0] ss:$16 sps:$4 sm:$0xff]  }
 0x659   :  { %v2575_v45 = vmul.f32 %v4928_v39, %v4924_v19  ;;  %v4930_v48 = vpop.eup %4929  ;;  %v7381_v19 = vld [vmem:[%s8181_s2 + $0xcc] ss:$16 sps:$4 sm:$0xff]   ;;  %8726 = vst [vmem:[#allocation18_spill] sm:$0xff] %v7387_v43  ;;  %v7393_v39 = vld [vmem:[%s8181_s2 + $0xc8] ss:$16 sps:$4 sm:$0xff]  }
 0x65a   :  { %v7181_v62 = vadd.f32 %v2574_v59, %v2572_v8  ;;  %v2573_v42 = vmul.f32 %v4930_v48, %v6991_v9  ;;  %v4932_v50 = vpop.eup %4931  ;;  %v7339_v9 = vld [vmem:[%s8181_s2 + $0x80] ss:$16 sps:$4 sm:$0xff]   ;;  %v7375_v59 = vld [vmem:[%s8181_s2 + $0xc4] ss:$16 sps:$4 sm:$0xff]   ;;  %8725 = vst [vmem:[#allocation17_spill] sm:$0xff] %v7381_v19  ;;  %8727 = vst [vmem:[#allocation19_spill] sm:$0xff] %v7393_v39 }
 0x65b   :  { %8718 = vst [vmem:[#allocation10_spill] sm:$0xff] %v7339_v9  ;;  %8724 = vst [vmem:[#allocation16_spill] sm:$0xff] %v7375_v59  ;;  %v7405_v8 = vld [vmem:[%s8181_s2 + $0xec] ss:$16 sps:$4 sm:$0xff]   ;;  %v7417_v48 = vld [vmem:[%s8181_s2 + $0xe8] ss:$16 sps:$4 sm:$0xff]  }
 0x65c   :  { %4933 = vtanh.f32 %v7181_v62  ;;  %v7185_v21 = vadd.f32 %v2575_v45, %v2573_v42  ;;  %8729 = vst [vmem:[#allocation21_spill] sm:$0xff] %v7405_v8  ;;  %v7411_v45 = vld [vmem:[%s8181_s2 + $0xe0] ss:$16 sps:$4 sm:$0xff]   ;;  %8731 = vst [vmem:[#allocation23_spill] sm:$0xff] %v7417_v48  ;;  %v7429_v42 = vld [vmem:[%s8182_s4 + $0xc] ss:$16 sps:$4 sm:$0xff]  }
 0x65d   :  { %4935 = vrcp.f32 %v2557_v26  ;;  %8730 = vst [vmem:[#allocation22_spill] sm:$0xff] %v7411_v45  ;;  %v7423_v26 = vld [vmem:[%s8182_s4 + $0x4] ss:$16 sps:$4 sm:$0xff]   ;;  %8733 = vst [vmem:[#allocation33_spill] sm:$0xff] %v7429_v42 }
 0x65e   :  { %4937 = vtanh.f32 %v7185_v21  ;;  %8732 = vst [vmem:[#allocation24_spill] sm:$0xff] %v7423_v26 }
 0x666   :  { %v4934_v60 = vpop.eup %4933 }
 0x667   :  { %v4936_v22 = vpop.eup %4935  ;;  %v2580_v15 = vmul.f32 %v4934_v60, %v4932_v50  ;;  %v7437_v50 = vld [vmem:[%s8182_s4] ss:$16 sps:$4 sm:$0xff]   ;;  %v7443_v60 = vld [vmem:[%s8182_s4 + $0x8] ss:$16 sps:$4 sm:$0xff]  }
 0x668   :  { %v4938_v56 = vpop.eup %4937  ;;  %8734 = vst [vmem:[#allocation34_spill] sm:$0xff] %v7437_v50  ;;  %8735 = vst [vmem:[#allocation35_spill] sm:$0xff] %v7443_v60 }
 0x669   :  { %v2581_v58 = vmul.f32 %v4938_v56, %v4936_v22  ;;  %v7449_v22 = vld [vmem:[%s8182_s4 + $0x24] ss:$16 sps:$4 sm:$0xff]   ;;  %v7455_v56 = vld [vmem:[%s8182_s4 + $0x2c] ss:$16 sps:$4 sm:$0xff]  }
 0x66a   :  { %8736 = vst [vmem:[#allocation36_spill] sm:$0xff] %v7449_v22  ;;  %8737 = vst [vmem:[#allocation37_spill] sm:$0xff] %v7455_v56 }
 0x66b   :  { %v7188_v2 = vpack.c.bf16 %v2581_v58, %v2580_v15  ;;  %v7463_v15 = vld [vmem:[%s8182_s4 + $0x20] ss:$16 sps:$4 sm:$0xff]   ;;  %v7469_v58 = vld [vmem:[%s8182_s4 + $0x28] ss:$16 sps:$4 sm:$0xff]  }
 0x66c   :  { %8738 = vst [vmem:[#allocation38_spill] sm:$0xff] %v7463_v15  ;;  %8739 = vst [vmem:[#allocation39_spill] sm:$0xff] %v7469_v58 }
 0x66d   :  { %2616 = vmatmul.mubr.bf16.vlgmr.msra.gmra.mrb[40].mxu0 %v7188_v2  ;;  %2659 = vmatmul.mubr.bf16.vlgmr.msra.gmra.mrb[56].mxu1 %v7188_v2 }
 0x66e   :  { %2670 = vmatpush1.bf16.msra.mxu0 %v6757_v34  ;;  %2713 = vmatpush1.bf16.msra.mxu1 %v6763_v13  ;;  %v7227_v34 = vld [vmem:[%s8181_s2 + $0x4] ss:$16 sps:$4 sm:$0xff]   ;;  %v7233_v13 = vld [vmem:[%s8181_s2 + $0xc] ss:$16 sps:$4 sm:$0xff]  }
 0x66f   :  { %2671 = vmatprep.subr.bf16.mxu0 %v6769_v38  ;;  %2714 = vmatprep.subr.bf16.mxu1 %v6775_v18  ;;  %v7241_v38 = vld [vmem:[%s8181_s2] ss:$16 sps:$4 sm:$0xff]   ;;  %v7247_v18 = vld [vmem:[%s8181_s2 + $0x8] ss:$16 sps:$4 sm:$0xff]  }
 0x670   :  { %2701 = vmatprep.mubr.bf16.mxu0 %v8494_v33  ;;  %2744 = vmatprep.mubr.bf16.mxu1 %v8494_v33 }
 0x672   :  { %2672 = vmatpush1.bf16.msra.mxu0 %v6783_v12  ;;  %2715 = vmatpush1.bf16.msra.mxu1 %v6789_v63  ;;  %v7253_v12 = vld [vmem:[%s8181_s2 + $0x24] ss:$16 sps:$4 sm:$0xff]   ;;  %v7259_v63 = vld [vmem:[%s8181_s2 + $0x2c] ss:$16 sps:$4 sm:$0xff]  }
 0x673   :  { %2673 = vmatprep.subr.bf16.mxu0 %v6795_v40  ;;  %2716 = vmatprep.subr.bf16.mxu1 %v6801_v35  ;;  %v7267_v40 = vld [vmem:[%s8181_s2 + $0x20] ss:$16 sps:$4 sm:$0xff]   ;;  %v7273_v35 = vld [vmem:[%s8181_s2 + $0x28] ss:$16 sps:$4 sm:$0xff]  }
 0x676   :  { %2674 = vmatpush1.bf16.msra.mxu0 %v6807_v20  ;;  %2717 = vmatpush1.bf16.msra.mxu1 %v6813_v23  ;;  %v7279_v20 = vld [vmem:[%s8181_s2 + $0x44] ss:$16 sps:$4 sm:$0xff]   ;;  %v7285_v23 = vld [vmem:[%s8181_s2 + $0x4c] ss:$16 sps:$4 sm:$0xff]  }
 0x677   :  { %2675 = vmatprep.subr.bf16.mxu0 %v6819_v53  ;;  %2718 = vmatprep.subr.bf16.mxu1 %v6825_v11  ;;  %v7291_v53 = vld [vmem:[%s8181_s2 + $0x40] ss:$16 sps:$4 sm:$0xff]   ;;  %v7297_v11 = vld [vmem:[%s8181_s2 + $0x48] ss:$16 sps:$4 sm:$0xff]  }
 0x67a   :  { %2676 = vmatpush1.bf16.msra.mxu0 %v6831_v36  ;;  %2719 = vmatpush1.bf16.msra.mxu1 %v6837_v51  ;;  %v7303_v36 = vld [vmem:[%s8181_s2 + $0x64] ss:$16 sps:$4 sm:$0xff]   ;;  %v7309_v51 = vld [vmem:[%s8181_s2 + $0x6c] ss:$16 sps:$4 sm:$0xff]  }
 0x67b   :  { %2677 = vmatprep.subr.bf16.mxu0 %v8657_v41  ;;  %2720 = vmatprep.subr.bf16.mxu1 %v8658_v29  ;;  %8712 = vst [vmem:[#allocation65_spill] sm:$0xff] %v7303_v36  ;;  %8713 = vst [vmem:[#allocation66_spill] sm:$0xff] %v7309_v51  ;;  %v7345_v41 = vld [vmem:[%s8181_s2 + $0x88] ss:$16 sps:$4 sm:$0xff]   ;;  %v7351_v29 = vld [vmem:[%s8181_s2 + $0xa4] ss:$16 sps:$4 sm:$0xff]  }
 0x67c   :  { %8719 = vst [vmem:[#allocation11_spill] sm:$0xff] %v7345_v41  ;;  %8720 = vst [vmem:[#allocation12_spill] sm:$0xff] %v7351_v29 }
 0x67e   :  { %2678 = vmatpush1.bf16.msra.mxu0 %v6855_v28  ;;  %2721 = vmatpush1.bf16.msra.mxu1 %v6861_v54  ;;  %v7327_v28 = vld [vmem:[%s8181_s2 + $0x84] ss:$16 sps:$4 sm:$0xff]   ;;  %v7333_v54 = vld [vmem:[%s8181_s2 + $0x8c] ss:$16 sps:$4 sm:$0xff]  }
 0x67f   :  { %2679 = vmatprep.subr.bf16.mxu0 %v6867_v57  ;;  %2722 = vmatprep.subr.bf16.mxu1 %v6873_v1  ;;  %v7315_v57 = vld [vmem:[%s8181_s2 + $0x60] ss:$16 sps:$4 sm:$0xff]   ;;  %v7321_v1 = vld [vmem:[%s8181_s2 + $0x68] ss:$16 sps:$4 sm:$0xff]   ;;  %8716 = vst [vmem:[#allocation8_spill] sm:$0xff] %v7327_v28  ;;  %8717 = vst [vmem:[#allocation9_spill] sm:$0xff] %v7333_v54 }
 0x680   :  { %8714 = vst [vmem:[#allocation6_spill] sm:$0xff] %v7315_v57  ;;  %8715 = vst [vmem:[#allocation7_spill] sm:$0xff] %v7321_v1 }
 0x682   :  { %2680 = vmatpush1.bf16.msra.mxu0 %v7023_v47  ;;  %2723 = vmatpush1.bf16.msra.mxu1 %v7029_v30 }
 0x683   :  { %2681 = vmatprep.subr.bf16.mxu0 %v7035_v24  ;;  %2724 = vmatprep.subr.bf16.mxu1 %v7041_v31 }
 0x686   :  { %2682 = vmatpush1.bf16.msra.mxu0 %v7047_v46  ;;  %2725 = vmatpush1.bf16.msra.mxu1 %v7053_v17 }
 0x687   :  { %2683 = vmatprep.subr.bf16.mxu0 %v7059_v44  ;;  %2726 = vmatprep.subr.bf16.mxu1 %v7065_v27 }
 0x68a   :  { %2684 = vmatpush1.bf16.msra.mxu0 %v7071_v25  ;;  %2727 = vmatpush1.bf16.msra.mxu1 %v7077_v16 }
 0x68b   :  { %2812 = vmatprep.subr.bf16.mxu0 %v7227_v34  ;;  %2855 = vmatprep.subr.bf16.mxu1 %v7233_v13 }
 0x68d   :  { %2702 = vmatmul.mubr.bf16.vlgmr.msra.gmra.mrb[40].mxu0 %v7178_v49  ;;  %2745 = vmatmul.mubr.bf16.vlgmr.msra.gmra.mrb[56].mxu1 %v7178_v49  ;;  %v7357_v49 = vld [vmem:[%s8181_s2 + $0xac] ss:$16 sps:$4 sm:$0xff]  }
 0x68e   :  { %2813 = vmatpush1.bf16.msra.mxu0 %v7241_v38  ;;  %2856 = vmatpush1.bf16.msra.mxu1 %v7247_v18  ;;  %8721 = vst [vmem:[#allocation13_spill] sm:$0xff] %v7357_v49 }
 0x68f   :  { %2814 = vmatprep.subr.bf16.mxu0 %v7253_v12  ;;  %2857 = vmatprep.subr.bf16.mxu1 %v7259_v63 }
 0x690   :  { %2844 = vmatprep.mubr.bf16.mxu0 %v8494_v33  ;;  %2887 = vmatprep.mubr.bf16.mxu1 %v8494_v33 }
 0x692   :  { %2815 = vmatpush1.bf16.msra.mxu0 %v7267_v40  ;;  %2858 = vmatpush1.bf16.msra.mxu1 %v7273_v35 }
 0x693   :  { %2816 = vmatprep.subr.bf16.mxu0 %v7279_v20  ;;  %2859 = vmatprep.subr.bf16.mxu1 %v7285_v23 }
 0x696   :  { %2817 = vmatpush1.bf16.msra.mxu0 %v7291_v53  ;;  %2860 = vmatpush1.bf16.msra.mxu1 %v7297_v11 }
 0x697   :  { %2818 = vmatprep.subr.bf16.mxu0 %v7303_v36  ;;  %2861 = vmatprep.subr.bf16.mxu1 %v7309_v51 }
 0x69a   :  { %2819 = vmatpush1.bf16.msra.mxu0 %v7315_v57  ;;  %2862 = vmatpush1.bf16.msra.mxu1 %v7321_v1 }
 0x69b   :  { %2820 = vmatprep.subr.bf16.mxu0 %v7327_v28  ;;  %2863 = vmatprep.subr.bf16.mxu1 %v7333_v54 }
 0x69e   :  { %2821 = vmatpush1.bf16.msra.mxu0 %v7339_v9  ;;  %2864 = vmatpush1.bf16.msra.mxu1 %v7345_v41 }
 0x69f   :  { %2822 = vmatprep.subr.bf16.mxu0 %v7351_v29  ;;  %2865 = vmatprep.subr.bf16.mxu1 %v7357_v49 }
 0x6a2   :  { %2823 = vmatpush1.bf16.msra.mxu0 %v7363_v37  ;;  %2866 = vmatpush1.bf16.msra.mxu1 %v7369_v5 }
 0x6a3   :  { %2824 = vmatprep.subr.bf16.mxu0 %v7375_v59  ;;  %2867 = vmatprep.subr.bf16.mxu1 %v7381_v19 }
 0x6a6   :  { %2825 = vmatpush1.bf16.msra.mxu0 %v7387_v43  ;;  %2868 = vmatpush1.bf16.msra.mxu1 %v7393_v39 }
 0x6a7   :  { %2826 = vmatprep.subr.bf16.mxu0 %v7399_v3  ;;  %2869 = vmatprep.subr.bf16.mxu1 %v7405_v8 }
 0x6aa   :  { %2827 = vmatpush1.bf16.msra.mxu0 %v7411_v45  ;;  %2870 = vmatpush1.bf16.msra.mxu1 %v7417_v48 }
 0x6ab   :  { %2955 = vmatprep.subr.bf16.mxu0 %v7423_v26  ;;  %2998 = vmatprep.subr.bf16.mxu1 %v7429_v42 }
 0x6ad   :  { %2845 = vmatmul.mubr.bf16.vlgmr.msra.gmra.mrb[20].mxu0 %v7188_v2  ;;  %2888 = vmatmul.mubr.bf16.vlgmr.msra.gmra.mrb[28].mxu1 %v7188_v2  ;;  %v7475_v2 = vld [vmem:[%s8182_s4 + $0x44] ss:$16 sps:$4 sm:$0xff]  }
 0x6ae   :  { %2956 = vmatpush1.bf16.msra.mxu0 %v7437_v50  ;;  %2999 = vmatpush1.bf16.msra.mxu1 %v7443_v60  ;;  %8740 = vst [vmem:[#allocation40_spill] sm:$0xff] %v7475_v2 }
 0x6af   :  { %2957 = vmatprep.subr.bf16.mxu0 %v7449_v22  ;;  %3000 = vmatprep.subr.bf16.mxu1 %v7455_v56  ;;  %v7481_v56 = vld [vmem:[%s8182_s4 + $0x4c] ss:$16 sps:$4 sm:$0xff]  }
 0x6b0   :  { %2987 = vmatprep.mubr.bf16.mxu0 %v8494_v33  ;;  %3030 = vmatprep.mubr.bf16.mxu1 %v8494_v33  ;;  %8741 = vst [vmem:[#allocation41_spill] sm:$0xff] %v7481_v56 }
 0x6b2   :  { %2958 = vmatpush1.bf16.msra.mxu0 %v7463_v15  ;;  %3001 = vmatpush1.bf16.msra.mxu1 %v7469_v58  ;;  %v7487_v15 = vld [vmem:[%s8182_s4 + $0x40] ss:$16 sps:$4 sm:$0xff]   ;;  %v7493_v58 = vld [vmem:[%s8182_s4 + $0x48] ss:$16 sps:$4 sm:$0xff]  }
 0x6b3   :  { %2959 = vmatprep.subr.bf16.mxu0 %v7475_v2  ;;  %3002 = vmatprep.subr.bf16.mxu1 %v7481_v56  ;;  %8742 = vst [vmem:[#allocation42_spill] sm:$0xff] %v7487_v15  ;;  %8743 = vst [vmem:[#allocation43_spill] sm:$0xff] %v7493_v58  ;;  %v7499_v2 = vld [vmem:[%s8182_s4 + $0x64] ss:$16 sps:$4 sm:$0xff]   ;;  %v7505_v56 = vld [vmem:[%s8182_s4 + $0x6c] ss:$16 sps:$4 sm:$0xff]  }
 0x6b4   :  { %8744 = vst [vmem:[#allocation44_spill] sm:$0xff] %v7499_v2  ;;  %8745 = vst [vmem:[#allocation45_spill] sm:$0xff] %v7505_v56 }
 0x6b6   :  { %2960 = vmatpush1.bf16.msra.mxu0 %v7487_v15  ;;  %3003 = vmatpush1.bf16.msra.mxu1 %v7493_v58  ;;  %v7511_v15 = vld [vmem:[%s8182_s4 + $0x60] ss:$16 sps:$4 sm:$0xff]   ;;  %v7517_v58 = vld [vmem:[%s8182_s4 + $0x68] ss:$16 sps:$4 sm:$0xff]  }
 0x6b7   :  { %2961 = vmatprep.subr.bf16.mxu0 %v7499_v2  ;;  %3004 = vmatprep.subr.bf16.mxu1 %v7505_v56  ;;  %8746 = vst [vmem:[#allocation46_spill] sm:$0xff] %v7511_v15  ;;  %8747 = vst [vmem:[#allocation47_spill] sm:$0xff] %v7517_v58  ;;  %v7523_v2 = vld [vmem:[%s8182_s4 + $0x84] ss:$16 sps:$4 sm:$0xff]   ;;  %v7529_v56 = vld [vmem:[%s8182_s4 + $0x8c] ss:$16 sps:$4 sm:$0xff]  }
 0x6b8   :  { %8748 = vst [vmem:[#allocation48_spill] sm:$0xff] %v7523_v2  ;;  %8749 = vst [vmem:[#allocation49_spill] sm:$0xff] %v7529_v56 }
 0x6ba   :  { %2962 = vmatpush1.bf16.msra.mxu0 %v7511_v15  ;;  %3005 = vmatpush1.bf16.msra.mxu1 %v7517_v58  ;;  %v7535_v15 = vld [vmem:[%s8182_s4 + $0x80] ss:$16 sps:$4 sm:$0xff]   ;;  %v7541_v58 = vld [vmem:[%s8182_s4 + $0x88] ss:$16 sps:$4 sm:$0xff]  }
 0x6bb   :  { %2963 = vmatprep.subr.bf16.mxu0 %v7523_v2  ;;  %3006 = vmatprep.subr.bf16.mxu1 %v7529_v56  ;;  %8750 = vst [vmem:[#allocation50_spill] sm:$0xff] %v7535_v15  ;;  %8751 = vst [vmem:[#allocation51_spill] sm:$0xff] %v7541_v58  ;;  %v7547_v2 = vld [vmem:[%s8182_s4 + $0xa4] ss:$16 sps:$4 sm:$0xff]   ;;  %v7553_v56 = vld [vmem:[%s8182_s4 + $0xac] ss:$16 sps:$4 sm:$0xff]  }
 0x6bc   :  { %8752 = vst [vmem:[#allocation52_spill] sm:$0xff] %v7547_v2  ;;  %8753 = vst [vmem:[#allocation53_spill] sm:$0xff] %v7553_v56 }
 0x6be   :  { %2964 = vmatpush1.bf16.msra.mxu0 %v7535_v15  ;;  %3007 = vmatpush1.bf16.msra.mxu1 %v7541_v58  ;;  %v7559_v15 = vld [vmem:[%s8182_s4 + $0xa0] ss:$16 sps:$4 sm:$0xff]   ;;  %v7565_v58 = vld [vmem:[%s8182_s4 + $0xa8] ss:$16 sps:$4 sm:$0xff]  }
 0x6bf   :  { %2965 = vmatprep.subr.bf16.mxu0 %v7547_v2  ;;  %3008 = vmatprep.subr.bf16.mxu1 %v7553_v56  ;;  %8754 = vst [vmem:[#allocation54_spill] sm:$0xff] %v7559_v15  ;;  %8755 = vst [vmem:[#allocation55_spill] sm:$0xff] %v7565_v58  ;;  %v7571_v2 = vld [vmem:[%s8182_s4 + $0xc4] ss:$16 sps:$4 sm:$0xff]   ;;  %v7577_v56 = vld [vmem:[%s8182_s4 + $0xcc] ss:$16 sps:$4 sm:$0xff]  }
 0x6c0   :  { %8756 = vst [vmem:[#allocation56_spill] sm:$0xff] %v7571_v2  ;;  %8757 = vst [vmem:[#allocation57_spill] sm:$0xff] %v7577_v56 }
 0x6c2   :  { %2966 = vmatpush1.bf16.msra.mxu0 %v7559_v15  ;;  %3009 = vmatpush1.bf16.msra.mxu1 %v7565_v58  ;;  %v7583_v15 = vld [vmem:[%s8182_s4 + $0xc0] ss:$16 sps:$4 sm:$0xff]   ;;  %v7589_v58 = vld [vmem:[%s8182_s4 + $0xc8] ss:$16 sps:$4 sm:$0xff]  }
 0x6c3   :  { %2967 = vmatprep.subr.bf16.mxu0 %v7571_v2  ;;  %3010 = vmatprep.subr.bf16.mxu1 %v7577_v56  ;;  %8758 = vst [vmem:[#allocation58_spill] sm:$0xff] %v7583_v15  ;;  %8759 = vst [vmem:[#allocation59_spill] sm:$0xff] %v7589_v58  ;;  %v7595_v2 = vld [vmem:[%s8182_s4 + $0xe4] ss:$16 sps:$4 sm:$0xff]   ;;  %v7601_v56 = vld [vmem:[%s8182_s4 + $0xec] ss:$16 sps:$4 sm:$0xff]  }
 0x6c4   :  { %8760 = vst [vmem:[#allocation60_spill] sm:$0xff] %v7595_v2  ;;  %8761 = vst [vmem:[#allocation61_spill] sm:$0xff] %v7601_v56 }
 0x6c6   :  { %2968 = vmatpush1.bf16.msra.mxu0 %v7583_v15  ;;  %3011 = vmatpush1.bf16.msra.mxu1 %v7589_v58  ;;  %v7607_v15 = vld [vmem:[%s8182_s4 + $0xe0] ss:$16 sps:$4 sm:$0xff]   ;;  %v7613_v58 = vld [vmem:[%s8182_s4 + $0xe8] ss:$16 sps:$4 sm:$0xff]  }
 0x6c7   :  { %2969 = vmatprep.subr.bf16.mxu0 %v7595_v2  ;;  %3012 = vmatprep.subr.bf16.mxu1 %v7601_v56  ;;  %8762 = vst [vmem:[#allocation62_spill] sm:$0xff] %v7607_v15  ;;  %8763 = vst [vmem:[#allocation63_spill] sm:$0xff] %v7613_v58  ;;  %v7619_v2 = vld [vmem:[%s8183_s5 + $0x4] ss:$16 sps:$4 sm:$0xff]   ;;  %v7625_v56 = vld [vmem:[%s8183_s5 + $0xc] ss:$16 sps:$4 sm:$0xff]  }
 0x6c8   :  { %8764 = vst [vmem:[#allocation64_spill] sm:$0xff] %v7619_v2  ;;  %8765 = vst [vmem:[#allocation67_spill] sm:$0xff] %v7625_v56 }
 0x6ca   :  { %2970 = vmatpush1.bf16.msra.mxu0 %v7607_v15  ;;  %3013 = vmatpush1.bf16.msra.mxu1 %v7613_v58 }
 0x6cb   :  { %3041 = vmatprep.subr.bf16.mxu0 %v7619_v2  ;;  %3084 = vmatprep.subr.bf16.mxu1 %v7625_v56 }
 0x760   :  { %v2703_v15 = vpop.f32.mrb[40].mxu0  ;;  %v2746_v22 = vpop.f32.mrb[56].mxu1 }
 0x761   :  { %v2755_v60 = vadd.f32 %v2703_v15, %v8710_v61  ;;  %v2705_v50 = vpop.f32.mrb[41].mxu0  ;;  %v2748_v58 = vpop.f32.mrb[57].mxu1  ;;  %v2757_v15 = vadd.f32 %v2746_v22, %v6241_v7 }
 0x762   :  { %v2756_v42 = vadd.f32 %v2705_v50, %v6234_v55  ;;  %v2707_v26 = vpop.f32.mrb[42].mxu0  ;;  %v2750_v48 = vpop.f32.mrb[58].mxu1  ;;  %v2758_v50 = vadd.f32 %v2748_v58, %v8711_v52 }
 0x763   :  { %v4216_v45 = vmul.f32 -1.442695, %v2755_v60  ;;  %v2759_v2 = vadd.f32 %v2707_v26, %v8710_v61  ;;  %v2709_v8 = vpop.f32.mrb[43].mxu0  ;;  %v2752_v3 = vpop.f32.mrb[59].mxu1  ;;  %v2761_v59 = vadd.f32 %v2750_v48, %v6241_v7  ;;  %v4218_v60 = vmul.f32 -1.442695, %v2757_v15 }
 0x764   :  { %v4217_v39 = vmul.f32 -1.442695, %v2756_v42  ;;  %v2760_v43 = vadd.f32 %v2709_v8, %v6234_v55  ;;  %v2762_v42 = vadd.f32 %v2752_v3, %v8711_v52 }
 0x765   :  { %4939 = vpow2.f32 %v4216_v45  ;;  %v4219_v56 = vmul.f32 -1.442695, %v2759_v2  ;;  %v4221_v5 = vmul.f32 -1.442695, %v2761_v59 }
 0x766   :  { %v4220_v19 = vmul.f32 -1.442695, %v2760_v43  ;;  %4941 = vpow2.f32 %v4217_v39 }
 0x767   :  { %4943 = vpow2.f32 %v4219_v56 }
 0x768   :  { %4945 = vpow2.f32 %v4220_v19 }
 0x769   :  { %4947 = vtanh.f32 %v2758_v50 }
 0x76a   :  { %4949 = vpow2.f32 %v4218_v60 }
 0x76b   :  { %4951 = vpow2.f32 %v4221_v5 }
 0x76f   :  { %v4940_v26 = vpop.eup %4939 }
 0x770   :  { %v2781_v61 = vadd.f32 1.0, %v4940_v26  ;;  %v4942_v8 = vpop.eup %4941 }
 0x771   :  { %v4944_v43 = vpop.eup %4943  ;;  %v2782_v39 = vadd.f32 1.0, %v4942_v8 }
 0x772   :  { %4953 = vrcp.f32 %v2781_v61  ;;  %v2784_v45 = vadd.f32 1.0, %v4944_v43  ;;  %v4946_v22 = vpop.eup %4945 }
 0x773   :  { %4955 = vtanh.f32 %v2762_v42  ;;  %v2785_v19 = vadd.f32 1.0, %v4946_v22  ;;  %v4948_v48 = vpop.eup %4947 }
 0x774   :  { %4957 = vrcp.f32 %v2782_v39  ;;  %v4950_v59 = vpop.eup %4949 }
 0x775   :  { %4959 = vrcp.f32 %v2784_v45  ;;  %v4952_v56 = vpop.eup %4951  ;;  %v2783_v50 = vadd.f32 1.0, %v4950_v59 }
 0x776   :  { %4961 = vrcp.f32 %v2785_v19  ;;  %v2786_v61 = vadd.f32 1.0, %v4952_v56 }
 0x777   :  { %4963 = vrcp.f32 %v2783_v50 }
 0x778   :  { %4965 = vrcp.f32 %v2786_v61 }
 0x77c   :  { %v4954_v58 = vpop.eup %4953 }
 0x77d   :  { %v4956_v2 = vpop.eup %4955  ;;  %v2803_v3 = vmul.f32 %v4954_v58, %v4948_v48 }
 0x77e   :  { %v4958_v15 = vpop.eup %4957 }
 0x77f   :  { %v4960_v60 = vpop.eup %4959  ;;  %v2801_v5 = vmul.f32 %v4958_v15, %v7163_v4 }
 0x780   :  { %v2804_v26 = vmul.f32 %v4960_v60, %v4956_v2  ;;  %v2846_v8 = vpop.f32.mrb[20].mxu0  ;;  %v2889_v42 = vpop.f32.mrb[28].mxu1 }
 0x781   :  { %v4962_v43 = vpop.eup %4961  ;;  %v7637_v39 = vadd.f32 %v2803_v3, %v2801_v5  ;;  %v4318_v45 = vadd.f32 %v2846_v8, %v8541_v0  ;;  %v2848_v22 = vpop.f32.mrb[21].mxu0  ;;  %v4358_v61 = vadd.f32 %v2889_v42, %v8543_v32 }
 0x782   :  { %v2891_v19 = vpop.f32.mrb[29].mxu1  ;;  %v2802_v52 = vmul.f32 %v4962_v43, %v7170_v10  ;;  %v4319_v48 = vadd.f32 %v2848_v22, %v8542_v6  ;;  %v2850_v59 = vpop.f32.mrb[22].mxu0 }
 0x783   :  { %v2893_v58 = vpop.f32.mrb[30].mxu1  ;;  %v4222_v4 = vmul.f32 -1.442695, %v4318_v45  ;;  %v4320_v56 = vadd.f32 %v2850_v59, %v8541_v0  ;;  %v2852_v2 = vpop.f32.mrb[23].mxu0  ;;  %4967 = vtanh.f32 %v7637_v39  ;;  %v4359_v45 = vadd.f32 %v2891_v19, %v5953_v14 }
 0x784   :  { %v2895_v15 = vpop.f32.mrb[31].mxu1  ;;  %v7644_v3 = vadd.f32 %v2804_v26, %v2802_v52  ;;  %v4223_v60 = vmul.f32 -1.442695, %v4319_v48  ;;  %v4321_v50 = vadd.f32 %v2852_v2, %v8542_v6  ;;  %v4360_v8 = vadd.f32 %v2893_v58, %v8543_v32  ;;  %v4964_v43 = vpop.eup %4963 }
 0x785   :  { %4969 = vpow2.f32 %v4222_v4  ;;  %v4225_v5 = vmul.f32 -1.442695, %v4320_v56  ;;  %v4966_v52 = vpop.eup %4965  ;;  %v4224_v26 = vmul.f32 -1.442695, %v4358_v61  ;;  %v4361_v2 = vadd.f32 %v2895_v15, %v5953_v14 }
 0x786   :  { %4971 = vtanh.f32 %v7644_v3  ;;  %v4226_v10 = vmul.f32 -1.442695, %v4321_v50  ;;  %v4227_v59 = vmul.f32 -1.442695, %v4360_v8 }
 0x787   :  { %4973 = vpow2.f32 %v4223_v60 }
 0x788   :  { %4975 = vpow2.f32 %v4225_v5 }
 0x789   :  { %4977 = vpow2.f32 %v4226_v10 }
 0x78a   :  { %4979 = vtanh.f32 %v4359_v45 }
 0x78b   :  { %4981 = vpow2.f32 %v4224_v26 }
 0x78d   :  { %v4968_v22 = vpop.eup %4967 }
 0x78e   :  { %v2809_v60 = vmul.f32 %v4968_v22, %v4964_v43 }
 0x78f   :  { %v4970_v48 = vpop.eup %4969 }
 0x790   :  { %v4972_v4 = vpop.eup %4971  ;;  %v2924_v56 = vadd.f32 1.0, %v4970_v48 }
 0x791   :  { %v2810_v42 = vmul.f32 %v4972_v4, %v4966_v52  ;;  %v4974_v5 = vpop.eup %4973 }
 0x792   :  { %4983 = vrcp.f32 %v2924_v56  ;;  %v4976_v58 = vpop.eup %4975  ;;  %v2925_v50 = vadd.f32 1.0, %v4974_v5 }
 0x793   :  { %4985 = vpow2.f32 %v4227_v59  ;;  %v7652_v10 = vpack.c.bf16 %v2810_v42, %v2809_v60  ;;  %v2927_v19 = vadd.f32 1.0, %v4976_v58  ;;  %v4978_v61 = vpop.eup %4977 }
 0x794   :  { %4987 = vtanh.f32 %v4361_v2  ;;  %v2928_v8 = vadd.f32 1.0, %v4978_v61  ;;  %v4980_v45 = vpop.eup %4979 }
 0x795   :  { %4989 = vrcp.f32 %v2925_v50  ;;  %v4982_v48 = vpop.eup %4981 }
 0x796   :  { %4991 = vrcp.f32 %v2927_v19  ;;  %v2926_v56 = vadd.f32 1.0, %v4982_v48 }
 0x797   :  { %4993 = vrcp.f32 %v2928_v8 }
 0x798   :  { %4995 = vrcp.f32 %v2926_v56  ;;  %v7707_v56 = vld [vmem:[%s8183_s5 + $0x44] ss:$16 sps:$4 sm:$0xff]  }
 0x79c   :  { %v4984_v15 = vpop.eup %4983 }
 0x79d   :  { %v4986_v26 = vpop.eup %4985  ;;  %v2946_v43 = vmul.f32 %v4984_v15, %v4980_v45 }
 0x79e   :  { %v4988_v52 = vpop.eup %4987  ;;  %v2929_v2 = vadd.f32 1.0, %v4986_v26  ;;  %v7675_v26 = vld [vmem:[%s8183_s5 + $0x8] ss:$16 sps:$4 sm:$0xff]  }
 0x79f   :  { %v4990_v22 = vpop.eup %4989 }
 0x7a0   :  { %v4992_v4 = vpop.eup %4991  ;;  %v2944_v59 = vmul.f32 %v4990_v22, %v7181_v62  ;;  %v7695_v22 = vld [vmem:[%s8183_s5 + $0x20] ss:$16 sps:$4 sm:$0xff]  }
 0x7a1   :  { %v2947_v60 = vmul.f32 %v4992_v4, %v4988_v52  ;;  %v4994_v42 = vpop.eup %4993  ;;  %v7687_v52 = vld [vmem:[%s8183_s5 + $0x2c] ss:$16 sps:$4 sm:$0xff]   ;;  %v7701_v4 = vld [vmem:[%s8183_s5 + $0x28] ss:$16 sps:$4 sm:$0xff]  }
 0x7a2   :  { %v7655_v5 = vadd.f32 %v2946_v43, %v2944_v59  ;;  %v2945_v58 = vmul.f32 %v4994_v42, %v7185_v21  ;;  %v4996_v19 = vpop.eup %4995  ;;  %v7669_v21 = vld [vmem:[%s8183_s5] ss:$16 sps:$4 sm:$0xff]   ;;  %v7681_v43 = vld [vmem:[%s8183_s5 + $0x24] ss:$16 sps:$4 sm:$0xff]   ;;  %v7713_v59 = vld [vmem:[%s8183_s5 + $0x4c] ss:$16 sps:$4 sm:$0xff]  }
 0x7a3   :  { %v7725_v42 = vld [vmem:[%s8183_s5 + $0x48] ss:$16 sps:$4 sm:$0xff]  }
 0x7a4   :  { %4997 = vtanh.f32 %v7655_v5  ;;  %v7659_v50 = vadd.f32 %v2947_v60, %v2945_v58  ;;  %v7719_v60 = vld [vmem:[%s8183_s5 + $0x40] ss:$16 sps:$4 sm:$0xff]   ;;  %v7737_v58 = vld [vmem:[%s8183_s5 + $0x6c] ss:$16 sps:$4 sm:$0xff]  }
 0x7a5   :  { %4999 = vrcp.f32 %v2929_v2  ;;  %v7731_v2 = vld [vmem:[%s8183_s5 + $0x64] ss:$16 sps:$4 sm:$0xff]  }
 0x7a6   :  { %5001 = vtanh.f32 %v7659_v50 }
 0x7ae   :  { %v4998_v61 = vpop.eup %4997 }
 0x7af   :  { %v5000_v8 = vpop.eup %4999  ;;  %v2952_v62 = vmul.f32 %v4998_v61, %v4996_v19  ;;  %v7743_v19 = vld [vmem:[%s8183_s5 + $0x60] ss:$16 sps:$4 sm:$0xff]   ;;  %v7749_v61 = vld [vmem:[%s8183_s5 + $0x68] ss:$16 sps:$4 sm:$0xff]  }
 0x7b0   :  { %v5002_v45 = vpop.eup %5001 }
 0x7b1   :  { %v2953_v48 = vmul.f32 %v5002_v45, %v5000_v8  ;;  %v7755_v8 = vld [vmem:[%s8183_s5 + $0x84] ss:$16 sps:$4 sm:$0xff]   ;;  %v7761_v45 = vld [vmem:[%s8183_s5 + $0x8c] ss:$16 sps:$4 sm:$0xff]  }
 0x7b2   :  { %8766 = vst [vmem:[#allocation68_spill] sm:$0xff] %v7755_v8  ;;  %8767 = vst [vmem:[#allocation69_spill] sm:$0xff] %v7761_v45 }
 0x7b3   :  { %v7662_v15 = vpack.c.bf16 %v2953_v48, %v2952_v62  ;;  %v7767_v62 = vld [vmem:[%s8183_s5 + $0x80] ss:$16 sps:$4 sm:$0xff]   ;;  %v7773_v48 = vld [vmem:[%s8183_s5 + $0x88] ss:$16 sps:$4 sm:$0xff]  }
 0x7b5   :  { %2988 = vmatmul.mubr.bf16.vlgmr.msra.gmra.mrb[44].mxu0 %v7662_v15  ;;  %3031 = vmatmul.mubr.bf16.vlgmr.msra.gmra.mrb[60].mxu1 %v7662_v15 }
 0x7b6   :  { %3042 = vmatpush1.bf16.msra.mxu0 %v7669_v21  ;;  %3085 = vmatpush1.bf16.msra.mxu1 %v7675_v26 }
 0x7b7   :  { %3043 = vmatprep.subr.bf16.mxu0 %v7681_v43  ;;  %3086 = vmatprep.subr.bf16.mxu1 %v7687_v52 }
 0x7b8   :  { %3073 = vmatprep.mubr.bf16.mxu0 %v8494_v33  ;;  %3116 = vmatprep.mubr.bf16.mxu1 %v8494_v33 }
 0x7ba   :  { %3044 = vmatpush1.bf16.msra.mxu0 %v7695_v22  ;;  %3087 = vmatpush1.bf16.msra.mxu1 %v7701_v4 }
 0x7bb   :  { %3045 = vmatprep.subr.bf16.mxu0 %v7707_v56  ;;  %3088 = vmatprep.subr.bf16.mxu1 %v7713_v59 }
 0x7be   :  { %3046 = vmatpush1.bf16.msra.mxu0 %v7719_v60  ;;  %3089 = vmatpush1.bf16.msra.mxu1 %v7725_v42 }
 0x7bf   :  { %3047 = vmatprep.subr.bf16.mxu0 %v7731_v2  ;;  %3090 = vmatprep.subr.bf16.mxu1 %v7737_v58 }
 0x7c2   :  { %3048 = vmatpush1.bf16.msra.mxu0 %v7743_v19  ;;  %3091 = vmatpush1.bf16.msra.mxu1 %v7749_v61 }
 0x7c3   :  { %3049 = vmatprep.subr.bf16.mxu0 %v7755_v8  ;;  %3092 = vmatprep.subr.bf16.mxu1 %v7761_v45  ;;  %v7779_v8 = vld [vmem:[%s8183_s5 + $0xa4] ss:$16 sps:$4 sm:$0xff]   ;;  %v7785_v45 = vld [vmem:[%s8183_s5 + $0xac] ss:$16 sps:$4 sm:$0xff]  }
 0x7c6   :  { %3050 = vmatpush1.bf16.msra.mxu0 %v7767_v62  ;;  %3093 = vmatpush1.bf16.msra.mxu1 %v7773_v48 }
 0x7c7   :  { %3051 = vmatprep.subr.bf16.mxu0 %v7779_v8  ;;  %3094 = vmatprep.subr.bf16.mxu1 %v7785_v45 }
 0x7ca   :  { %3052 = vmatpush1.bf16.msra.mxu0 %v7023_v47  ;;  %3095 = vmatpush1.bf16.msra.mxu1 %v7029_v30  ;;  %v8768_v47 = vld [vmem:[#allocation15_spill] sm:$0xff]  ;;  %v8769_v30 = vld [vmem:[#allocation16_spill] sm:$0xff] }
 0x7cb   :  { %3053 = vmatprep.subr.bf16.mxu0 %v7035_v24  ;;  %3096 = vmatprep.subr.bf16.mxu1 %v7041_v31  ;;  %v8770_v24 = vld [vmem:[#allocation17_spill] sm:$0xff]  ;;  %v8771_v31 = vld [vmem:[#allocation18_spill] sm:$0xff] }
 0x7ce   :  { %3054 = vmatpush1.bf16.msra.mxu0 %v7047_v46  ;;  %3097 = vmatpush1.bf16.msra.mxu1 %v7053_v17  ;;  %v8772_v46 = vld [vmem:[#allocation19_spill] sm:$0xff]  ;;  %v8773_v17 = vld [vmem:[#allocation20_spill] sm:$0xff] }
 0x7cf   :  { %3055 = vmatprep.subr.bf16.mxu0 %v7059_v44  ;;  %3098 = vmatprep.subr.bf16.mxu1 %v7065_v27  ;;  %v8774_v44 = vld [vmem:[#allocation21_spill] sm:$0xff]  ;;  %v8775_v27 = vld [vmem:[#allocation22_spill] sm:$0xff] }
 0x7d2   :  { %3056 = vmatpush1.bf16.msra.mxu0 %v7071_v25  ;;  %3099 = vmatpush1.bf16.msra.mxu1 %v7077_v16  ;;  %v8776_v25 = vld [vmem:[#allocation23_spill] sm:$0xff]  ;;  %v8777_v16 = vld [vmem:[#allocation24_spill] sm:$0xff] }
 0x7d3   :  { %3184 = vmatprep.subr.bf16.mxu0 %v7227_v34  ;;  %3227 = vmatprep.subr.bf16.mxu1 %v7233_v13 }
 0x7d5   :  { %3074 = vmatmul.mubr.bf16.vlgmr.msra.gmra.mrb[44].mxu0 %v7652_v10  ;;  %3117 = vmatmul.mubr.bf16.vlgmr.msra.gmra.mrb[60].mxu1 %v7652_v10  ;;  %v8778_v10 = vld [vmem:[#allocation33_spill] sm:$0xff] }
 0x7d6   :  { %3185 = vmatpush1.bf16.msra.mxu0 %v7241_v38  ;;  %3228 = vmatpush1.bf16.msra.mxu1 %v7247_v18 }
 0x7d7   :  { %3186 = vmatprep.subr.bf16.mxu0 %v7253_v12  ;;  %3229 = vmatprep.subr.bf16.mxu1 %v7259_v63 }
 0x7d8   :  { %3216 = vmatprep.mubr.bf16.mxu0 %v8494_v33  ;;  %3259 = vmatprep.mubr.bf16.mxu1 %v8494_v33 }
 0x7da   :  { %3187 = vmatpush1.bf16.msra.mxu0 %v7267_v40  ;;  %3230 = vmatpush1.bf16.msra.mxu1 %v7273_v35 }
 0x7db   :  { %3188 = vmatprep.subr.bf16.mxu0 %v7279_v20  ;;  %3231 = vmatprep.subr.bf16.mxu1 %v7285_v23 }
 0x7de   :  { %3189 = vmatpush1.bf16.msra.mxu0 %v7291_v53  ;;  %3232 = vmatpush1.bf16.msra.mxu1 %v7297_v11 }
 0x7df   :  { %3190 = vmatprep.subr.bf16.mxu0 %v7303_v36  ;;  %3233 = vmatprep.subr.bf16.mxu1 %v7309_v51 }
 0x7e2   :  { %3191 = vmatpush1.bf16.msra.mxu0 %v7315_v57  ;;  %3234 = vmatpush1.bf16.msra.mxu1 %v7321_v1 }
 0x7e3   :  { %3192 = vmatprep.subr.bf16.mxu0 %v7327_v28  ;;  %3235 = vmatprep.subr.bf16.mxu1 %v7333_v54 }
 0x7e6   :  { %3193 = vmatpush1.bf16.msra.mxu0 %v7339_v9  ;;  %3236 = vmatpush1.bf16.msra.mxu1 %v7345_v41 }
 0x7e7   :  { %3194 = vmatprep.subr.bf16.mxu0 %v7351_v29  ;;  %3237 = vmatprep.subr.bf16.mxu1 %v7357_v49 }
 0x7ea   :  { %3195 = vmatpush1.bf16.msra.mxu0 %v7363_v37  ;;  %3238 = vmatpush1.bf16.msra.mxu1 %v8768_v47  ;;  %v8811_v47 = vld [vmem:[#allocation2_spill] sm:$0xff] }
 0x7eb   :  { %3196 = vmatprep.subr.bf16.mxu0 %v8769_v30  ;;  %3239 = vmatprep.subr.bf16.mxu1 %v8770_v24  ;;  %v8779_v24 = vld [vmem:[#allocation34_spill] sm:$0xff]  ;;  %v8793_v30 = vld [vmem:[#allocation48_spill] sm:$0xff] }
 0x7ee   :  { %3197 = vmatpush1.bf16.msra.mxu0 %v8771_v31  ;;  %3240 = vmatpush1.bf16.msra.mxu1 %v8772_v46  ;;  %v8780_v31 = vld [vmem:[#allocation35_spill] sm:$0xff]  ;;  %v8781_v46 = vld [vmem:[#allocation36_spill] sm:$0xff] }
 0x7ef   :  { %3198 = vmatprep.subr.bf16.mxu0 %v8773_v17  ;;  %3241 = vmatprep.subr.bf16.mxu1 %v8774_v44  ;;  %v8782_v17 = vld [vmem:[#allocation37_spill] sm:$0xff]  ;;  %v8792_v44 = vld [vmem:[#allocation47_spill] sm:$0xff] }
 0x7f2   :  { %3199 = vmatpush1.bf16.msra.mxu0 %v8775_v27  ;;  %3242 = vmatpush1.bf16.msra.mxu1 %v8776_v25  ;;  %v8783_v25 = vld [vmem:[#allocation38_spill] sm:$0xff]  ;;  %v8786_v27 = vld [vmem:[#allocation41_spill] sm:$0xff] }
 0x7f3   :  { %3327 = vmatprep.subr.bf16.mxu0 %v8777_v16  ;;  %3370 = vmatprep.subr.bf16.mxu1 %v8778_v10  ;;  %v8784_v16 = vld [vmem:[#allocation39_spill] sm:$0xff]  ;;  %v8785_v10 = vld [vmem:[#allocation40_spill] sm:$0xff] }
 0x7f5   :  { %3217 = vmatmul.mubr.bf16.vlgmr.msra.gmra.mrb[48].mxu0 %v7662_v15  ;;  %3260 = vmatmul.mubr.bf16.vlgmr.msra.gmra.mrb[32].mxu1 %v7662_v15  ;;  %v8787_v15 = vld [vmem:[#allocation42_spill] sm:$0xff] }
 0x7f6   :  { %3328 = vmatpush1.bf16.msra.mxu0 %v8779_v24  ;;  %3371 = vmatpush1.bf16.msra.mxu1 %v8780_v31  ;;  %v8788_v24 = vld [vmem:[#allocation43_spill] sm:$0xff]  ;;  %v8789_v31 = vld [vmem:[#allocation44_spill] sm:$0xff] }
 0x7f7   :  { %3329 = vmatprep.subr.bf16.mxu0 %v8781_v46  ;;  %3372 = vmatprep.subr.bf16.mxu1 %v8782_v17  ;;  %v8790_v46 = vld [vmem:[#allocation45_spill] sm:$0xff]  ;;  %v8791_v17 = vld [vmem:[#allocation46_spill] sm:$0xff] }
 0x7f8   :  { %3359 = vmatprep.mubr.bf16.mxu0 %v8494_v33  ;;  %3402 = vmatprep.mubr.bf16.mxu1 %v8494_v33 }
 0x7fa   :  { %3330 = vmatpush1.bf16.msra.mxu0 %v8783_v25  ;;  %3373 = vmatpush1.bf16.msra.mxu1 %v8784_v16  ;;  %v8794_v25 = vld [vmem:[#allocation49_spill] sm:$0xff]  ;;  %v8795_v16 = vld [vmem:[#allocation50_spill] sm:$0xff] }
 0x7fb   :  { %3331 = vmatprep.subr.bf16.mxu0 %v8785_v10  ;;  %3374 = vmatprep.subr.bf16.mxu1 %v8786_v27  ;;  %v8796_v10 = vld [vmem:[#allocation51_spill] sm:$0xff]  ;;  %v8797_v27 = vld [vmem:[#allocation52_spill] sm:$0xff] }
 0x7fe   :  { %3332 = vmatpush1.bf16.msra.mxu0 %v8787_v15  ;;  %3375 = vmatpush1.bf16.msra.mxu1 %v8788_v24  ;;  %v8798_v15 = vld [vmem:[#allocation53_spill] sm:$0xff]  ;;  %v8799_v24 = vld [vmem:[#allocation54_spill] sm:$0xff] }
 0x7ff   :  { %3333 = vmatprep.subr.bf16.mxu0 %v8789_v31  ;;  %3376 = vmatprep.subr.bf16.mxu1 %v8790_v46  ;;  %v8800_v31 = vld [vmem:[#allocation55_spill] sm:$0xff]  ;;  %v8801_v46 = vld [vmem:[#allocation56_spill] sm:$0xff] }
 0x802   :  { %3334 = vmatpush1.bf16.msra.mxu0 %v8791_v17  ;;  %3377 = vmatpush1.bf16.msra.mxu1 %v8792_v44  ;;  %v8802_v17 = vld [vmem:[#allocation57_spill] sm:$0xff]  ;;  %v8803_v44 = vld [vmem:[#allocation58_spill] sm:$0xff] }
 0x803   :  { %3335 = vmatprep.subr.bf16.mxu0 %v8793_v30  ;;  %3378 = vmatprep.subr.bf16.mxu1 %v8794_v25  ;;  %v8804_v30 = vld [vmem:[#allocation59_spill] sm:$0xff]  ;;  %v8805_v25 = vld [vmem:[#allocation60_spill] sm:$0xff] }
 0x806   :  { %3336 = vmatpush1.bf16.msra.mxu0 %v8795_v16  ;;  %3379 = vmatpush1.bf16.msra.mxu1 %v8796_v10  ;;  %v8806_v16 = vld [vmem:[#allocation61_spill] sm:$0xff]  ;;  %v8807_v10 = vld [vmem:[#allocation62_spill] sm:$0xff] }
 0x807   :  { %3337 = vmatprep.subr.bf16.mxu0 %v8797_v27  ;;  %3380 = vmatprep.subr.bf16.mxu1 %v8798_v15  ;;  %v8808_v27 = vld [vmem:[#allocation63_spill] sm:$0xff]  ;;  %v8809_v15 = vld [vmem:[#allocation64_spill] sm:$0xff] }
 0x80a   :  { %3338 = vmatpush1.bf16.msra.mxu0 %v8799_v24  ;;  %3381 = vmatpush1.bf16.msra.mxu1 %v8800_v31  ;;  %v8810_v24 = vld [vmem:[#allocation67_spill] sm:$0xff] }
 0x80b   :  { %3339 = vmatprep.subr.bf16.mxu0 %v8801_v46  ;;  %3382 = vmatprep.subr.bf16.mxu1 %v8802_v17 }
 0x80e   :  { %3340 = vmatpush1.bf16.msra.mxu0 %v8803_v44  ;;  %3383 = vmatpush1.bf16.msra.mxu1 %v8804_v30 }
 0x80f   :  { %3341 = vmatprep.subr.bf16.mxu0 %v8805_v25  ;;  %3384 = vmatprep.subr.bf16.mxu1 %v8806_v16 }
 0x812   :  { %3342 = vmatpush1.bf16.msra.mxu0 %v8807_v10  ;;  %3385 = vmatpush1.bf16.msra.mxu1 %v8808_v27 }
 0x813   :  { %3413 = vmatprep.subr.bf16.mxu0 %v8809_v15  ;;  %3456 = vmatprep.subr.bf16.mxu1 %v8810_v24 }
 0x8a8   :  { %v3075_v31 = vpop.f32.mrb[44].mxu0  ;;  %v3118_v46 = vpop.f32.mrb[60].mxu1 }
 0x8a9   :  { %v3127_v17 = vadd.f32 %v3075_v31, %v8811_v47  ;;  %v3077_v37 = vpop.f32.mrb[45].mxu0  ;;  %v3120_v44 = vpop.f32.mrb[61].mxu1  ;;  %v3129_v31 = vadd.f32 %v3118_v46, %v6241_v7 }
 0x8aa   :  { %v3128_v30 = vadd.f32 %v3077_v37, %v6234_v55  ;;  %v3079_v49 = vpop.f32.mrb[46].mxu0  ;;  %v3122_v25 = vpop.f32.mrb[62].mxu1  ;;  %v8812_v37 = vld [vmem:[#allocation5_spill] sm:$0xff] }
 0x8ab   :  { %v4228_v29 = vmul.f32 -1.442695, %v3127_v17  ;;  %v3131_v16 = vadd.f32 %v3079_v49, %v8811_v47  ;;  %v3081_v10 = vpop.f32.mrb[47].mxu0  ;;  %v3124_v41 = vpop.f32.mrb[63].mxu1  ;;  %v3133_v54 = vadd.f32 %v3122_v25, %v6241_v7  ;;  %v3130_v28 = vadd.f32 %v3120_v44, %v8812_v37 }
 0x8ac   :  { %v4229_v27 = vmul.f32 -1.442695, %v3128_v30  ;;  %v3132_v15 = vadd.f32 %v3081_v10, %v6234_v55  ;;  %v4230_v17 = vmul.f32 -1.442695, %v3129_v31  ;;  %v3134_v30 = vadd.f32 %v3124_v41, %v8812_v37  ;;  %v8815_v37 = vld [vmem:[#allocation27_spill] sm:$0xff] }
 0x8ad   :  { %5003 = vpow2.f32 %v4228_v29  ;;  %v4231_v24 = vmul.f32 -1.442695, %v3131_v16  ;;  %v4233_v1 = vmul.f32 -1.442695, %v3133_v54  ;;  %v324_v7 = vadd.f32 %v8815_v37, %v8541_v0 }
 0x8ae   :  { %v4232_v9 = vmul.f32 -1.442695, %v3132_v15  ;;  %5005 = vpow2.f32 %v4229_v27 }
 0x8af   :  { %5007 = vpow2.f32 %v4231_v24 }
 0x8b0   :  { %5009 = vpow2.f32 %v4232_v9 }
 0x8b1   :  { %5011 = vtanh.f32 %v3130_v28 }
 0x8b2   :  { %5013 = vpow2.f32 %v4230_v17 }
 0x8b3   :  { %5015 = vpow2.f32 %v4233_v1  ;;  %v8813_v1 = vld [vmem:[#allocation25_spill] sm:$0xff] }
 0x8b7   :  { %v5004_v49 = vpop.eup %5003 }
 0x8b8   :  { %v3153_v47 = vadd.f32 1.0, %v5004_v49  ;;  %v5006_v29 = vpop.eup %5005 }
 0x8b9   :  { %v5008_v16 = vpop.eup %5007  ;;  %v3154_v27 = vadd.f32 1.0, %v5006_v29  ;;  %v8814_v29 = vld [vmem:[#allocation26_spill] sm:$0xff] }
 0x8ba   :  { %5017 = vrcp.f32 %v3153_v47  ;;  %v3156_v46 = vadd.f32 1.0, %v5008_v16  ;;  %v5010_v24 = vpop.eup %5009  ;;  %v320_v47 = vadd.f32 %v8813_v1, %v8541_v0  ;;  %v322_v16 = vadd.f32 %v8814_v29, %v8542_v6  ;;  %v8816_v29 = vld [vmem:[#allocation28_spill] sm:$0xff] }
 0x8bb   :  { %5019 = vtanh.f32 %v3134_v30  ;;  %v3157_v9 = vadd.f32 1.0, %v5010_v24  ;;  %v5012_v44 = vpop.eup %5011 }
 0x8bc   :  { %5021 = vrcp.f32 %v3154_v27  ;;  %v5014_v54 = vpop.eup %5013 }
 0x8bd   :  { %5023 = vrcp.f32 %v3156_v46  ;;  %v5016_v25 = vpop.eup %5015  ;;  %v3155_v31 = vadd.f32 1.0, %v5014_v54 }
 0x8be   :  { %5025 = vrcp.f32 %v3157_v9  ;;  %v3158_v30 = vadd.f32 1.0, %v5016_v25 }
 0x8bf   :  { %5027 = vrcp.f32 %v3155_v31 }
 0x8c0   :  { %5029 = vrcp.f32 %v3158_v30 }
 0x8c4   :  { %v5018_v28 = vpop.eup %5017 }
 0x8c5   :  { %v5020_v10 = vpop.eup %5019  ;;  %v3175_v41 = vmul.f32 %v5018_v28, %v5012_v44 }
 0x8c6   :  { %v5022_v15 = vpop.eup %5021 }
 0x8c7   :  { %v5024_v17 = vpop.eup %5023  ;;  %v3173_v49 = vmul.f32 %v5022_v15, %v7637_v39 }
 0x8c8   :  { %v3176_v27 = vmul.f32 %v5024_v17, %v5020_v10  ;;  %v3218_v46 = vpop.f32.mrb[48].mxu0  ;;  %v3261_v24 = vpop.f32.mrb[32].mxu1  ;;  %v326_v10 = vadd.f32 %v8816_v29, %v8542_v6 }
 0x8c9   :  { %v5026_v9 = vpop.eup %5025  ;;  %v7887_v44 = vadd.f32 %v3175_v41, %v3173_v49  ;;  %v3270_v54 = vadd.f32 %v3218_v46, %v320_v47  ;;  %v3220_v28 = vpop.f32.mrb[49].mxu0  ;;  %v4362_v49 = vadd.f32 %v3261_v24, %v8543_v32 }
 0x8ca   :  { %v3263_v55 = vpop.f32.mrb[33].mxu1  ;;  %v3174_v1 = vmul.f32 %v5026_v9, %v7644_v3  ;;  %v3271_v39 = vadd.f32 %v3220_v28, %v322_v16  ;;  %v3222_v25 = vpop.f32.mrb[50].mxu0 }
 0x8cb   :  { %v3265_v15 = vpop.f32.mrb[34].mxu1  ;;  %v4234_v17 = vmul.f32 -1.442695, %v3270_v54  ;;  %v3274_v57 = vadd.f32 %v3222_v25, %v324_v7  ;;  %v3224_v51 = vpop.f32.mrb[51].mxu0  ;;  %5031 = vtanh.f32 %v7887_v44  ;;  %v4363_v16 = vadd.f32 %v3263_v55, %v5953_v14 }
 0x8cc   :  { %v3267_v36 = vpop.f32.mrb[35].mxu1  ;;  %v7893_v37 = vadd.f32 %v3176_v27, %v3174_v1  ;;  %v4235_v41 = vmul.f32 -1.442695, %v3271_v39  ;;  %v3275_v47 = vadd.f32 %v3224_v51, %v326_v10  ;;  %v4364_v30 = vadd.f32 %v3265_v15, %v8543_v32  ;;  %v5028_v7 = vpop.eup %5027 }
 0x8cd   :  { %5033 = vpow2.f32 %v4234_v17  ;;  %v4237_v31 = vmul.f32 -1.442695, %v3274_v57  ;;  %v5030_v46 = vpop.eup %5029  ;;  %v4236_v27 = vmul.f32 -1.442695, %v4362_v49  ;;  %v4365_v1 = vadd.f32 %v3267_v36, %v5953_v14 }
 0x8ce   :  { %5035 = vtanh.f32 %v7893_v37  ;;  %v4238_v3 = vmul.f32 -1.442695, %v3275_v47  ;;  %v4239_v28 = vmul.f32 -1.442695, %v4364_v30 }
 0x8cf   :  { %5037 = vpow2.f32 %v4235_v41 }
 0x8d0   :  { %5039 = vpow2.f32 %v4237_v31 }
 0x8d1   :  { %5041 = vpow2.f32 %v4238_v3 }
 0x8d2   :  { %5043 = vtanh.f32 %v4363_v16 }
 0x8d3   :  { %5045 = vpow2.f32 %v4236_v27 }
 0x8d5   :  { %v5032_v9 = vpop.eup %5031 }
 0x8d6   :  { %v3181_v39 = vmul.f32 %v5032_v9, %v5028_v7 }
 0x8d7   :  { %v5034_v54 = vpop.eup %5033 }
 0x8d8   :  { %v5036_v57 = vpop.eup %5035  ;;  %v3296_v51 = vadd.f32 1.0, %v5034_v54 }
 0x8d9   :  { %v3182_v24 = vmul.f32 %v5036_v57, %v5030_v46  ;;  %v5038_v25 = vpop.eup %5037 }
 0x8da   :  { %5047 = vrcp.f32 %v3296_v51  ;;  %v5040_v15 = vpop.eup %5039  ;;  %v3297_v29 = vadd.f32 1.0, %v5038_v25 }
 0x8db   :  { %5049 = vpow2.f32 %v4239_v28  ;;  %v7900_v10 = vpack.c.bf16 %v3182_v24, %v3181_v39  ;;  %v3299_v55 = vadd.f32 1.0, %v5040_v15  ;;  %v5042_v17 = vpop.eup %5041 }
 0x8dc   :  { %5051 = vtanh.f32 %v4365_v1  ;;  %v3300_v41 = vadd.f32 1.0, %v5042_v17  ;;  %v5044_v31 = vpop.eup %5043  ;;  %v8818_v17 = vld [vmem:[#allocation69_spill] sm:$0xff] }
 0x8dd   :  { %5053 = vrcp.f32 %v3297_v29  ;;  %v5046_v47 = vpop.eup %5045 }
 0x8de   :  { %5055 = vrcp.f32 %v3299_v55  ;;  %v3298_v46 = vadd.f32 1.0, %v5046_v47  ;;  %v7951_v47 = vld [vmem:[%s8183_s5 + $0xc4] ss:$16 sps:$4 sm:$0xff]  }
 0x8df   :  { %5057 = vrcp.f32 %v3300_v41  ;;  %v7939_v41 = vld [vmem:[%s8183_s5 + $0xa0] ss:$16 sps:$4 sm:$0xff]  }
 0x8e0   :  { %5059 = vrcp.f32 %v3298_v46  ;;  %v7993_v46 = vld [vmem:[%s8183_s5 + $0xe8] ss:$16 sps:$4 sm:$0xff]  }
 0x8e4   :  { %v5048_v36 = vpop.eup %5047 }
 0x8e5   :  { %v5050_v3 = vpop.eup %5049  ;;  %v3318_v49 = vmul.f32 %v5048_v36, %v5044_v31  ;;  %v7945_v31 = vld [vmem:[%s8183_s5 + $0xa8] ss:$16 sps:$4 sm:$0xff]   ;;  %v7957_v36 = vld [vmem:[%s8183_s5 + $0xcc] ss:$16 sps:$4 sm:$0xff]  }
 0x8e6   :  { %v5052_v30 = vpop.eup %5051  ;;  %v3301_v57 = vadd.f32 1.0, %v5050_v3  ;;  %v7963_v3 = vld [vmem:[%s8183_s5 + $0xc0] ss:$16 sps:$4 sm:$0xff]  }
 0x8e7   :  { %v5054_v7 = vpop.eup %5053 }
 0x8e8   :  { %v5056_v16 = vpop.eup %5055  ;;  %v3316_v27 = vmul.f32 %v5054_v7, %v7655_v5  ;;  %v7981_v7 = vld [vmem:[%s8183_s5 + $0xec] ss:$16 sps:$4 sm:$0xff]  }
 0x8e9   :  { %v3319_v9 = vmul.f32 %v5056_v16, %v5052_v30  ;;  %v5058_v54 = vpop.eup %5057  ;;  %v7975_v30 = vld [vmem:[%s8183_s5 + $0xe4] ss:$16 sps:$4 sm:$0xff]   ;;  %v7987_v16 = vld [vmem:[%s8183_s5 + $0xe0] ss:$16 sps:$4 sm:$0xff]  }
 0x8ea   :  { %v7903_v28 = vadd.f32 %v3318_v49, %v3316_v27  ;;  %v3317_v51 = vmul.f32 %v5058_v54, %v7659_v50  ;;  %v5060_v39 = vpop.eup %5059  ;;  %v8817_v50 = vld [vmem:[#allocation68_spill] sm:$0xff]  ;;  %v7969_v49 = vld [vmem:[%s8183_s5 + $0xc8] ss:$16 sps:$4 sm:$0xff]  }
 0x8eb   :  { %v8832_v27 = vld [vmem:[#allocation17_spill] sm:$0xff]  ;;  %v8834_v54 = vld [vmem:[#allocation19_spill] sm:$0xff] }
 0x8ec   :  { %5061 = vtanh.f32 %v7903_v28  ;;  %v7907_v1 = vadd.f32 %v3319_v9, %v3317_v51  ;;  %v8833_v9 = vld [vmem:[#allocation18_spill] sm:$0xff]  ;;  %v8836_v51 = vld [vmem:[#allocation21_spill] sm:$0xff] }
 0x8ed   :  { %5063 = vrcp.f32 %v3301_v57  ;;  %v8835_v57 = vld [vmem:[#allocation20_spill] sm:$0xff] }
 0x8ee   :  { %5065 = vtanh.f32 %v7907_v1 }
 0x8f6   :  { %v5062_v24 = vpop.eup %5061 }
 0x8f7   :  { %v5064_v25 = vpop.eup %5063  ;;  %v3324_v5 = vmul.f32 %v5062_v24, %v5060_v39  ;;  %v8837_v39 = vld [vmem:[#allocation22_spill] sm:$0xff]  ;;  %v8838_v24 = vld [vmem:[#allocation23_spill] sm:$0xff] }
 0x8f8   :  { %v5066_v15 = vpop.eup %5065 }
 0x8f9   :  { %v3325_v29 = vmul.f32 %v5066_v15, %v5064_v25  ;;  %v8839_v25 = vld [vmem:[#allocation24_spill] sm:$0xff]  ;;  %v8840_v15 = vld [vmem:[#allocation33_spill] sm:$0xff] }
 0x8fb   :  { %v7910_v55 = vpack.c.bf16 %v3325_v29, %v3324_v5  ;;  %v8841_v5 = vld [vmem:[#allocation34_spill] sm:$0xff]  ;;  %v8842_v29 = vld [vmem:[#allocation35_spill] sm:$0xff] }
 0x8fd   :  { %3360 = vmatmul.mubr.bf16.vlgmr.msra.gmra.mrb[52].mxu0 %v7910_v55  ;;  %3403 = vmatmul.mubr.bf16.vlgmr.msra.gmra.mrb[64].mxu1 %v7910_v55 }
 0x8fe   :  { %3414 = vmatpush1.bf16.msra.mxu0 %v7669_v21  ;;  %3457 = vmatpush1.bf16.msra.mxu1 %v7675_v26 }
 0x8ff   :  { %3415 = vmatprep.subr.bf16.mxu0 %v7681_v43  ;;  %3458 = vmatprep.subr.bf16.mxu1 %v7687_v52 }
 0x900   :  { %3445 = vmatprep.mubr.bf16.mxu0 %v8494_v33  ;;  %3488 = vmatprep.mubr.bf16.mxu1 %v8494_v33 }
 0x902   :  { %3416 = vmatpush1.bf16.msra.mxu0 %v7695_v22  ;;  %3459 = vmatpush1.bf16.msra.mxu1 %v7701_v4 }
 0x903   :  { %3417 = vmatprep.subr.bf16.mxu0 %v7707_v56  ;;  %3460 = vmatprep.subr.bf16.mxu1 %v7713_v59 }
 0x906   :  { %3418 = vmatpush1.bf16.msra.mxu0 %v7719_v60  ;;  %3461 = vmatpush1.bf16.msra.mxu1 %v7725_v42 }
 0x907   :  { %3419 = vmatprep.subr.bf16.mxu0 %v7731_v2  ;;  %3462 = vmatprep.subr.bf16.mxu1 %v7737_v58 }
 0x90a   :  { %3420 = vmatpush1.bf16.msra.mxu0 %v7743_v19  ;;  %3463 = vmatpush1.bf16.msra.mxu1 %v7749_v61 }
 0x90b   :  { %3421 = vmatprep.subr.bf16.mxu0 %v8817_v50  ;;  %3464 = vmatprep.subr.bf16.mxu1 %v8818_v17 }
 0x90e   :  { %3422 = vmatpush1.bf16.msra.mxu0 %v7767_v62  ;;  %3465 = vmatpush1.bf16.msra.mxu1 %v7773_v48 }
 0x90f   :  { %3423 = vmatprep.subr.bf16.mxu0 %v7779_v8  ;;  %3466 = vmatprep.subr.bf16.mxu1 %v7785_v45 }
 0x912   :  { %3424 = vmatpush1.bf16.msra.mxu0 %v7939_v41  ;;  %3467 = vmatpush1.bf16.msra.mxu1 %v7945_v31 }
 0x913   :  { %3425 = vmatprep.subr.bf16.mxu0 %v7951_v47  ;;  %3468 = vmatprep.subr.bf16.mxu1 %v7957_v36 }
 0x916   :  { %3426 = vmatpush1.bf16.msra.mxu0 %v7963_v3  ;;  %3469 = vmatpush1.bf16.msra.mxu1 %v7969_v49 }
 0x917   :  { %3427 = vmatprep.subr.bf16.mxu0 %v7975_v30  ;;  %3470 = vmatprep.subr.bf16.mxu1 %v7981_v7 }
 0x91a   :  { %3428 = vmatpush1.bf16.msra.mxu0 %v7987_v16  ;;  %3471 = vmatpush1.bf16.msra.mxu1 %v7993_v46 }
 0x91b   :  { %3556 = vmatprep.subr.bf16.mxu0 %v7227_v34  ;;  %3599 = vmatprep.subr.bf16.mxu1 %v7233_v13  ;;  %v8819_v34 = vld [vmem:[#allocation65_spill] sm:$0xff]  ;;  %v8820_v13 = vld [vmem:[#allocation66_spill] sm:$0xff] }
 0x91d   :  { %3446 = vmatmul.mubr.bf16.vlgmr.msra.gmra.mrb[52].mxu0 %v7900_v10  ;;  %3489 = vmatmul.mubr.bf16.vlgmr.msra.gmra.mrb[64].mxu1 %v7900_v10  ;;  %v8831_v10 = vld [vmem:[#allocation16_spill] sm:$0xff] }
 0x91e   :  { %3557 = vmatpush1.bf16.msra.mxu0 %v7241_v38  ;;  %3600 = vmatpush1.bf16.msra.mxu1 %v7247_v18  ;;  %v8821_v38 = vld [vmem:[#allocation6_spill] sm:$0xff]  ;;  %v8822_v18 = vld [vmem:[#allocation7_spill] sm:$0xff] }
 0x91f   :  { %3558 = vmatprep.subr.bf16.mxu0 %v7253_v12  ;;  %3601 = vmatprep.subr.bf16.mxu1 %v7259_v63  ;;  %v8823_v12 = vld [vmem:[#allocation8_spill] sm:$0xff]  ;;  %v8824_v63 = vld [vmem:[#allocation9_spill] sm:$0xff] }
 0x920   :  { %3588 = vmatprep.mubr.bf16.mxu0 %v8494_v33  ;;  %3631 = vmatprep.mubr.bf16.mxu1 %v8494_v33 }
 0x922   :  { %3559 = vmatpush1.bf16.msra.mxu0 %v7267_v40  ;;  %3602 = vmatpush1.bf16.msra.mxu1 %v7273_v35  ;;  %v8825_v40 = vld [vmem:[#allocation10_spill] sm:$0xff]  ;;  %v8826_v35 = vld [vmem:[#allocation11_spill] sm:$0xff] }
 0x923   :  { %3560 = vmatprep.subr.bf16.mxu0 %v7279_v20  ;;  %3603 = vmatprep.subr.bf16.mxu1 %v7285_v23  ;;  %v8827_v20 = vld [vmem:[#allocation12_spill] sm:$0xff]  ;;  %v8828_v23 = vld [vmem:[#allocation13_spill] sm:$0xff] }
 0x926   :  { %3561 = vmatpush1.bf16.msra.mxu0 %v7291_v53  ;;  %3604 = vmatpush1.bf16.msra.mxu1 %v7297_v11  ;;  %v8829_v53 = vld [vmem:[#allocation14_spill] sm:$0xff]  ;;  %v8830_v11 = vld [vmem:[#allocation15_spill] sm:$0xff] }
 0x927   :  { %3562 = vmatprep.subr.bf16.mxu0 %v8819_v34  ;;  %3605 = vmatprep.subr.bf16.mxu1 %v8820_v13  ;;  %v8843_v34 = vld [vmem:[#allocation36_spill] sm:$0xff]  ;;  %v8844_v13 = vld [vmem:[#allocation37_spill] sm:$0xff] }
 0x92a   :  { %3563 = vmatpush1.bf16.msra.mxu0 %v8821_v38  ;;  %3606 = vmatpush1.bf16.msra.mxu1 %v8822_v18  ;;  %v8845_v38 = vld [vmem:[#allocation38_spill] sm:$0xff]  ;;  %v8846_v18 = vld [vmem:[#allocation39_spill] sm:$0xff] }
 0x92b   :  { %3564 = vmatprep.subr.bf16.mxu0 %v8823_v12  ;;  %3607 = vmatprep.subr.bf16.mxu1 %v8824_v63  ;;  %v8847_v12 = vld [vmem:[#allocation40_spill] sm:$0xff]  ;;  %v8848_v63 = vld [vmem:[#allocation41_spill] sm:$0xff] }
 0x92e   :  { %3565 = vmatpush1.bf16.msra.mxu0 %v8825_v40  ;;  %3608 = vmatpush1.bf16.msra.mxu1 %v8826_v35  ;;  %v8850_v40 = vld [vmem:[#allocation43_spill] sm:$0xff]  ;;  %v8851_v35 = vld [vmem:[#allocation44_spill] sm:$0xff] }
 0x92f   :  { %3566 = vmatprep.subr.bf16.mxu0 %v8827_v20  ;;  %3609 = vmatprep.subr.bf16.mxu1 %v8828_v23  ;;  %v8852_v20 = vld [vmem:[#allocation45_spill] sm:$0xff]  ;;  %v8853_v23 = vld [vmem:[#allocation46_spill] sm:$0xff] }
 0x932   :  { %3567 = vmatpush1.bf16.msra.mxu0 %v8829_v53  ;;  %3610 = vmatpush1.bf16.msra.mxu1 %v8830_v11  ;;  %v8854_v53 = vld [vmem:[#allocation47_spill] sm:$0xff]  ;;  %v8855_v11 = vld [vmem:[#allocation48_spill] sm:$0xff] }
 0x933   :  { %3568 = vmatprep.subr.bf16.mxu0 %v8831_v10  ;;  %3611 = vmatprep.subr.bf16.mxu1 %v8832_v27  ;;  %v8856_v10 = vld [vmem:[#allocation49_spill] sm:$0xff]  ;;  %v8857_v27 = vld [vmem:[#allocation50_spill] sm:$0xff] }
 0x936   :  { %3569 = vmatpush1.bf16.msra.mxu0 %v8833_v9  ;;  %3612 = vmatpush1.bf16.msra.mxu1 %v8834_v54  ;;  %v8858_v9 = vld [vmem:[#allocation51_spill] sm:$0xff]  ;;  %v8859_v54 = vld [vmem:[#allocation52_spill] sm:$0xff] }
 0x937   :  { %3570 = vmatprep.subr.bf16.mxu0 %v8835_v57  ;;  %3613 = vmatprep.subr.bf16.mxu1 %v8836_v51  ;;  %v8860_v57 = vld [vmem:[#allocation53_spill] sm:$0xff]  ;;  %v8861_v51 = vld [vmem:[#allocation54_spill] sm:$0xff] }
 0x93a   :  { %3571 = vmatpush1.bf16.msra.mxu0 %v8837_v39  ;;  %3614 = vmatpush1.bf16.msra.mxu1 %v8838_v24  ;;  %v8862_v39 = vld [vmem:[#allocation55_spill] sm:$0xff]  ;;  %v8863_v24 = vld [vmem:[#allocation56_spill] sm:$0xff] }
 0x93b   :  { %3699 = vmatprep.subr.bf16.mxu0 %v8839_v25  ;;  %3742 = vmatprep.subr.bf16.mxu1 %v8840_v15  ;;  %v8864_v25 = vld [vmem:[#allocation57_spill] sm:$0xff]  ;;  %v8865_v15 = vld [vmem:[#allocation58_spill] sm:$0xff] }
 0x93d   :  { %3589 = vmatmul.mubr.bf16.vlgmr.msra.gmra.mrb[56].mxu0 %v7910_v55  ;;  %3632 = vmatmul.mubr.bf16.vlgmr.msra.gmra.mrb[36].mxu1 %v7910_v55  ;;  %v8849_v55 = vld [vmem:[#allocation42_spill] sm:$0xff] }
 0x93e   :  { %3700 = vmatpush1.bf16.msra.mxu0 %v8841_v5  ;;  %3743 = vmatpush1.bf16.msra.mxu1 %v8842_v29  ;;  %v8866_v5 = vld [vmem:[#allocation59_spill] sm:$0xff]  ;;  %v8867_v29 = vld [vmem:[#allocation60_spill] sm:$0xff] }
 0x93f   :  { %3701 = vmatprep.subr.bf16.mxu0 %v8843_v34  ;;  %3744 = vmatprep.subr.bf16.mxu1 %v8844_v13  ;;  %v8868_v34 = vld [vmem:[#allocation61_spill] sm:$0xff]  ;;  %v8869_v13 = vld [vmem:[#allocation62_spill] sm:$0xff] }
 0x940   :  { %3731 = vmatprep.mubr.bf16.mxu0 %v8494_v33  ;;  %3774 = vmatprep.mubr.bf16.mxu1 %v8494_v33 }
 0x942   :  { %3702 = vmatpush1.bf16.msra.mxu0 %v8845_v38  ;;  %3745 = vmatpush1.bf16.msra.mxu1 %v8846_v18  ;;  %v8870_v38 = vld [vmem:[#allocation63_spill] sm:$0xff]  ;;  %v8871_v18 = vld [vmem:[#allocation64_spill] sm:$0xff] }
 0x943   :  { %3703 = vmatprep.subr.bf16.mxu0 %v8847_v12  ;;  %3746 = vmatprep.subr.bf16.mxu1 %v8848_v63  ;;  %v8872_v12 = vld [vmem:[#allocation67_spill] sm:$0xff] }
 0x946   :  { %3704 = vmatpush1.bf16.msra.mxu0 %v8849_v55  ;;  %3747 = vmatpush1.bf16.msra.mxu1 %v8850_v40  ;;  %v8873_v40 = vld [vmem:[#allocation2_spill] sm:$0xff] }
 0x947   :  { %3705 = vmatprep.subr.bf16.mxu0 %v8851_v35  ;;  %3748 = vmatprep.subr.bf16.mxu1 %v8852_v20 }
 0x94a   :  { %3706 = vmatpush1.bf16.msra.mxu0 %v8853_v23  ;;  %3749 = vmatpush1.bf16.msra.mxu1 %v8854_v53  ;;  %v8874_v53 = vld [vmem:[#allocation3_spill] sm:$0xff] }
 0x94b   :  { %3707 = vmatprep.subr.bf16.mxu0 %v8855_v11  ;;  %3750 = vmatprep.subr.bf16.mxu1 %v8856_v10 }
 0x94e   :  { %3708 = vmatpush1.bf16.msra.mxu0 %v8857_v27  ;;  %3751 = vmatpush1.bf16.msra.mxu1 %v8858_v9 }
 0x94f   :  { %3709 = vmatprep.subr.bf16.mxu0 %v8859_v54  ;;  %3752 = vmatprep.subr.bf16.mxu1 %v8860_v57 }
 0x952   :  { %3710 = vmatpush1.bf16.msra.mxu0 %v8861_v51  ;;  %3753 = vmatpush1.bf16.msra.mxu1 %v8862_v39 }
 0x953   :  { %3711 = vmatprep.subr.bf16.mxu0 %v8863_v24  ;;  %3754 = vmatprep.subr.bf16.mxu1 %v8864_v25 }
 0x956   :  { %3712 = vmatpush1.bf16.msra.mxu0 %v8865_v15  ;;  %3755 = vmatpush1.bf16.msra.mxu1 %v8866_v5  ;;  %v8875_v5 = vld [vmem:[#allocation4_spill] sm:$0xff] }
 0x957   :  { %3713 = vmatprep.subr.bf16.mxu0 %v8867_v29  ;;  %3756 = vmatprep.subr.bf16.mxu1 %v8868_v34 }
 0x95a   :  { %3714 = vmatpush1.bf16.msra.mxu0 %v8869_v13  ;;  %3757 = vmatpush1.bf16.msra.mxu1 %v8870_v38  ;;  %v8876_v13 = vld [vmem:[#allocation5_spill] sm:$0xff] }
 0x95b   :  { %3785 = vmatprep.subr.bf16.mxu0 %v8871_v18  ;;  %3828 = vmatprep.subr.bf16.mxu1 %v8872_v12 }
 0x9f0   :  { %v3447_v63 = vpop.f32.mrb[52].mxu0  ;;  %v3490_v55 = vpop.f32.mrb[64].mxu1 }
 0x9f1   :  { %v3499_v35 = vadd.f32 %v3447_v63, %v8873_v40  ;;  %v3449_v20 = vpop.f32.mrb[53].mxu0  ;;  %v3492_v23 = vpop.f32.mrb[65].mxu1  ;;  %v3501_v29 = vadd.f32 %v3490_v55, %v8875_v5 }
 0x9f2   :  { %v3500_v11 = vadd.f32 %v3449_v20, %v8874_v53  ;;  %v3451_v10 = vpop.f32.mrb[54].mxu0  ;;  %v3494_v27 = vpop.f32.mrb[66].mxu1  ;;  %v3502_v38 = vadd.f32 %v3492_v23, %v8876_v13 }
 0x9f3   :  { %v4240_v9 = vmul.f32 -1.442695, %v3499_v35  ;;  %v3503_v54 = vadd.f32 %v3451_v10, %v8873_v40  ;;  %v3453_v57 = vpop.f32.mrb[55].mxu0  ;;  %v3496_v51 = vpop.f32.mrb[67].mxu1  ;;  %v3505_v34 = vadd.f32 %v3494_v27, %v8875_v5  ;;  %v4242_v18 = vmul.f32 -1.442695, %v3501_v29 }
 0x9f4   :  { %v4241_v39 = vmul.f32 -1.442695, %v3500_v11  ;;  %v3504_v24 = vadd.f32 %v3453_v57, %v8874_v53  ;;  %v3506_v35 = vadd.f32 %v3496_v51, %v8876_v13 }
 0x9f5   :  { %5067 = vpow2.f32 %v4240_v9  ;;  %v4243_v25 = vmul.f32 -1.442695, %v3503_v54  ;;  %v4245_v12 = vmul.f32 -1.442695, %v3505_v34 }
 0x9f6   :  { %v4244_v15 = vmul.f32 -1.442695, %v3504_v24  ;;  %5069 = vpow2.f32 %v4241_v39 }
 0x9f7   :  { %5071 = vpow2.f32 %v4243_v25 }
 0x9f8   :  { %5073 = vpow2.f32 %v4244_v15 }
 0x9f9   :  { %5075 = vtanh.f32 %v3502_v38  ;;  %v8877_v38 = vld [vmem:[#allocation29_spill] sm:$0xff] }
 0x9fa   :  { %5077 = vpow2.f32 %v4242_v18  ;;  %v330_v18 = vadd.f32 %v8877_v38, %v8541_v0 }
 0x9fb   :  { %5079 = vpow2.f32 %v4245_v12 }
 0x9ff   :  { %v5068_v63 = vpop.eup %5067 }
 0xa00   :  { %v3525_v20 = vadd.f32 1.0, %v5068_v63  ;;  %v5070_v11 = vpop.eup %5069 }
 0xa01   :  { %v5072_v10 = vpop.eup %5071  ;;  %v3526_v9 = vadd.f32 1.0, %v5070_v11 }
 0xa02   :  { %5081 = vrcp.f32 %v3525_v20  ;;  %v3528_v55 = vadd.f32 1.0, %v5072_v10  ;;  %v5074_v54 = vpop.eup %5073 }
 0xa03   :  { %5083 = vtanh.f32 %v3506_v35  ;;  %v3529_v27 = vadd.f32 1.0, %v5074_v54  ;;  %v5076_v23 = vpop.eup %5075  ;;  %v8878_v35 = vld [vmem:[#allocation30_spill] sm:$0xff]  ;;  %v8879_v54 = vld [vmem:[#allocation31_spill] sm:$0xff] }
 0xa04   :  { %5085 = vrcp.f32 %v3526_v9  ;;  %v5078_v57 = vpop.eup %5077  ;;  %v332_v20 = vadd.f32 %v8878_v35, %v8542_v6  ;;  %v8880_v35 = vld [vmem:[#allocation32_spill] sm:$0xff] }
 0xa05   :  { %5087 = vrcp.f32 %v3528_v55  ;;  %v5080_v39 = vpop.eup %5079  ;;  %v3527_v29 = vadd.f32 1.0, %v5078_v57 }
 0xa06   :  { %5089 = vrcp.f32 %v3529_v27  ;;  %v3530_v63 = vadd.f32 1.0, %v5080_v39  ;;  %v334_v27 = vadd.f32 %v8879_v54, %v8541_v0 }
 0xa07   :  { %5091 = vrcp.f32 %v3527_v29 }
 0xa08   :  { %5093 = vrcp.f32 %v3530_v63 }
 0xa0c   :  { %v5082_v24 = vpop.eup %5081 }
 0xa0d   :  { %v5084_v25 = vpop.eup %5083  ;;  %v3547_v51 = vmul.f32 %v5082_v24, %v5076_v23 }
 0xa0e   :  { %v5086_v15 = vpop.eup %5085 }
 0xa0f   :  { %v5088_v34 = vpop.eup %5087  ;;  %v3545_v12 = vmul.f32 %v5086_v15, %v7887_v44 }
 0xa10   :  { %v3548_v11 = vmul.f32 %v5088_v34, %v5084_v25  ;;  %v3590_v10 = vpop.f32.mrb[56].mxu0  ;;  %v3633_v9 = vpop.f32.mrb[36].mxu1  ;;  %v336_v25 = vadd.f32 %v8880_v35, %v8542_v6 }
 0xa11   :  { %v5090_v55 = vpop.eup %5089  ;;  %v8085_v23 = vadd.f32 %v3547_v51, %v3545_v12  ;;  %v3642_v57 = vadd.f32 %v3590_v10, %v330_v18  ;;  %v3592_v24 = vpop.f32.mrb[57].mxu0  ;;  %v4366_v12 = vadd.f32 %v3633_v9, %v8543_v32 }
 0xa12   :  { %v3635_v13 = vpop.f32.mrb[37].mxu1  ;;  %v3546_v38 = vmul.f32 %v5090_v55, %v7893_v37  ;;  %v3643_v44 = vadd.f32 %v3592_v24, %v332_v20  ;;  %v3594_v39 = vpop.f32.mrb[58].mxu0 }
 0xa13   :  { %v3637_v15 = vpop.f32.mrb[38].mxu1  ;;  %v4246_v34 = vmul.f32 -1.442695, %v3642_v57  ;;  %v3646_v5 = vadd.f32 %v3594_v39, %v334_v27  ;;  %v3596_v53 = vpop.f32.mrb[59].mxu0  ;;  %5095 = vtanh.f32 %v8085_v23  ;;  %v4367_v20 = vadd.f32 %v3635_v13, %v5953_v14 }
 0xa14   :  { %v3639_v40 = vpop.f32.mrb[39].mxu1  ;;  %v8091_v0 = vadd.f32 %v3548_v11, %v3546_v38  ;;  %v4247_v51 = vmul.f32 -1.442695, %v3643_v44  ;;  %v3647_v18 = vadd.f32 %v3596_v53, %v336_v25  ;;  %v4368_v6 = vadd.f32 %v3637_v15, %v8543_v32  ;;  %v5092_v63 = vpop.eup %5091 }
 0xa15   :  { %5097 = vpow2.f32 %v4246_v34  ;;  %v4249_v29 = vmul.f32 -1.442695, %v3646_v5  ;;  %v5094_v10 = vpop.eup %5093  ;;  %v4248_v11 = vmul.f32 -1.442695, %v4366_v12  ;;  %v4369_v57 = vadd.f32 %v3639_v40, %v5953_v14 }
 0xa16   :  { %5099 = vtanh.f32 %v8091_v0  ;;  %v4250_v37 = vmul.f32 -1.442695, %v3647_v18  ;;  %v4251_v27 = vmul.f32 -1.442695, %v4368_v6 }
 0xa17   :  { %5101 = vpow2.f32 %v4247_v51 }
 0xa18   :  { %5103 = vpow2.f32 %v4249_v29 }
 0xa19   :  { %5105 = vpow2.f32 %v4250_v37 }
 0xa1a   :  { %5107 = vtanh.f32 %v4367_v20 }
 0xa1b   :  { %5109 = vpow2.f32 %v4248_v11 }
 0xa1d   :  { %v5096_v55 = vpop.eup %5095 }
 0xa1e   :  { %v3553_v24 = vmul.f32 %v5096_v55, %v5092_v63 }
 0xa1f   :  { %v5098_v54 = vpop.eup %5097 }
 0xa20   :  { %v5100_v5 = vpop.eup %5099  ;;  %v3668_v53 = vadd.f32 1.0, %v5098_v54 }
 0xa21   :  { %v3554_v9 = vmul.f32 %v5100_v5, %v5094_v10  ;;  %v5102_v38 = vpop.eup %5101 }
 0xa22   :  { %5111 = vrcp.f32 %v3668_v53  ;;  %v5104_v32 = vpop.eup %5103  ;;  %v3669_v44 = vadd.f32 1.0, %v5102_v38 }
 0xa23   :  { %5113 = vpow2.f32 %v4251_v27  ;;  %v8098_v39 = vpack.c.bf16 %v3554_v9, %v3553_v24  ;;  %v3671_v13 = vadd.f32 1.0, %v5104_v32  ;;  %v5106_v15 = vpop.eup %5105 }
 0xa24   :  { %5115 = vtanh.f32 %v4369_v57  ;;  %v3672_v35 = vadd.f32 1.0, %v5106_v15  ;;  %v5108_v25 = vpop.eup %5107 }
 0xa25   :  { %5117 = vrcp.f32 %v3669_v44  ;;  %v5110_v34 = vpop.eup %5109 }
 0xa26   :  { %5119 = vrcp.f32 %v3671_v13  ;;  %v3670_v37 = vadd.f32 1.0, %v5110_v34 }
 0xa27   :  { %5121 = vrcp.f32 %v3672_v35 }
 0xa28   :  { %5123 = vrcp.f32 %v3670_v37 }
 0xa2c   :  { %v5112_v14 = vpop.eup %5111 }
 0xa2d   :  { %v5114_v40 = vpop.eup %5113  ;;  %v3690_v51 = vmul.f32 %v5112_v14, %v5108_v25 }
 0xa2e   :  { %v5116_v29 = vpop.eup %5115  ;;  %v3673_v11 = vadd.f32 1.0, %v5114_v40 }
 0xa2f   :  { %v5118_v18 = vpop.eup %5117 }
 0xa30   :  { %v5120_v12 = vpop.eup %5119  ;;  %v3688_v6 = vmul.f32 %v5118_v18, %v7903_v28 }
 0xa31   :  { %v3691_v63 = vmul.f32 %v5120_v12, %v5116_v29  ;;  %v5122_v20 = vpop.eup %5121 }
 0xa32   :  { %v3692_v10 = vadd.f32 %v3690_v51, %v3688_v6  ;;  %v3689_v55 = vmul.f32 %v5122_v20, %v7907_v1  ;;  %v5124_v27 = vpop.eup %5123 }
 0xa34   :  { %5125 = vtanh.f32 %v3692_v10  ;;  %v3693_v54 = vadd.f32 %v3691_v63, %v3689_v55 }
 0xa35   :  { %5127 = vrcp.f32 %v3673_v11 }
 0xa36   :  { %5129 = vtanh.f32 %v3693_v54 }
 0xa3e   :  { %v5126_v5 = vpop.eup %5125 }
 0xa3f   :  { %v3696_v53 = vmul.f32 %v5126_v5, %v5124_v27  ;;  %v5128_v57 = vpop.eup %5127 }
 0xa40   :  { %v5130_v24 = vpop.eup %5129 }
 0xa41   :  { %v3697_v9 = vmul.f32 %v5130_v24, %v5128_v57 }
 0xa43   :  { %v3698_v38 = vpack.c.bf16 %v3697_v9, %v3696_v53 }
 0xa45   :  { %3732 = vmatmul.mubr.bf16.vlgmr.msra.gmra.mrb[60].mxu0 %v3698_v38  ;;  %3775 = vmatmul.mubr.bf16.vlgmr.msra.gmra.mrb[68].mxu1 %v3698_v38 }
 0xa46   :  { %3786 = vmatpush1.bf16.msra.mxu0 %v7669_v21  ;;  %3829 = vmatpush1.bf16.msra.mxu1 %v7675_v26  ;;  %v5356_v21 = vmov 0.0   ;;  %v4644_v26 = vld [vmem:[%s8186_s7 + $0x8] sm:$0xff]  }
 0xa47   :  { %3787 = vmatprep.subr.bf16.mxu0 %v7681_v43  ;;  %3830 = vmatprep.subr.bf16.mxu1 %v7687_v52  ;;  %v4645_v43 = vld [vmem:[%s8186_s7 + $0x10] sm:$0xff]   ;;  %v4646_v52 = vld [vmem:[%s8186_s7 + $0x18] sm:$0xff]  }
 0xa48   :  { %3817 = vmatprep.mubr.bf16.mxu0 %v8494_v33  ;;  %3860 = vmatprep.mubr.bf16.mxu1 %v8494_v33  ;;  %v4643_v33 = vld [vmem:[%s8186_s7] sm:$0xff]  }
 0xa4a   :  { %3788 = vmatpush1.bf16.msra.mxu0 %v7695_v22  ;;  %3831 = vmatpush1.bf16.msra.mxu1 %v7701_v4  ;;  %v4647_v22 = vld [vmem:[%s8186_s7 + $0x20] sm:$0xff]   ;;  %v4648_v4 = vld [vmem:[%s8186_s7 + $0x28] sm:$0xff]  }
 0xa4b   :  { %3789 = vmatprep.subr.bf16.mxu0 %v7707_v56  ;;  %3832 = vmatprep.subr.bf16.mxu1 %v7713_v59  ;;  %v4649_v56 = vld [vmem:[%s8186_s7 + $0x30] sm:$0xff]   ;;  %v4650_v59 = vld [vmem:[%s8186_s7 + $0x38] sm:$0xff]  }
 0xa4e   :  { %3790 = vmatpush1.bf16.msra.mxu0 %v7719_v60  ;;  %3833 = vmatpush1.bf16.msra.mxu1 %v7725_v42 }
 0xa4f   :  { %3791 = vmatprep.subr.bf16.mxu0 %v7731_v2  ;;  %3834 = vmatprep.subr.bf16.mxu1 %v7737_v58  ;;  %v8881_v2 = vld [vmem:[#allocation2_spill] sm:$0xff] }
 0xa52   :  { %3792 = vmatpush1.bf16.msra.mxu0 %v7743_v19  ;;  %3835 = vmatpush1.bf16.msra.mxu1 %v7749_v61 }
 0xa53   :  { %3793 = vmatprep.subr.bf16.mxu0 %v8817_v50  ;;  %3836 = vmatprep.subr.bf16.mxu1 %v8818_v17 }
 0xa56   :  { %3794 = vmatpush1.bf16.msra.mxu0 %v7767_v62  ;;  %3837 = vmatpush1.bf16.msra.mxu1 %v7773_v48 }
 0xa57   :  { %3795 = vmatprep.subr.bf16.mxu0 %v7779_v8  ;;  %3838 = vmatprep.subr.bf16.mxu1 %v7785_v45  ;;  %v8882_v8 = vld [vmem:[#allocation3_spill] sm:$0xff] }
 0xa5a   :  { %3796 = vmatpush1.bf16.msra.mxu0 %v7939_v41  ;;  %3839 = vmatpush1.bf16.msra.mxu1 %v7945_v31 }
 0xa5b   :  { %3797 = vmatprep.subr.bf16.mxu0 %v7951_v47  ;;  %3840 = vmatprep.subr.bf16.mxu1 %v7957_v36 }
 0xa5e   :  { %3798 = vmatpush1.bf16.msra.mxu0 %v7963_v3  ;;  %3841 = vmatpush1.bf16.msra.mxu1 %v7969_v49  ;;  %v8883_v3 = vld [vmem:[#allocation4_spill] sm:$0xff] }
 0xa5f   :  { %3799 = vmatprep.subr.bf16.mxu0 %v7975_v30  ;;  %3842 = vmatprep.subr.bf16.mxu1 %v7981_v7  ;;  %v8884_v7 = vld [vmem:[#allocation5_spill] sm:$0xff] }
 0xa62   :  { %3800 = vmatpush1.bf16.msra.mxu0 %v7987_v16  ;;  %3843 = vmatpush1.bf16.msra.mxu1 %v7993_v46 }
 0xa63   :  { %4276 = vmatprep.subr.bf16.mxu0 %v5356_v21 }
 0xa65   :  { %3818 = vmatmul.mubr.bf16.vlgmr.msra.gmra.mrb[60].mxu0 %v8098_v39  ;;  %3861 = vmatmul.mubr.bf16.vlgmr.msra.gmra.mrb[68].mxu1 %v8098_v39 }
 0xa66   :  { %4277 = vmatpush3.bf16.msra.mxu0 %v4643_v33  ;;  %4292 = vmatprep.mubr.msk.bf16.mxu0 %vm5357_vm1, %v5356_v21 }
 0xa67   :  { %4278 = vmatprep.subr.bf16.mxu0 %v5356_v21 }
 0xa6a   :  { %4279 = vmatpush3.bf16.msra.mxu0 %v4644_v26 }
 0xa6b   :  { %4280 = vmatprep.subr.bf16.mxu0 %v5356_v21 }
 0xa6e   :  { %4281 = vmatpush3.bf16.msra.mxu0 %v4645_v43 }
 0xa6f   :  { %4282 = vmatprep.subr.bf16.mxu0 %v5356_v21 }
 0xa72   :  { %4283 = vmatpush3.bf16.msra.mxu0 %v4646_v52 }
 0xa73   :  { %4284 = vmatprep.subr.bf16.mxu0 %v5356_v21 }
 0xa76   :  { %4285 = vmatpush3.bf16.msra.mxu0 %v4647_v22 }
 0xa77   :  { %4286 = vmatprep.subr.bf16.mxu0 %v5356_v21 }
 0xa7a   :  { %4287 = vmatpush3.bf16.msra.mxu0 %v4648_v4 }
 0xa7b   :  { %4288 = vmatprep.subr.bf16.mxu0 %v5356_v21 }
 0xa7e   :  { %4289 = vmatpush3.bf16.msra.mxu0 %v4649_v56 }
 0xa7f   :  { %4290 = vmatprep.subr.bf16.mxu0 %v5356_v21 }
 0xa82   :  { %4291 = vmatpush3.bf16.msra.mxu0 %v4650_v59 }
 0xb38   :  { %v3819_v60 = vpop.f32.mrb[60].mxu0  ;;  %v3862_v42 = vpop.f32.mrb[68].mxu1 }
 0xb39   :  { %v3871_v58 = vadd.f32 %v3819_v60, %v8881_v2  ;;  %v3821_v19 = vpop.f32.mrb[61].mxu0  ;;  %v3864_v61 = vpop.f32.mrb[69].mxu1  ;;  %v3873_v49 = vadd.f32 %v3862_v42, %v8883_v3 }
 0xb3a   :  { %v3872_v45 = vadd.f32 %v3821_v19, %v8882_v8  ;;  %v3823_v62 = vpop.f32.mrb[62].mxu0  ;;  %v3866_v48 = vpop.f32.mrb[70].mxu1  ;;  %v3874_v16 = vadd.f32 %v3864_v61, %v8884_v7 }
 0xb3b   :  { %v4252_v28 = vmul.f32 -1.442695, %v3871_v58  ;;  %v3875_v1 = vadd.f32 %v3823_v62, %v8881_v2  ;;  %v3825_v50 = vpop.f32.mrb[63].mxu0  ;;  %v3868_v17 = vpop.f32.mrb[71].mxu1  ;;  %v3877_v30 = vadd.f32 %v3866_v48, %v8883_v3  ;;  %v4254_v46 = vmul.f32 -1.442695, %v3873_v49 }
 0xb3c   :  { %v4253_v41 = vmul.f32 -1.442695, %v3872_v45  ;;  %v3876_v31 = vadd.f32 %v3825_v50, %v8882_v8  ;;  %v3878_v39 = vadd.f32 %v3868_v17, %v8884_v7 }
 0xb3d   :  { %5131 = vpow2.f32 %v4252_v28  ;;  %v4255_v47 = vmul.f32 -1.442695, %v3875_v1  ;;  %v4257_v32 = vmul.f32 -1.442695, %v3877_v30 }
 0xb3e   :  { %v4256_v36 = vmul.f32 -1.442695, %v3876_v31  ;;  %5133 = vpow2.f32 %v4253_v41 }
 0xb3f   :  { %5135 = vpow2.f32 %v4255_v47 }
 0xb40   :  { %5137 = vpow2.f32 %v4256_v36 }
 0xb41   :  { %5139 = vtanh.f32 %v3874_v16 }
 0xb42   :  { %5141 = vpow2.f32 %v4254_v46 }
 0xb43   :  { %5143 = vpow2.f32 %v4257_v32 }
 0xb47   :  { %v5132_v44 = vpop.eup %5131 }
 0xb48   :  { %v3897_v13 = vadd.f32 1.0, %v5132_v44  ;;  %v5134_v15 = vpop.eup %5133 }
 0xb49   :  { %v5136_v35 = vpop.eup %5135  ;;  %v3898_v25 = vadd.f32 1.0, %v5134_v15 }
 0xb4a   :  { %5145 = vrcp.f32 %v3897_v13  ;;  %v3900_v34 = vadd.f32 1.0, %v5136_v35  ;;  %v5138_v14 = vpop.eup %5137 }
 0xb4b   :  { %5147 = vtanh.f32 %v3878_v39  ;;  %v3901_v40 = vadd.f32 1.0, %v5138_v14  ;;  %v5140_v51 = vpop.eup %5139 }
 0xb4c   :  { %5149 = vrcp.f32 %v3898_v25  ;;  %v5142_v29 = vpop.eup %5141 }
 0xb4d   :  { %5151 = vrcp.f32 %v3900_v34  ;;  %v5144_v18 = vpop.eup %5143  ;;  %v3899_v20 = vadd.f32 1.0, %v5142_v29 }
 0xb4e   :  { %5153 = vrcp.f32 %v3901_v40  ;;  %v3902_v5 = vadd.f32 1.0, %v5144_v18 }
 0xb4f   :  { %5155 = vrcp.f32 %v3899_v20 }
 0xb54   :  { %v5146_v37 = vpop.eup %5145 }
 0xb55   :  { %v5148_v12 = vpop.eup %5147  ;;  %v3919_v6 = vmul.f32 %v5146_v37, %v5140_v51 }
 0xb56   :  { %v5150_v63 = vpop.eup %5149 }
 0xb57   :  { %v5152_v10 = vpop.eup %5151  ;;  %v3917_v11 = vmul.f32 %v5150_v63, %v8085_v23  ;;  %v4258_v23 = vld [vmem:[%s8187_s8] ss:$0 sm:$0xff] }
 0xb58   :  { %v3920_v55 = vmul.f32 %v5152_v10, %v5148_v12  ;;  %v5154_v54 = vpop.eup %5153 }
 0xb59   :  { %v3921_v27 = vadd.f32 %v3919_v6, %v3917_v11  ;;  %v3918_v53 = vmul.f32 %v5154_v54, %v8091_v0  ;;  %v5156_v24 = vpop.eup %5155 }
 0xb5b   :  { %5157 = vtanh.f32 %v3921_v27  ;;  %v3922_v57 = vadd.f32 %v3920_v55, %v3918_v53 }
 0xb5c   :  { %5159 = vrcp.f32 %v3902_v5 }
 0xb5d   :  { %5161 = vtanh.f32 %v3922_v57 }
 0xb65   :  { %v5158_v9 = vpop.eup %5157 }
 0xb66   :  { %v3925_v38 = vmul.f32 %v5158_v9, %v5156_v24  ;;  %v5160_v33 = vpop.eup %5159 }
 0xb67   :  { %v5162_v21 = vpop.eup %5161 }
 0xb68   :  { %v3926_v26 = vmul.f32 %v5162_v21, %v5160_v33 }
 0xb6a   :  { %v3927_v43 = vpack.c.bf16 %v3926_v26, %v3925_v38 }
 0xb6c   :  { %4293 = vmatmul.mubr.bf16.vlgmr.msra.gmra.mrb[64].mxu0 %v3927_v43 }
 0xc3f   :  { %v4033_v52 = vpop.f32.mrb[64].mxu0 }
 0xc40   :  { %v4034_v22 = vadd.f32 %v4258_v23, %v4033_v52  ;;  %v4294_v4 = vpop.f32.mrb[65].mxu0 }
 0xc41   :  { %v4036_v0 = vpop.f32.mrb[66].mxu0 }
 0xc42   :  { %4040 = vst [vmem:[%s8188_s9] sm:$0xff] %v4034_v22  ;;  %v4037_v56 = vadd.f32 %v4258_v23, %v4036_v0  ;;  %v4295_v59 = vpop.f32.mrb[67].mxu0 }
 0xc44   :  { %4041 = vst [vmem:[%s8188_s9 + $0x8] sm:$0xff] %v4037_v56 }

</bundles_post_ra>
